<compile_context>
chip_gen: v7x
topology: tpu7x:2x2x1
jax: 0.10.0
libtpu: 0.0.40
codegen_flags: <defaults>
</compile_context>

<pallas_src>
import functools

import jax
import jax.numpy as jnp
from jax.experimental import pallas as pl
from jax.experimental.pallas import tpu as pltpu  # noqa: F401  (TPU backend assumed)

KT = 2          # STConv temporal kernel_size
CHEB_K = 4      # STConv Chebyshev order K
BN_EPS = 1e-5


# ---------------------------------------------------------------------------
# Fused Pallas kernel (whole forward, grid-less, everything VMEM resident)
# ---------------------------------------------------------------------------
def _stgcn_kernel(
    x_ref, tk_ref,
    # STConv block 1
    w1a_ref, b1a_ref, cw1_ref, cb1_ref, w1b_ref, b1b_ref, g1_ref, be1_ref,
    # STConv block 2
    w2a_ref, b2a_ref, cw2_ref, cb2_ref, w2b_ref, b2b_ref, g2_ref, be2_ref,
    # final Linear
    fcw_ref, fcb_ref,
    o_ref,
    *, K, eps,
):
    f32 = jnp.float32
    bf16 = jnp.bfloat16

    def gated_tconv(a, w_ref, b_ref):
        # TemporalConv: ReLU(P * sigmoid(Q) + R), Conv2d((1, Kt)) with Kt=2, no pad.
        # Both taps and all three gates are folded into ONE matmul:
        #   w_ref: (2*Cin, 3*cout)  rows = [tap0 channels | tap1 channels]
        #   cols  = [P | Q | R] packed contiguously (3*cout <= 128 lanes).
        B, Tin, N, Cin = a.shape
        cout = w_ref.shape[-1] // 3
        Tout = Tin - 1
        m = B * Tout * N
        x01 = jnp.concatenate(
            [a[:, :Tout].reshape(m, Cin), a[:, 1:].reshape(m, Cin)], axis=-1
        ).astype(bf16)
        y = jnp.dot(x01, w_ref[...], preferred_element_type=f32) + b_ref[...]
        p = y[:, 0:cout]
        q = y[:, cout:2 * cout]
        r = y[:, 2 * cout:3 * cout]
        h = jnp.maximum(p * jax.nn.sigmoid(q) + r, 0.0)
        return h.reshape(B, Tout, N, cout)

    def cheb_relu(a, w_ref, b_ref):
        # ChebConv (sym norm, lambda_max=2) + the F.relu from STConv.forward.
        # tk_ref holds T_1..T_{K-1}(L_hat) stacked as ((K-1)*N, N), precomputed
        # wrapper-side -> no Chebyshev recurrence in-kernel.  One batched matmul
        # performs the node mixing for every k at once; K independent 2-D dots do
        # the channel mixing.  T_0 = I is applied directly from `a` (no matmul).
        B, T, N, C = a.shape
        bt = B * T
        cout = w_ref.shape[-1]
        h2 = a.reshape(bt * N, C)
        h3 = a.reshape(bt, N, C)
        acc = jnp.dot(h2.astype(bf16), w_ref[0],
                      preferred_element_type=f32) + b_ref[...]
        # Explicit broadcast keeps the einsum in the Mosaic-native batched form.
        tb = jnp.broadcast_to(tk_ref[...], (bt, (K - 1) * N, N))
        z = jnp.einsum("bpm,bmc->bpc", tb, h3.astype(bf16),
                       preferred_element_type=f32)          # (bt, (K-1)*N, C)
        for k in range(1, K):
            zk = z[:, (k - 1) * N:k * N, :].reshape(bt * N, C).astype(bf16)
            acc = acc + jnp.dot(zk, w_ref[k], preferred_element_type=f32)
        return jnp.maximum(acc, 0.0).reshape(B, T, N, cout)

    def batch_norm(a, g_ref, be_ref):
        # BatchNorm2d(num_nodes) on T.permute(0,2,1,3): channel dim == node dim.
        # Training-mode (biased) batch statistics; one pass (sum + sum-of-squares),
        # scale/shift pre-folded so the per-element work is a single FMA.
        B, T, N, C = a.shape
        cnt = float(B * T * C)
        s = jnp.sum(a, axis=(0, 1, 3), keepdims=True)
        ss = jnp.sum(a * a, axis=(0, 1, 3), keepdims=True)
        mean = s * (1.0 / cnt)
        var = ss * (1.0 / cnt) - mean * mean
        inv = jax.lax.rsqrt(var + eps)
        scale = g_ref[...].reshape(1, 1, N, 1) * inv
        shift = be_ref[...].reshape(1, 1, N, 1) - mean * scale
        return a * scale + shift

    a = x_ref[...]
    # ---- STConv block 1 ----
    a = gated_tconv(a, w1a_ref, b1a_ref)
    a = cheb_relu(a, cw1_ref, cb1_ref)
    a = gated_tconv(a, w1b_ref, b1b_ref)
    a = batch_norm(a, g1_ref, be1_ref)
    # ---- STConv block 2 ----
    a = gated_tconv(a, w2a_ref, b2a_ref)
    a = cheb_relu(a, cw2_ref, cb2_ref)
    a = gated_tconv(a, w2b_ref, b2b_ref)
    a = batch_norm(a, g2_ref, be2_ref)
    # ---- final fc: Linear(out2, fc_out) ----
    B4, T4, N4, C4 = a.shape
    y = jnp.dot(a.reshape(B4 * T4 * N4, C4).astype(bf16), fcw_ref[...],
                preferred_element_type=f32) + fcb_ref[...]
    o_ref[...] = y.reshape(B4, T4, N4, -1)


# ---------------------------------------------------------------------------
# Wrapper-side glue (graph basis, weight packing, single pallas_call)
# ---------------------------------------------------------------------------
def scaled_laplacian_dense(edge_index, num_nodes):
    # ChebConv norm with normalization='sym', lambda_max=2:
    #   L_hat = (2/lambda_max)*(I - D^-1/2 A D^-1/2) - I = -D^-1/2 A D^-1/2
    src, dst = edge_index[0], edge_index[1]
    w = jnp.ones(src.shape[0], jnp.float32)
    deg = jnp.zeros((num_nodes,), jnp.float32).at[src].add(w)
    dinv = jnp.where(deg > 0, jax.lax.rsqrt(deg), 0.0)
    norm = -dinv[src] * w * dinv[dst]
    return jnp.zeros((num_nodes, num_nodes), jnp.float32).at[dst, src].add(norm)


def cheb_basis_stack(edge_index, num_nodes, K):
    # Precompute T_1..T_{K-1}(L_hat) (T_0 = I handled directly in-kernel),
    # stacked along rows: ((K-1)*N, N).  Graph is static, so this runs once in XLA.
    lhat = scaled_laplacian_dense(edge_index, num_nodes)
    t_prev = jnp.eye(num_nodes, dtype=jnp.float32)
    t_cur = lhat
    tks = [t_cur]
    for _ in range(2, K):
        t_prev, t_cur = t_cur, 2.0 * lhat @ t_cur - t_prev
        tks.append(t_cur)
    return jnp.concatenate(tks, axis=0)


def _pack_tconv_params(t):
    # Fold the Kt=2 taps and the three gate Conv2d((1,Kt)) weights into one
    # (2*Cin, 3*cout) matrix: row index = tap*Cin + cin, columns = [P | Q | R]
    # packed contiguously; biases merged into one (1, 3*cout) row.
    wp, wq, wr = t["wp"], t["wq"], t["wr"]      # (kt, cin, cout)
    kt, cin, cout = wp.shape
    assert 3 * cout <= 128, "gate packing assumes 3*cout fits one 128-lane chunk"
    w = jnp.concatenate([wp, wq, wr], axis=-1).reshape(kt * cin, 3 * cout)
    b = jnp.concatenate([t["bp"], t["bq"], t["br"]]).reshape(1, 3 * cout)
    return w.astype(jnp.bfloat16), b.astype(jnp.float32)


def stgcn_forward(x, edge_index, edge_attr, params):
    del edge_attr  # unused: STGCN.forward calls stconv_block(x, edge_index) only
    B, T, N, _ = x.shape
    bf16 = jnp.bfloat16
    tk = cheb_basis_stack(edge_index, N, CHEB_K).astype(bf16)

    b1, b2 = params["block1"], params["block2"]
    w1a, b1a = _pack_tconv_params(b1["t1"])
    w1b, b1b = _pack_tconv_params(b1["t2"])
    w2a, b2a = _pack_tconv_params(b2["t1"])
    w2b, b2b = _pack_tconv_params(b2["t2"])

    fc_out = params["fc_w"].shape[-1]
    t_out = T - 4 * (KT - 1)   # each STConv shrinks time by 2*(Kt-1)

    kernel = functools.partial(_stgcn_kernel, K=CHEB_K, eps=BN_EPS)

    return pl.pallas_call(
        kernel,
        out_shape=jax.ShapeDtypeStruct((B, t_out, N, fc_out), jnp.float32),
    )(
        x, tk,
        w1a, b1a, b1["cheb_w"].astype(bf16), b1["cheb_b"].reshape(1, -1), w1b, b1b,
        b1["bn_gamma"].reshape(N, 1), b1["bn_beta"].reshape(N, 1),
        w2a, b2a, b2["cheb_w"].astype(bf16), b2["cheb_b"].reshape(1, -1), w2b, b2b,
        b2["bn_gamma"].reshape(N, 1), b2["bn_beta"].reshape(N, 1),
        params["fc_w"].astype(bf16), params["fc_b"].reshape(1, -1),
    )


# ---------------------------------------------------------------------------
# Parameter init / example graph
# ---------------------------------------------------------------------------
def init_params(key, num_nodes, in_channels=9, hidden=18, out1=32, out2=9,
                kt=KT, K=CHEB_K, fc_out=4):
    keys = iter(jax.random.split(key, 40))

    def nrm(shape, scale=0.1):
        return (scale * jax.random.normal(next(keys), shape)).astype(jnp.float32)

    def tconv(cin, cout):
        # w*[k, cin, cout] corresponds to torch Conv2d.weight[cout, cin, 0, k]
        return dict(wp=nrm((kt, cin, cout)), wq=nrm((kt, cin, cout)),
                    wr=nrm((kt, cin, cout)),
                    bp=nrm((cout,)), bq=nrm((cout,)), br=nrm((cout,)))

    def block(cin, cout):
        return dict(
            t1=tconv(cin, hidden),
            cheb_w=nrm((K, hidden, hidden)),
            cheb_b=nrm((hidden,)),
            t2=tconv(hidden, cout),
            bn_gamma=jnp.ones((num_nodes,), jnp.float32),   # PyTorch BN default init
            bn_beta=jnp.zeros((num_nodes,), jnp.float32),
        )

    return dict(
        block1=block(in_channels, out1),
        block2=block(out1, out2),
        fc_w=nrm((out2, fc_out)),
        fc_b=nrm((fc_out,)),
    )


def ring_edge_index(n):
    i = jnp.arange(n, dtype=jnp.int32)
    src = jnp.concatenate([i, (i + 1) % n])
    dst = jnp.concatenate([(i + 1) % n, i])
    return jnp.stack([src, dst])


if __name__ == "__main__":
    # Small shapes: batch=2, seq=8, nodes=16, in_channels=9 (module hard-codes 9).
    # num_nodes is kept a parameter (the reference hard-codes 210) so BN stays consistent.
    B, T, N, CIN = 2, 8, 16, 9
    key = jax.random.PRNGKey(0)
    k_x, k_p = jax.random.split(key)

    x = jax.random.normal(k_x, (B, T, N, CIN), jnp.float32)
    edge_index = ring_edge_index(N)
    edge_attr = jnp.ones((edge_index.shape[1],), jnp.float32)  # unused by forward
    params = init_params(k_p, N)

    fwd = jax.jit(stgcn_forward)
    out = jax.block_until_ready(fwd(x, edge_index, edge_attr, params))

    # seq shrinks by (KT-1)*2 per STConv block: 8 -> 6 -> 4; fc maps 9 -> 4
    assert out.shape == (B, T - 4, N, 4), out.shape
    assert out.dtype == jnp.float32
    assert bool(jnp.all(jnp.isfinite(out)))
    print("KERNEL_OK")
</pallas_src>

<mosaic_0001>
module attributes {stable_mosaic.version = 11 : i64} {
  func.func private @main(%arg0: i32) attributes {dimension_semantics = [#tpu.dimension_semantics<core_parallel>], iteration_bounds = array<i64: 2>, tpu.core_type = #tpu.core_type<sc_scalar_subcore>, window_params = []} {
    return
  }
}

module attributes {stable_mosaic.version = 11 : i64} {
  func.func private @main(%arg0: i32) attributes {dimension_semantics = [#tpu.dimension_semantics<core_parallel>], iteration_bounds = array<i64: 2>, tpu.core_type = #tpu.core_type<sc_scalar_subcore>, window_params = []} {
    return
  }
}

module attributes {stable_mosaic.version = 11 : i64} {
  func.func @_stgcn_kernel(%arg0: memref<2x8x16x9xf32, #tpu.memory_space<vmem>>, %arg1: memref<48x16xbf16, #tpu.memory_space<vmem>>, %arg2: memref<18x54xbf16, #tpu.memory_space<vmem>>, %arg3: memref<1x54xf32, #tpu.memory_space<vmem>>, %arg4: memref<4x18x18xbf16, #tpu.memory_space<vmem>>, %arg5: memref<1x18xf32, #tpu.memory_space<vmem>>, %arg6: memref<36x96xbf16, #tpu.memory_space<vmem>>, %arg7: memref<1x96xf32, #tpu.memory_space<vmem>>, %arg8: memref<16x1xf32, #tpu.memory_space<vmem>>, %arg9: memref<16x1xf32, #tpu.memory_space<vmem>>, %arg10: memref<64x54xbf16, #tpu.memory_space<vmem>>, %arg11: memref<1x54xf32, #tpu.memory_space<vmem>>, %arg12: memref<4x18x18xbf16, #tpu.memory_space<vmem>>, %arg13: memref<1x18xf32, #tpu.memory_space<vmem>>, %arg14: memref<36x27xbf16, #tpu.memory_space<vmem>>, %arg15: memref<1x27xf32, #tpu.memory_space<vmem>>, %arg16: memref<16x1xf32, #tpu.memory_space<vmem>>, %arg17: memref<16x1xf32, #tpu.memory_space<vmem>>, %arg18: memref<9x4xbf16, #tpu.memory_space<vmem>>, %arg19: memref<1x4xf32, #tpu.memory_space<vmem>>, %arg20: memref<2x4x16x4xf32, #tpu.memory_space<vmem>>) attributes {dimension_semantics = [], scalar_prefetch = 0 : i64, scratch_operands = 0 : i64, tpu.core_type = #tpu.core_type<tc>} {
    %c0 = arith.constant 0 : index
    %c0_0 = arith.constant 0 : index
    %c0_1 = arith.constant 0 : index
    %c0_2 = arith.constant 0 : index
    %0 = vector.load %arg0[%c0, %c0_0, %c0_1, %c0_2] : memref<2x8x16x9xf32, #tpu.memory_space<vmem>>, vector<2x8x16x9xf32>
    %1 = vector.extract_strided_slice %0 {offsets = [0, 0, 0, 0], sizes = [2, 7, 16, 9], strides = [1, 1, 1, 1]} : vector<2x8x16x9xf32> to vector<2x7x16x9xf32>
    %2 = vector.shape_cast %1 : vector<2x7x16x9xf32> to vector<224x9xf32>
    %3 = vector.extract_strided_slice %0 {offsets = [0, 1, 0, 0], sizes = [2, 7, 16, 9], strides = [1, 1, 1, 1]} : vector<2x8x16x9xf32> to vector<2x7x16x9xf32>
    %4 = vector.shape_cast %3 : vector<2x7x16x9xf32> to vector<224x9xf32>
    %5 = tpu.concatenate %2, %4 in 1 : vector<224x9xf32>, vector<224x9xf32> -> vector<224x18xf32>
    %6 = arith.truncf %5 : vector<224x18xf32> to vector<224x18xbf16>
    %c0_3 = arith.constant 0 : index
    %c0_4 = arith.constant 0 : index
    %7 = vector.load %arg2[%c0_3, %c0_4] : memref<18x54xbf16, #tpu.memory_space<vmem>>, vector<18x54xbf16>
    %cst = arith.constant dense<0.000000e+00> : vector<224x54xf32>
    %8 = tpu.matmul %6, %7, %cst {dimension_numbers = #tpu.dot_dimension_numbers<[1], [0], [0], [1], [0, 0, 1, 1], [], []>} : vector<224x18xbf16>, vector<18x54xbf16>, vector<224x54xf32> -> vector<224x54xf32>
    %c0_5 = arith.constant 0 : index
    %c0_6 = arith.constant 0 : index
    %9 = vector.load %arg3[%c0_5, %c0_6] : memref<1x54xf32, #tpu.memory_space<vmem>>, vector<1x54xf32>
    %10 = vector.broadcast %9 : vector<1x54xf32> to vector<224x54xf32>
    %11 = arith.addf %8, %10 : vector<224x54xf32>
    %12 = vector.extract_strided_slice %11 {offsets = [0, 0], sizes = [224, 18], strides = [1, 1]} : vector<224x54xf32> to vector<224x18xf32>
    %13 = vector.extract_strided_slice %11 {offsets = [0, 18], sizes = [224, 18], strides = [1, 1]} : vector<224x54xf32> to vector<224x18xf32>
    %14 = vector.extract_strided_slice %11 {offsets = [0, 36], sizes = [224, 18], strides = [1, 1]} : vector<224x54xf32> to vector<224x18xf32>
    %15 = arith.negf %13 : vector<224x18xf32>
    %16 = math.exp %15 : vector<224x18xf32>
    %cst_7 = arith.constant 1.000000e+00 : f32
    %17 = vector.broadcast %cst_7 : f32 to vector<224x18xf32>
    %18 = arith.addf %17, %16 : vector<224x18xf32>
    %19 = arith.divf %17, %18 : vector<224x18xf32>
    %20 = arith.mulf %12, %19 : vector<224x18xf32>
    %21 = arith.addf %20, %14 : vector<224x18xf32>
    %cst_8 = arith.constant 0.000000e+00 : f32
    %22 = vector.broadcast %cst_8 : f32 to vector<224x18xf32>
    %23 = arith.maximumf %21, %22 : vector<224x18xf32>
    %24 = vector.shape_cast %23 : vector<224x18xf32> to vector<2x7x16x18xf32>
    %25 = vector.shape_cast %24 : vector<2x7x16x18xf32> to vector<224x18xf32>
    %26 = vector.shape_cast %24 : vector<2x7x16x18xf32> to vector<14x16x18xf32>
    %27 = arith.truncf %25 : vector<224x18xf32> to vector<224x18xbf16>
    %c0_9 = arith.constant 0 : index
    %c0_10 = arith.constant 0 : index
    %c0_11 = arith.constant 0 : index
    %28 = vector.load %arg4[%c0_9, %c0_10, %c0_11] : memref<4x18x18xbf16, #tpu.memory_space<vmem>>, vector<1x18x18xbf16>
    %29 = vector.shape_cast %28 : vector<1x18x18xbf16> to vector<18x18xbf16>
    %cst_12 = arith.constant dense<0.000000e+00> : vector<224x18xf32>
    %30 = tpu.matmul %27, %29, %cst_12 {dimension_numbers = #tpu.dot_dimension_numbers<[1], [0], [0], [1], [0, 0, 1, 1], [], []>} : vector<224x18xbf16>, vector<18x18xbf16>, vector<224x18xf32> -> vector<224x18xf32>
    %c0_13 = arith.constant 0 : index
    %c0_14 = arith.constant 0 : index
    %31 = vector.load %arg5[%c0_13, %c0_14] : memref<1x18xf32, #tpu.memory_space<vmem>>, vector<1x18xf32>
    %32 = vector.broadcast %31 : vector<1x18xf32> to vector<224x18xf32>
    %33 = arith.addf %30, %32 : vector<224x18xf32>
    %c0_15 = arith.constant 0 : index
    %c0_16 = arith.constant 0 : index
    %34 = vector.load %arg1[%c0_15, %c0_16] : memref<48x16xbf16, #tpu.memory_space<vmem>>, vector<48x16xbf16>
    %35 = vector.shape_cast %34 : vector<48x16xbf16> to vector<1x48x16xbf16>
    %36 = vector.broadcast %35 : vector<1x48x16xbf16> to vector<14x48x16xbf16>
    %37 = arith.truncf %26 : vector<14x16x18xf32> to vector<14x16x18xbf16>
    "tpu.trace_start"() <{level = 10 : i32, message = "bpm,bmc->bpc"}> : () -> ()
    %cst_17 = arith.constant dense<0.000000e+00> : vector<14x48x18xf32>
    %38 = tpu.matmul %36, %37, %cst_17 {dimension_numbers = #tpu.dot_dimension_numbers<[2], [1], [1], [2], [0, 0, 0, 1, 1, 2], [0], [0]>} : vector<14x48x16xbf16>, vector<14x16x18xbf16>, vector<14x48x18xf32> -> vector<14x48x18xf32>
    "tpu.trace_stop"() : () -> ()
    %39 = vector.extract_strided_slice %38 {offsets = [0, 0, 0], sizes = [14, 16, 18], strides = [1, 1, 1]} : vector<14x48x18xf32> to vector<14x16x18xf32>
    %40 = vector.shape_cast %39 : vector<14x16x18xf32> to vector<224x18xf32>
    %41 = arith.truncf %40 : vector<224x18xf32> to vector<224x18xbf16>
    %c1 = arith.constant 1 : index
    %c0_18 = arith.constant 0 : index
    %c0_19 = arith.constant 0 : index
    %42 = vector.load %arg4[%c1, %c0_18, %c0_19] : memref<4x18x18xbf16, #tpu.memory_space<vmem>>, vector<1x18x18xbf16>
    %43 = vector.shape_cast %42 : vector<1x18x18xbf16> to vector<18x18xbf16>
    %cst_20 = arith.constant dense<0.000000e+00> : vector<224x18xf32>
    %44 = tpu.matmul %41, %43, %cst_20 {dimension_numbers = #tpu.dot_dimension_numbers<[1], [0], [0], [1], [0, 0, 1, 1], [], []>} : vector<224x18xbf16>, vector<18x18xbf16>, vector<224x18xf32> -> vector<224x18xf32>
    %45 = arith.addf %33, %44 : vector<224x18xf32>
    %46 = vector.extract_strided_slice %38 {offsets = [0, 16, 0], sizes = [14, 16, 18], strides = [1, 1, 1]} : vector<14x48x18xf32> to vector<14x16x18xf32>
    %47 = vector.shape_cast %46 : vector<14x16x18xf32> to vector<224x18xf32>
    %48 = arith.truncf %47 : vector<224x18xf32> to vector<224x18xbf16>
    %c2 = arith.constant 2 : index
    %c0_21 = arith.constant 0 : index
    %c0_22 = arith.constant 0 : index
    %49 = vector.load %arg4[%c2, %c0_21, %c0_22] : memref<4x18x18xbf16, #tpu.memory_space<vmem>>, vector<1x18x18xbf16>
    %50 = vector.shape_cast %49 : vector<1x18x18xbf16> to vector<18x18xbf16>
    %cst_23 = arith.constant dense<0.000000e+00> : vector<224x18xf32>
    %51 = tpu.matmul %48, %50, %cst_23 {dimension_numbers = #tpu.dot_dimension_numbers<[1], [0], [0], [1], [0, 0, 1, 1], [], []>} : vector<224x18xbf16>, vector<18x18xbf16>, vector<224x18xf32> -> vector<224x18xf32>
    %52 = arith.addf %45, %51 : vector<224x18xf32>
    %53 = vector.extract_strided_slice %38 {offsets = [0, 32, 0], sizes = [14, 16, 18], strides = [1, 1, 1]} : vector<14x48x18xf32> to vector<14x16x18xf32>
    %54 = vector.shape_cast %53 : vector<14x16x18xf32> to vector<224x18xf32>
    %55 = arith.truncf %54 : vector<224x18xf32> to vector<224x18xbf16>
    %c3 = arith.constant 3 : index
    %c0_24 = arith.constant 0 : index
    %c0_25 = arith.constant 0 : index
    %56 = vector.load %arg4[%c3, %c0_24, %c0_25] : memref<4x18x18xbf16, #tpu.memory_space<vmem>>, vector<1x18x18xbf16>
    %57 = vector.shape_cast %56 : vector<1x18x18xbf16> to vector<18x18xbf16>
    %cst_26 = arith.constant dense<0.000000e+00> : vector<224x18xf32>
    %58 = tpu.matmul %55, %57, %cst_26 {dimension_numbers = #tpu.dot_dimension_numbers<[1], [0], [0], [1], [0, 0, 1, 1], [], []>} : vector<224x18xbf16>, vector<18x18xbf16>, vector<224x18xf32> -> vector<224x18xf32>
    %59 = arith.addf %52, %58 : vector<224x18xf32>
    %cst_27 = arith.constant 0.000000e+00 : f32
    %60 = vector.broadcast %cst_27 : f32 to vector<224x18xf32>
    %61 = arith.maximumf %59, %60 : vector<224x18xf32>
    %62 = vector.shape_cast %61 : vector<224x18xf32> to vector<2x7x16x18xf32>
    %63 = vector.extract_strided_slice %62 {offsets = [0, 0, 0, 0], sizes = [2, 6, 16, 18], strides = [1, 1, 1, 1]} : vector<2x7x16x18xf32> to vector<2x6x16x18xf32>
    %64 = vector.shape_cast %63 : vector<2x6x16x18xf32> to vector<192x18xf32>
    %65 = vector.extract_strided_slice %62 {offsets = [0, 1, 0, 0], sizes = [2, 6, 16, 18], strides = [1, 1, 1, 1]} : vector<2x7x16x18xf32> to vector<2x6x16x18xf32>
    %66 = vector.shape_cast %65 : vector<2x6x16x18xf32> to vector<192x18xf32>
    %67 = tpu.concatenate %64, %66 in 1 : vector<192x18xf32>, vector<192x18xf32> -> vector<192x36xf32>
    %68 = arith.truncf %67 : vector<192x36xf32> to vector<192x36xbf16>
    %c0_28 = arith.constant 0 : index
    %c0_29 = arith.constant 0 : index
    %69 = vector.load %arg6[%c0_28, %c0_29] : memref<36x96xbf16, #tpu.memory_space<vmem>>, vector<36x96xbf16>
    %cst_30 = arith.constant dense<0.000000e+00> : vector<192x96xf32>
    %70 = tpu.matmul %68, %69, %cst_30 {dimension_numbers = #tpu.dot_dimension_numbers<[1], [0], [0], [1], [0, 0, 1, 1], [], []>} : vector<192x36xbf16>, vector<36x96xbf16>, vector<192x96xf32> -> vector<192x96xf32>
    %c0_31 = arith.constant 0 : index
    %c0_32 = arith.constant 0 : index
    %71 = vector.load %arg7[%c0_31, %c0_32] : memref<1x96xf32, #tpu.memory_space<vmem>>, vector<1x96xf32>
    %72 = vector.broadcast %71 : vector<1x96xf32> to vector<192x96xf32>
    %73 = arith.addf %70, %72 : vector<192x96xf32>
    %74 = vector.extract_strided_slice %73 {offsets = [0, 0], sizes = [192, 32], strides = [1, 1]} : vector<192x96xf32> to vector<192x32xf32>
    %75 = vector.extract_strided_slice %73 {offsets = [0, 32], sizes = [192, 32], strides = [1, 1]} : vector<192x96xf32> to vector<192x32xf32>
    %76 = vector.extract_strided_slice %73 {offsets = [0, 64], sizes = [192, 32], strides = [1, 1]} : vector<192x96xf32> to vector<192x32xf32>
    %77 = arith.negf %75 : vector<192x32xf32>
    %78 = math.exp %77 : vector<192x32xf32>
    %cst_33 = arith.constant 1.000000e+00 : f32
    %79 = vector.broadcast %cst_33 : f32 to vector<192x32xf32>
    %80 = arith.addf %79, %78 : vector<192x32xf32>
    %81 = arith.divf %79, %80 : vector<192x32xf32>
    %82 = arith.mulf %74, %81 : vector<192x32xf32>
    %83 = arith.addf %82, %76 : vector<192x32xf32>
    %cst_34 = arith.constant 0.000000e+00 : f32
    %84 = vector.broadcast %cst_34 : f32 to vector<192x32xf32>
    %85 = arith.maximumf %83, %84 : vector<192x32xf32>
    %86 = vector.shape_cast %85 : vector<192x32xf32> to vector<2x6x16x32xf32>
    %cst_35 = arith.constant dense<0.000000e+00> : vector<16xf32>
    %87 = vector.multi_reduction <add>, %86, %cst_35 [0, 1, 3] : vector<2x6x16x32xf32> to vector<16xf32>
    %88 = vector.shape_cast %87 : vector<16xf32> to vector<1x1x16x1xf32>
    %89 = arith.mulf %86, %86 : vector<2x6x16x32xf32>
    %cst_36 = arith.constant dense<0.000000e+00> : vector<16xf32>
    %90 = vector.multi_reduction <add>, %89, %cst_36 [0, 1, 3] : vector<2x6x16x32xf32> to vector<16xf32>
    %91 = vector.shape_cast %90 : vector<16xf32> to vector<1x1x16x1xf32>
    %cst_37 = arith.constant 0.00260416674 : f32
    %92 = vector.broadcast %cst_37 : f32 to vector<1x1x16x1xf32>
    %93 = arith.mulf %88, %92 : vector<1x1x16x1xf32>
    %cst_38 = arith.constant 0.00260416674 : f32
    %94 = vector.broadcast %cst_38 : f32 to vector<1x1x16x1xf32>
    %95 = arith.mulf %91, %94 : vector<1x1x16x1xf32>
    %96 = arith.mulf %93, %93 : vector<1x1x16x1xf32>
    %97 = arith.subf %95, %96 : vector<1x1x16x1xf32>
    %cst_39 = arith.constant 9.99999974E-6 : f32
    %98 = vector.broadcast %cst_39 : f32 to vector<1x1x16x1xf32>
    %99 = arith.addf %97, %98 : vector<1x1x16x1xf32>
    %100 = math.rsqrt %99 : vector<1x1x16x1xf32>
    %c0_40 = arith.constant 0 : index
    %c0_41 = arith.constant 0 : index
    %101 = vector.load %arg8[%c0_40, %c0_41] : memref<16x1xf32, #tpu.memory_space<vmem>>, vector<16x1xf32>
    %102 = vector.shape_cast %101 : vector<16x1xf32> to vector<1x1x16x1xf32>
    %103 = arith.mulf %102, %100 : vector<1x1x16x1xf32>
    %c0_42 = arith.constant 0 : index
    %c0_43 = arith.constant 0 : index
    %104 = vector.load %arg9[%c0_42, %c0_43] : memref<16x1xf32, #tpu.memory_space<vmem>>, vector<16x1xf32>
    %105 = vector.shape_cast %104 : vector<16x1xf32> to vector<1x1x16x1xf32>
    %106 = arith.mulf %93, %103 : vector<1x1x16x1xf32>
    %107 = arith.subf %105, %106 : vector<1x1x16x1xf32>
    %108 = vector.broadcast %103 : vector<1x1x16x1xf32> to vector<2x6x16x32xf32>
    %109 = arith.mulf %86, %108 : vector<2x6x16x32xf32>
    %110 = vector.broadcast %107 : vector<1x1x16x1xf32> to vector<2x6x16x32xf32>
    %111 = arith.addf %109, %110 : vector<2x6x16x32xf32>
    %112 = vector.extract_strided_slice %111 {offsets = [0, 0, 0, 0], sizes = [2, 5, 16, 32], strides = [1, 1, 1, 1]} : vector<2x6x16x32xf32> to vector<2x5x16x32xf32>
    %113 = vector.shape_cast %112 : vector<2x5x16x32xf32> to vector<160x32xf32>
    %114 = vector.extract_strided_slice %111 {offsets = [0, 1, 0, 0], sizes = [2, 5, 16, 32], strides = [1, 1, 1, 1]} : vector<2x6x16x32xf32> to vector<2x5x16x32xf32>
    %115 = vector.shape_cast %114 : vector<2x5x16x32xf32> to vector<160x32xf32>
    %116 = tpu.concatenate %113, %115 in 1 : vector<160x32xf32>, vector<160x32xf32> -> vector<160x64xf32>
    %117 = arith.truncf %116 : vector<160x64xf32> to vector<160x64xbf16>
    %c0_44 = arith.constant 0 : index
    %c0_45 = arith.constant 0 : index
    %118 = vector.load %arg10[%c0_44, %c0_45] : memref<64x54xbf16, #tpu.memory_space<vmem>>, vector<64x54xbf16>
    %cst_46 = arith.constant dense<0.000000e+00> : vector<160x54xf32>
    %119 = tpu.matmul %117, %118, %cst_46 {dimension_numbers = #tpu.dot_dimension_numbers<[1], [0], [0], [1], [0, 0, 1, 1], [], []>} : vector<160x64xbf16>, vector<64x54xbf16>, vector<160x54xf32> -> vector<160x54xf32>
    %c0_47 = arith.constant 0 : index
    %c0_48 = arith.constant 0 : index
    %120 = vector.load %arg11[%c0_47, %c0_48] : memref<1x54xf32, #tpu.memory_space<vmem>>, vector<1x54xf32>
    %121 = vector.broadcast %120 : vector<1x54xf32> to vector<160x54xf32>
    %122 = arith.addf %119, %121 : vector<160x54xf32>
    %123 = vector.extract_strided_slice %122 {offsets = [0, 0], sizes = [160, 18], strides = [1, 1]} : vector<160x54xf32> to vector<160x18xf32>
    %124 = vector.extract_strided_slice %122 {offsets = [0, 18], sizes = [160, 18], strides = [1, 1]} : vector<160x54xf32> to vector<160x18xf32>
    %125 = vector.extract_strided_slice %122 {offsets = [0, 36], sizes = [160, 18], strides = [1, 1]} : vector<160x54xf32> to vector<160x18xf32>
    %126 = arith.negf %124 : vector<160x18xf32>
    %127 = math.exp %126 : vector<160x18xf32>
    %cst_49 = arith.constant 1.000000e+00 : f32
    %128 = vector.broadcast %cst_49 : f32 to vector<160x18xf32>
    %129 = arith.addf %128, %127 : vector<160x18xf32>
    %130 = arith.divf %128, %129 : vector<160x18xf32>
    %131 = arith.mulf %123, %130 : vector<160x18xf32>
    %132 = arith.addf %131, %125 : vector<160x18xf32>
    %cst_50 = arith.constant 0.000000e+00 : f32
    %133 = vector.broadcast %cst_50 : f32 to vector<160x18xf32>
    %134 = arith.maximumf %132, %133 : vector<160x18xf32>
    %135 = vector.shape_cast %134 : vector<160x18xf32> to vector<2x5x16x18xf32>
    %136 = vector.shape_cast %135 : vector<2x5x16x18xf32> to vector<160x18xf32>
    %137 = vector.shape_cast %135 : vector<2x5x16x18xf32> to vector<10x16x18xf32>
    %138 = arith.truncf %136 : vector<160x18xf32> to vector<160x18xbf16>
    %c0_51 = arith.constant 0 : index
    %c0_52 = arith.constant 0 : index
    %c0_53 = arith.constant 0 : index
    %139 = vector.load %arg12[%c0_51, %c0_52, %c0_53] : memref<4x18x18xbf16, #tpu.memory_space<vmem>>, vector<1x18x18xbf16>
    %140 = vector.shape_cast %139 : vector<1x18x18xbf16> to vector<18x18xbf16>
    %cst_54 = arith.constant dense<0.000000e+00> : vector<160x18xf32>
    %141 = tpu.matmul %138, %140, %cst_54 {dimension_numbers = #tpu.dot_dimension_numbers<[1], [0], [0], [1], [0, 0, 1, 1], [], []>} : vector<160x18xbf16>, vector<18x18xbf16>, vector<160x18xf32> -> vector<160x18xf32>
    %c0_55 = arith.constant 0 : index
    %c0_56 = arith.constant 0 : index
    %142 = vector.load %arg13[%c0_55, %c0_56] : memref<1x18xf32, #tpu.memory_space<vmem>>, vector<1x18xf32>
    %143 = vector.broadcast %142 : vector<1x18xf32> to vector<160x18xf32>
    %144 = arith.addf %141, %143 : vector<160x18xf32>
    %c0_57 = arith.constant 0 : index
    %c0_58 = arith.constant 0 : index
    %145 = vector.load %arg1[%c0_57, %c0_58] : memref<48x16xbf16, #tpu.memory_space<vmem>>, vector<48x16xbf16>
    %146 = vector.shape_cast %145 : vector<48x16xbf16> to vector<1x48x16xbf16>
    %147 = vector.broadcast %146 : vector<1x48x16xbf16> to vector<10x48x16xbf16>
    %148 = arith.truncf %137 : vector<10x16x18xf32> to vector<10x16x18xbf16>
    "tpu.trace_start"() <{level = 10 : i32, message = "bpm,bmc->bpc"}> : () -> ()
    %cst_59 = arith.constant dense<0.000000e+00> : vector<10x48x18xf32>
    %149 = tpu.matmul %147, %148, %cst_59 {dimension_numbers = #tpu.dot_dimension_numbers<[2], [1], [1], [2], [0, 0, 0, 1, 1, 2], [0], [0]>} : vector<10x48x16xbf16>, vector<10x16x18xbf16>, vector<10x48x18xf32> -> vector<10x48x18xf32>
    "tpu.trace_stop"() : () -> ()
    %150 = vector.extract_strided_slice %149 {offsets = [0, 0, 0], sizes = [10, 16, 18], strides = [1, 1, 1]} : vector<10x48x18xf32> to vector<10x16x18xf32>
    %151 = vector.shape_cast %150 : vector<10x16x18xf32> to vector<160x18xf32>
    %152 = arith.truncf %151 : vector<160x18xf32> to vector<160x18xbf16>
    %c1_60 = arith.constant 1 : index
    %c0_61 = arith.constant 0 : index
    %c0_62 = arith.constant 0 : index
    %153 = vector.load %arg12[%c1_60, %c0_61, %c0_62] : memref<4x18x18xbf16, #tpu.memory_space<vmem>>, vector<1x18x18xbf16>
    %154 = vector.shape_cast %153 : vector<1x18x18xbf16> to vector<18x18xbf16>
    %cst_63 = arith.constant dense<0.000000e+00> : vector<160x18xf32>
    %155 = tpu.matmul %152, %154, %cst_63 {dimension_numbers = #tpu.dot_dimension_numbers<[1], [0], [0], [1], [0, 0, 1, 1], [], []>} : vector<160x18xbf16>, vector<18x18xbf16>, vector<160x18xf32> -> vector<160x18xf32>
    %156 = arith.addf %144, %155 : vector<160x18xf32>
    %157 = vector.extract_strided_slice %149 {offsets = [0, 16, 0], sizes = [10, 16, 18], strides = [1, 1, 1]} : vector<10x48x18xf32> to vector<10x16x18xf32>
    %158 = vector.shape_cast %157 : vector<10x16x18xf32> to vector<160x18xf32>
    %159 = arith.truncf %158 : vector<160x18xf32> to vector<160x18xbf16>
    %c2_64 = arith.constant 2 : index
    %c0_65 = arith.constant 0 : index
    %c0_66 = arith.constant 0 : index
    %160 = vector.load %arg12[%c2_64, %c0_65, %c0_66] : memref<4x18x18xbf16, #tpu.memory_space<vmem>>, vector<1x18x18xbf16>
    %161 = vector.shape_cast %160 : vector<1x18x18xbf16> to vector<18x18xbf16>
    %cst_67 = arith.constant dense<0.000000e+00> : vector<160x18xf32>
    %162 = tpu.matmul %159, %161, %cst_67 {dimension_numbers = #tpu.dot_dimension_numbers<[1], [0], [0], [1], [0, 0, 1, 1], [], []>} : vector<160x18xbf16>, vector<18x18xbf16>, vector<160x18xf32> -> vector<160x18xf32>
    %163 = arith.addf %156, %162 : vector<160x18xf32>
    %164 = vector.extract_strided_slice %149 {offsets = [0, 32, 0], sizes = [10, 16, 18], strides = [1, 1, 1]} : vector<10x48x18xf32> to vector<10x16x18xf32>
    %165 = vector.shape_cast %164 : vector<10x16x18xf32> to vector<160x18xf32>
    %166 = arith.truncf %165 : vector<160x18xf32> to vector<160x18xbf16>
    %c3_68 = arith.constant 3 : index
    %c0_69 = arith.constant 0 : index
    %c0_70 = arith.constant 0 : index
    %167 = vector.load %arg12[%c3_68, %c0_69, %c0_70] : memref<4x18x18xbf16, #tpu.memory_space<vmem>>, vector<1x18x18xbf16>
    %168 = vector.shape_cast %167 : vector<1x18x18xbf16> to vector<18x18xbf16>
    %cst_71 = arith.constant dense<0.000000e+00> : vector<160x18xf32>
    %169 = tpu.matmul %166, %168, %cst_71 {dimension_numbers = #tpu.dot_dimension_numbers<[1], [0], [0], [1], [0, 0, 1, 1], [], []>} : vector<160x18xbf16>, vector<18x18xbf16>, vector<160x18xf32> -> vector<160x18xf32>
    %170 = arith.addf %163, %169 : vector<160x18xf32>
    %cst_72 = arith.constant 0.000000e+00 : f32
    %171 = vector.broadcast %cst_72 : f32 to vector<160x18xf32>
    %172 = arith.maximumf %170, %171 : vector<160x18xf32>
    %173 = vector.shape_cast %172 : vector<160x18xf32> to vector<2x5x16x18xf32>
    %174 = vector.extract_strided_slice %173 {offsets = [0, 0, 0, 0], sizes = [2, 4, 16, 18], strides = [1, 1, 1, 1]} : vector<2x5x16x18xf32> to vector<2x4x16x18xf32>
    %175 = vector.shape_cast %174 : vector<2x4x16x18xf32> to vector<128x18xf32>
    %176 = vector.extract_strided_slice %173 {offsets = [0, 1, 0, 0], sizes = [2, 4, 16, 18], strides = [1, 1, 1, 1]} : vector<2x5x16x18xf32> to vector<2x4x16x18xf32>
    %177 = vector.shape_cast %176 : vector<2x4x16x18xf32> to vector<128x18xf32>
    %178 = tpu.concatenate %175, %177 in 1 : vector<128x18xf32>, vector<128x18xf32> -> vector<128x36xf32>
    %179 = arith.truncf %178 : vector<128x36xf32> to vector<128x36xbf16>
    %c0_73 = arith.constant 0 : index
    %c0_74 = arith.constant 0 : index
    %180 = vector.load %arg14[%c0_73, %c0_74] : memref<36x27xbf16, #tpu.memory_space<vmem>>, vector<36x27xbf16>
    %cst_75 = arith.constant dense<0.000000e+00> : vector<128x27xf32>
    %181 = tpu.matmul %179, %180, %cst_75 {dimension_numbers = #tpu.dot_dimension_numbers<[1], [0], [0], [1], [0, 0, 1, 1], [], []>} : vector<128x36xbf16>, vector<36x27xbf16>, vector<128x27xf32> -> vector<128x27xf32>
    %c0_76 = arith.constant 0 : index
    %c0_77 = arith.constant 0 : index
    %182 = vector.load %arg15[%c0_76, %c0_77] : memref<1x27xf32, #tpu.memory_space<vmem>>, vector<1x27xf32>
    %183 = vector.broadcast %182 : vector<1x27xf32> to vector<128x27xf32>
    %184 = arith.addf %181, %183 : vector<128x27xf32>
    %185 = vector.extract_strided_slice %184 {offsets = [0, 0], sizes = [128, 9], strides = [1, 1]} : vector<128x27xf32> to vector<128x9xf32>
    %186 = vector.extract_strided_slice %184 {offsets = [0, 9], sizes = [128, 9], strides = [1, 1]} : vector<128x27xf32> to vector<128x9xf32>
    %187 = vector.extract_strided_slice %184 {offsets = [0, 18], sizes = [128, 9], strides = [1, 1]} : vector<128x27xf32> to vector<128x9xf32>
    %188 = arith.negf %186 : vector<128x9xf32>
    %189 = math.exp %188 : vector<128x9xf32>
    %cst_78 = arith.constant 1.000000e+00 : f32
    %190 = vector.broadcast %cst_78 : f32 to vector<128x9xf32>
    %191 = arith.addf %190, %189 : vector<128x9xf32>
    %192 = arith.divf %190, %191 : vector<128x9xf32>
    %193 = arith.mulf %185, %192 : vector<128x9xf32>
    %194 = arith.addf %193, %187 : vector<128x9xf32>
    %cst_79 = arith.constant 0.000000e+00 : f32
    %195 = vector.broadcast %cst_79 : f32 to vector<128x9xf32>
    %196 = arith.maximumf %194, %195 : vector<128x9xf32>
    %197 = vector.shape_cast %196 : vector<128x9xf32> to vector<2x4x16x9xf32>
    %cst_80 = arith.constant dense<0.000000e+00> : vector<16xf32>
    %198 = vector.multi_reduction <add>, %197, %cst_80 [0, 1, 3] : vector<2x4x16x9xf32> to vector<16xf32>
    %199 = vector.shape_cast %198 : vector<16xf32> to vector<1x1x16x1xf32>
    %200 = arith.mulf %197, %197 : vector<2x4x16x9xf32>
    %cst_81 = arith.constant dense<0.000000e+00> : vector<16xf32>
    %201 = vector.multi_reduction <add>, %200, %cst_81 [0, 1, 3] : vector<2x4x16x9xf32> to vector<16xf32>
    %202 = vector.shape_cast %201 : vector<16xf32> to vector<1x1x16x1xf32>
    %cst_82 = arith.constant 0.013888889 : f32
    %203 = vector.broadcast %cst_82 : f32 to vector<1x1x16x1xf32>
    %204 = arith.mulf %199, %203 : vector<1x1x16x1xf32>
    %cst_83 = arith.constant 0.013888889 : f32
    %205 = vector.broadcast %cst_83 : f32 to vector<1x1x16x1xf32>
    %206 = arith.mulf %202, %205 : vector<1x1x16x1xf32>
    %207 = arith.mulf %204, %204 : vector<1x1x16x1xf32>
    %208 = arith.subf %206, %207 : vector<1x1x16x1xf32>
    %cst_84 = arith.constant 9.99999974E-6 : f32
    %209 = vector.broadcast %cst_84 : f32 to vector<1x1x16x1xf32>
    %210 = arith.addf %208, %209 : vector<1x1x16x1xf32>
    %211 = math.rsqrt %210 : vector<1x1x16x1xf32>
    %c0_85 = arith.constant 0 : index
    %c0_86 = arith.constant 0 : index
    %212 = vector.load %arg16[%c0_85, %c0_86] : memref<16x1xf32, #tpu.memory_space<vmem>>, vector<16x1xf32>
    %213 = vector.shape_cast %212 : vector<16x1xf32> to vector<1x1x16x1xf32>
    %214 = arith.mulf %213, %211 : vector<1x1x16x1xf32>
    %c0_87 = arith.constant 0 : index
    %c0_88 = arith.constant 0 : index
    %215 = vector.load %arg17[%c0_87, %c0_88] : memref<16x1xf32, #tpu.memory_space<vmem>>, vector<16x1xf32>
    %216 = vector.shape_cast %215 : vector<16x1xf32> to vector<1x1x16x1xf32>
    %217 = arith.mulf %204, %214 : vector<1x1x16x1xf32>
    %218 = arith.subf %216, %217 : vector<1x1x16x1xf32>
    %219 = vector.broadcast %214 : vector<1x1x16x1xf32> to vector<2x4x16x9xf32>
    %220 = arith.mulf %197, %219 : vector<2x4x16x9xf32>
    %221 = vector.broadcast %218 : vector<1x1x16x1xf32> to vector<2x4x16x9xf32>
    %222 = arith.addf %220, %221 : vector<2x4x16x9xf32>
    %223 = vector.shape_cast %222 : vector<2x4x16x9xf32> to vector<128x9xf32>
    %224 = arith.truncf %223 : vector<128x9xf32> to vector<128x9xbf16>
    %c0_89 = arith.constant 0 : index
    %c0_90 = arith.constant 0 : index
    %225 = vector.load %arg18[%c0_89, %c0_90] : memref<9x4xbf16, #tpu.memory_space<vmem>>, vector<9x4xbf16>
    %cst_91 = arith.constant dense<0.000000e+00> : vector<128x4xf32>
    %226 = tpu.matmul %224, %225, %cst_91 {dimension_numbers = #tpu.dot_dimension_numbers<[1], [0], [0], [1], [0, 0, 1, 1], [], []>} : vector<128x9xbf16>, vector<9x4xbf16>, vector<128x4xf32> -> vector<128x4xf32>
    %c0_92 = arith.constant 0 : index
    %c0_93 = arith.constant 0 : index
    %227 = vector.load %arg19[%c0_92, %c0_93] : memref<1x4xf32, #tpu.memory_space<vmem>>, vector<1x4xf32>
    %228 = vector.broadcast %227 : vector<1x4xf32> to vector<128x4xf32>
    %229 = arith.addf %226, %228 : vector<128x4xf32>
    %230 = vector.shape_cast %229 : vector<128x4xf32> to vector<2x4x16x4xf32>
    %c0_94 = arith.constant 0 : index
    %c0_95 = arith.constant 0 : index
    %c0_96 = arith.constant 0 : index
    %c0_97 = arith.constant 0 : index
    %231 = vector.load %arg20[%c0_94, %c0_95, %c0_96, %c0_97] : memref<2x4x16x4xf32, #tpu.memory_space<vmem>>, vector<2x4x16x4xf32>
    tpu.vector_store %arg20[%c0_94, %c0_95, %c0_96, %c0_97], %230 {strides = array<i32>} : memref<2x4x16x4xf32, #tpu.memory_space<vmem>>, vector<2x4x16x4xf32>,
    return
  }
}

</mosaic_0001>

<bundles_post_ra>
// kernel: stgcn_forward.1
= control target key start
LH: loop header
LB: loop body
LE: loop exit
PB: predicated region body
PF: predicated region fallthrough
CT: control target
= control target key end

     0   :  { %s8710_s24 = smov 9   ;;  %vm315_vm0 = vcmask 1040384   ;;  %vm210_vm1 = vcmask 72704   ;;  %vm272_vm2 = vcmask 146432   ;;  %vm8714_vm3 = vmmov 0   ;;  %s11859_s0 = inlined_call_operand.vmem [shape: f32[2,8,16,9], index: 0, kind: input, shape index: {}]   ;;  %s11860_s2 = inlined_call_operand.vmem [shape: bf16[18,54], index: 2, kind: input, shape index: {}]   ;;  %s11861_s3 = inlined_call_operand.vmem [shape: f32[1,54], index: 3, kind: input, shape index: {}]   ;;  %s11862_s4 = inlined_call_operand.vmem [shape: bf16[4,18,18], index: 4, kind: input, shape index: {}]   ;;  %s11863_s1 = inlined_call_operand.vmem [shape: bf16[48,16], index: 1, kind: input, shape index: {}]   ;;  %s11864_s6 = inlined_call_operand.vmem [shape: bf16[36,96], index: 6, kind: input, shape index: {}]   ;;  %s11865_s5 = inlined_call_operand.vmem [shape: f32[1,18], index: 5, kind: input, shape index: {}]   ;;  %s11866_s7 = inlined_call_operand.vmem [shape: f32[1,96], index: 7, kind: input, shape index: {}]   ;;  %s11867_s8 = inlined_call_operand.vmem [shape: f32[16,1], index: 8, kind: input, shape index: {}]   ;;  %s11868_s9 = inlined_call_operand.vmem [shape: f32[16,1], index: 9, kind: input, shape index: {}]   ;;  %s11869_s10 = inlined_call_operand.vmem [shape: bf16[64,54], index: 10, kind: input, shape index: {}]   ;;  %s11870_s11 = inlined_call_operand.vmem [shape: f32[1,54], index: 11, kind: input, shape index: {}]   ;;  %s11871_s12 = inlined_call_operand.vmem [shape: bf16[4,18,18], index: 12, kind: input, shape index: {}]   ;;  %s11872_s14 = inlined_call_operand.vmem [shape: bf16[36,27], index: 14, kind: input, shape index: {}]   ;;  %s11873_s13 = inlined_call_operand.vmem [shape: f32[1,18], index: 13, kind: input, shape index: {}]   ;;  %s11874_s15 = inlined_call_operand.vmem [shape: f32[1,27], index: 15, kind: input, shape index: {}]   ;;  %s11875_s18 = inlined_call_operand.vmem [shape: bf16[9,4], index: 18, kind: input, shape index: {}]   ;;  %s11876_s16 = inlined_call_operand.vmem [shape: f32[16,1], index: 16, kind: input, shape index: {}]   ;;  %s11877_s17 = inlined_call_operand.vmem [shape: f32[16,1], index: 17, kind: input, shape index: {}]   ;;  %s11878_s19 = inlined_call_operand.vmem [shape: f32[1,4], index: 19, kind: input, shape index: {}]   ;;  %s11879_s20 = inlined_call_operand.vmem [shape: f32[2,4,16,4], index: 20, kind: output, shape index: {}]  }
   0x1   :  { %11892 = sst [smem:[#allocation5_spill]] %s11859_s0  ;;  %vm1184_vm4 = vcmask 130048   ;;  %vm2951_vm5 = vcmask 1041408   ;;  %vm2914_vm6 = vcmask 293888   ;;  %vm3492_vm7 = vcmask 261120  }
   0x2   :  { %11893 = sst [smem:[#allocation6_spill]] %s11860_s2  ;;  %s11897_s23 = sld [smem:[#allocation5_spill]]  ;;  %vm3856_vm8 = vcmask 523264   ;;  %vm6417_vm9 = vcmask 1043456   ;;  %vm6418_vm10 = vcmask 1044480   ;;  %vm6521_vm11 = vcmask 31744  }
   0x3   :  { %11894 = sst [smem:[#allocation7_spill]] %s11861_s3  ;;  %s11898_s28 = sld [smem:[#allocation6_spill]] }
   0x4   :  { %11895 = sst [smem:[#allocation8_spill]] %s11862_s4  ;;  %s11899_s25 = sld [smem:[#allocation7_spill]] }
   0x5   :  { %11896 = sst [smem:[#allocation9_spill]] %s11863_s1  ;;  %s8711_s4 = smov 92  }
   0x6   :  { %s8712_s1 = smov 110   ;;  %s11904_s21 = sld [smem:[#allocation9_spill]] }
   0x8   :  { %v8830_v0 = vld [vmem:[%s11897_s23 + $0x10] sm:$0xff]  ;;  %v8835_v1 = vld [vmem:[%s11897_s23 + $0x18] sm:$0xff]  ;;  %v8852_v5 = vld [vmem:[%s11897_s23 + $0x20] sm:$0xff] }
   0x9   :  { %v8840_v2 = vld [vmem:[%s11897_s23 + $0x30] sm:$0xff]  ;;  %v8093_v3 = vpack.i.bf16 %v8835_v1, %v8830_v0  ;;  %v8847_v4 = vld [vmem:[%s11897_s23 + $0x38] sm:$0xff]  ;;  %v8857_v6 = vld [vmem:[%s11897_s23 + $0x28] sm:$0xff] }
   0xa   :  { %v8103_v7 = vpack.i.bf16 %v8847_v4, %v8840_v2  ;;  %v8864_v8 = vld [vmem:[%s11897_s23 + $0x40] sm:$0xff]  ;;  %v8869_v9 = vld [vmem:[%s11897_s23 + $0x48] sm:$0xff]  ;;  %v8098_v10 = vpack.i.bf16 %v8857_v6, %v8852_v5  ;;  %v8880_v12 = vld [vmem:[%s11897_s23 + $0x50] sm:$0xff] }
   0xb   :  { %8094 = vrot.lane.b32.xlu0 %v8093_v3, %s8710_s24  ;;  %v8108_v11 = vpack.i.bf16 %v8869_v9, %v8864_v8  ;;  %v8885_v13 = vld [vmem:[%s11897_s23 + $0x58] sm:$0xff]  ;;  %v8890_v14 = vld [vmem:[%s11897_s23 + $0x60] sm:$0xff]  ;;  %v8895_v15 = vld [vmem:[%s11897_s23 + $0x68] sm:$0xff] }
   0xc   :  { %8104 = vrot.lane.b32.xlu1 %v8103_v7, %s8710_s24  ;;  %v8113_v16 = vpack.i.bf16 %v8885_v13, %v8880_v12  ;;  %v8118_v17 = vpack.i.bf16 %v8895_v15, %v8890_v14  ;;  %v80_v18 = vld [vmem:[%s11897_s23 + $0x70] sm:$0xff]  ;;  %v81_v19 = vld [vmem:[%s11897_s23 + $0x78] sm:$0xff]  ;;  %v8315_v22 = vld [vmem:[%s11898_s28] sm:$0xff]  }
   0xd   :  { %v8912_v20 = vld [vmem:[%s11897_s23 + $0x90] sm:$0xff]  ;;  %v8917_v21 = vld [vmem:[%s11897_s23 + $0x98] sm:$0xff]  ;;  %v8316_v23 = vld [vmem:[%s11898_s28 + $0x8] ss:$0 sps:$4 sm:$0x11]   ;;  %v8123_v24 = vpack.i.bf16 %v81_v19, %v80_v18  ;;  %7183 = vmatprep.subr.bf16.mxu0 %v8315_v22  ;;  %7873 = vmatprep.subr.bf16.mxu1 %v8315_v22  ;;  %s11900_s28 = sld [smem:[#allocation8_spill]] }
   0xe   :  { %v8128_v25 = vpack.i.bf16 %v8917_v21, %v8912_v20  ;;  %v8932_v26 = vld [vmem:[%s11897_s23 + $0xa0] sm:$0xff]  ;;  %v8937_v27 = vld [vmem:[%s11897_s23 + $0xa8] sm:$0xff]  ;;  %v8942_v28 = vld [vmem:[%s11897_s23 + $0xb0] sm:$0xff]  ;;  %7184 = vmatpush3.bf16.msra.mxu0 %v8315_v22  ;;  %v317_v30 = vsel %vm315_vm0, %v8316_v23, 0  ;;  %7875 = vmatpush3.bf16.msra.mxu1 %v8315_v22 }
   0xf   :  { %8099 = vrot.lane.b32.xlu0 %v8098_v10, %s8710_s24  ;;  %v8947_v29 = vld [vmem:[%s11897_s23 + $0xb8] sm:$0xff]  ;;  %8069 = vmatprep.subr.msk.bf16.mxu0 %vm315_vm0, %v8316_v23  ;;  %v8133_v31 = vpack.i.bf16 %v8937_v27, %v8932_v26  ;;  %v8961_v33 = vld [vmem:[%s11897_s23 + $0xc0] sm:$0xff]  ;;  %v8966_v34 = vld [vmem:[%s11897_s23 + $0xc8] sm:$0xff] }
  0x10   :  { %8109 = vrot.lane.b32.xlu1 %v8108_v11, %s8710_s24  ;;  %8070 = vmatprep.subr.msk.bf16.mxu1 %vm315_vm0, %v8316_v23  ;;  %v8138_v32 = vpack.i.bf16 %v8947_v29, %v8942_v28  ;;  %v8971_v35 = vld [vmem:[%s11897_s23 + $0xd0] sm:$0xff]  ;;  %v8976_v36 = vld [vmem:[%s11897_s23 + $0xd8] sm:$0xff]  ;;  %v8143_v37 = vpack.i.bf16 %v8966_v34, %v8961_v33  ;;  %v8987_v39 = vld [vmem:[%s11897_s23 + $0xe0] sm:$0xff] }
  0x11   :  { %v8148_v38 = vpack.i.bf16 %v8976_v36, %v8971_v35  ;;  %v8992_v40 = vld [vmem:[%s11897_s23 + $0xe8] sm:$0xff]  ;;  %v96_v41 = vld [vmem:[%s11897_s23 + $0xf0] sm:$0xff]  ;;  %v97_v42 = vld [vmem:[%s11897_s23 + $0xf8] sm:$0xff] }
  0x12   :  { %7186 = vmatpush3.bf16.msra.mxu0 %v317_v30  ;;  %7876 = vmatpush3.bf16.msra.mxu1 %v317_v30  ;;  %v8153_v43 = vpack.i.bf16 %v8992_v40, %v8987_v39  ;;  %v8158_v44 = vpack.i.bf16 %v97_v42, %v96_v41  ;;  %v66_v46 = vld [vmem:[%s11897_s23] sm:$0xff]  ;;  %v67_v47 = vld [vmem:[%s11897_s23 + $0x8] sm:$0xff] }
  0x13   :  { %8114 = vrot.lane.b32.xlu0 %v8113_v16, %s8710_s24  ;;  %v82_v23 = vld [vmem:[%s11897_s23 + $0x80] sm:$0xff] }
  0x14   :  { %8119 = vrot.lane.b32.xlu1 %v8118_v17, %s8710_s24 }
  0x17   :  { %8124 = vrot.lane.b32.xlu0 %v8123_v24, %s8710_s24  ;;  %v83_v24 = vld [vmem:[%s11897_s23 + $0x88] sm:$0xff]  ;;  %s8716_s23 = smov 64  }
  0x18   :  { %8129 = vrot.lane.b32.xlu1 %v8128_v25, %s8710_s24 }
  0x1b   :  { %8134 = vrot.lane.b32.xlu0 %v8133_v31, %s8710_s24 }
  0x1c   :  { %8139 = vrot.lane.b32.xlu1 %v8138_v32, %s8710_s24 }
  0x1f   :  { %8144 = vrot.lane.b32.xlu0 %v8143_v37, %s8710_s24 }
  0x20   :  { %8149 = vrot.lane.b32.xlu1 %v8148_v38, %s8710_s24 }
  0x23   :  { %8154 = vrot.lane.b32.xlu0 %v8153_v43, %s8710_s24 }
  0x24   :  { %8159 = vrot.lane.b32.xlu1 %v8158_v44, %s8710_s24 }
  0x7d   :  { %v8095_v45 = vpop.permute.xlu0 %8094 }
  0x7e   :  { %v8097_v48 = vunpack.i.h.bf16 %v8095_v45  ;;  %v8096_v49 = vunpack.i.l.bf16 %v8095_v45  ;;  %v8105_v50 = vpop.permute.xlu1 %8104 }
  0x7f   :  { %v8107_v51 = vunpack.i.h.bf16 %v8105_v50  ;;  %v8106_v52 = vunpack.i.l.bf16 %v8105_v50 }
  0x80   :  { %v211_v53 = vsel %vm210_vm1, %v66_v46, %v8096_v49  ;;  %v212_v54 = vsel %vm210_vm1, %v67_v47, %v8097_v48 }
  0x81   :  { %v8100_v55 = vpop.permute.xlu0 %8099  ;;  %v239_v56 = vpack.c.bf16 %v212_v54, %v211_v53  ;;  %v215_v60 = vsel %vm210_vm1, %v8852_v5, %v8106_v52  ;;  %v216_v61 = vsel %vm210_vm1, %v8857_v6, %v8107_v51 }
  0x82   :  { %v8102_v57 = vunpack.i.h.bf16 %v8100_v55  ;;  %v8101_v58 = vunpack.i.l.bf16 %v8100_v55  ;;  %v8110_v59 = vpop.permute.xlu1 %8109  ;;  %v241_v17 = vpack.c.bf16 %v216_v61, %v215_v60 }
  0x83   :  { %7187 = vmatprep.mubr.msk.bf16.mxu0 %vm272_vm2, %v239_v56  ;;  %v8112_v3 = vunpack.i.h.bf16 %v8110_v59  ;;  %v8111_v7 = vunpack.i.l.bf16 %v8110_v59 }
  0x84   :  { %v214_v62 = vsel %vm210_vm1, %v8835_v1, %v8102_v57  ;;  %v213_v63 = vsel %vm210_vm1, %v8830_v0, %v8101_v58 }
  0x85   :  { %v8115_v10 = vpop.permute.xlu0 %8114  ;;  %v240_v11 = vpack.c.bf16 %v214_v62, %v213_v63  ;;  %v218_v5 = vsel %vm210_vm1, %v8847_v4, %v8112_v3  ;;  %v217_v1 = vsel %vm210_vm1, %v8840_v2, %v8111_v7 }
  0x86   :  { %v8120_v16 = vpop.permute.xlu1 %8119  ;;  %v8117_v18 = vunpack.i.h.bf16 %v8115_v10  ;;  %v8116_v19 = vunpack.i.l.bf16 %v8115_v10  ;;  %v242_v37 = vpack.c.bf16 %v218_v5, %v217_v1 }
  0x87   :  { %7188 = vmatmul.mubr.msk.bf16.vlgmr.msra.gmra.mrb[0].mxu0 %vm272_vm2, %v240_v11  ;;  %v8122_v32 = vunpack.i.h.bf16 %v8120_v16  ;;  %v8121_v42 = vunpack.i.l.bf16 %v8120_v16 }
  0x88   :  { %7191 = vmatprep.mubr.msk.bf16.mxu0 %vm272_vm2, %v241_v17  ;;  %v220_v30 = vsel %vm210_vm1, %v8869_v9, %v8117_v18  ;;  %v219_v4 = vsel %vm210_vm1, %v8864_v8, %v8116_v19 }
  0x89   :  { %v8125_v6 = vpop.permute.xlu0 %8124  ;;  %v243_v46 = vpack.c.bf16 %v220_v30, %v219_v4  ;;  %v222_v56 = vsel %vm210_vm1, %v8885_v13, %v8122_v32  ;;  %v221_v57 = vsel %vm210_vm1, %v8880_v12, %v8121_v42 }
  0x8a   :  { %v8127_v0 = vunpack.i.h.bf16 %v8125_v6  ;;  %v8126_v22 = vunpack.i.l.bf16 %v8125_v6  ;;  %v8130_v25 = vpop.permute.xlu1 %8129  ;;  %v244_v60 = vpack.c.bf16 %v222_v56, %v221_v57 }
  0x8b   :  { %v8132_v31 = vunpack.i.h.bf16 %v8130_v25  ;;  %v8131_v2 = vunpack.i.l.bf16 %v8130_v25 }
  0x8c   :  { %v223_v38 = vsel %vm210_vm1, %v8890_v14, %v8126_v22  ;;  %v224_v41 = vsel %vm210_vm1, %v8895_v15, %v8127_v0 }
  0x8d   :  { %v226_v43 = vsel %vm210_vm1, %v83_v24, %v8132_v31  ;;  %v225_v44 = vsel %vm210_vm1, %v82_v23, %v8131_v2  ;;  %v245_v45 = vpack.c.bf16 %v224_v41, %v223_v38  ;;  %v8135_v9 = vpop.permute.xlu0 %8134 }
  0x8e   :  { %v246_v47 = vpack.c.bf16 %v226_v43, %v225_v44  ;;  %v8137_v8 = vunpack.i.h.bf16 %v8135_v9  ;;  %v8136_v48 = vunpack.i.l.bf16 %v8135_v9  ;;  %v8140_v49 = vpop.permute.xlu1 %8139 }
  0x8f   :  { %7192 = vmatmul.mubr.msk.bf16.gmra.mrb[4].mxu0 %vm272_vm2, %v242_v37  ;;  %7199 = vmatprep.mubr.msk.bf16.mxu1 %vm272_vm2, %v245_v45  ;;  %v8142_v14 = vunpack.i.h.bf16 %v8140_v49  ;;  %v8141_v50 = vunpack.i.l.bf16 %v8140_v49 }
  0x90   :  { %7195 = vmatprep.mubr.msk.bf16.mxu0 %vm272_vm2, %v243_v46  ;;  %7200 = vmatmul.mubr.msk.bf16.vlgmr.msra.gmra.mrb[0].mxu1 %vm272_vm2, %v246_v47  ;;  %v228_v15 = vsel %vm210_vm1, %v8917_v21, %v8137_v8  ;;  %v227_v51 = vsel %vm210_vm1, %v8912_v20, %v8136_v48 }
  0x91   :  { %v230_v52 = vsel %vm210_vm1, %v8937_v27, %v8142_v14  ;;  %v229_v53 = vsel %vm210_vm1, %v8932_v26, %v8141_v50  ;;  %v247_v54 = vpack.c.bf16 %v228_v15, %v227_v51  ;;  %v8145_v55 = vpop.permute.xlu0 %8144 }
  0x92   :  { %v8147_v58 = vunpack.i.h.bf16 %v8145_v55  ;;  %v8146_v59 = vunpack.i.l.bf16 %v8145_v55  ;;  %v8150_v21 = vpop.permute.xlu1 %8149  ;;  %v248_v20 = vpack.c.bf16 %v230_v52, %v229_v53 }
  0x93   :  { %7203 = vmatprep.mubr.msk.bf16.mxu1 %vm272_vm2, %v247_v54  ;;  %v8152_v61 = vunpack.i.h.bf16 %v8150_v21  ;;  %v8151_v62 = vunpack.i.l.bf16 %v8150_v21 }
  0x94   :  { %v232_v27 = vsel %vm210_vm1, %v8947_v29, %v8147_v58  ;;  %v231_v26 = vsel %vm210_vm1, %v8942_v28, %v8146_v59 }
  0x95   :  { %v249_v63 = vpack.c.bf16 %v232_v27, %v231_v26  ;;  %v8155_v13 = vpop.permute.xlu0 %8154  ;;  %v234_v12 = vsel %vm210_vm1, %v8966_v34, %v8152_v61  ;;  %v233_v29 = vsel %vm210_vm1, %v8961_v33, %v8151_v62 }
  0x96   :  { %v8157_v3 = vunpack.i.h.bf16 %v8155_v13  ;;  %v8156_v7 = vunpack.i.l.bf16 %v8155_v13  ;;  %v8160_v11 = vpop.permute.xlu1 %8159  ;;  %v250_v16 = vpack.c.bf16 %v234_v12, %v233_v29 }
  0x97   :  { %7196 = vmatmul.mubr.msk.bf16.gmra.mrb[8].mxu0 %vm272_vm2, %v244_v60  ;;  %v8162_v17 = vunpack.i.h.bf16 %v8160_v11  ;;  %v8161_v18 = vunpack.i.l.bf16 %v8160_v11  ;;  %v8317_v11 = vld [vmem:[%s11900_s28] sm:$0xff]  }
  0x98   :  { %7204 = vmatmul.mubr.msk.bf16.gmra.mrb[4].mxu1 %vm272_vm2, %v248_v20  ;;  %v236_v28 = vsel %vm210_vm1, %v8976_v36, %v8157_v3  ;;  %v235_v10 = vsel %vm210_vm1, %v8971_v35, %v8156_v7  ;;  %v9087_v35 = vld [vmem:[%s11899_s25] ss:$0 sm:$0xff]  ;;  %7215 = vmatprep.subr.bf16.mxu1 %v8317_v11 }
  0x99   :  { %7207 = vmatprep.mubr.msk.bf16.mxu1 %vm272_vm2, %v249_v63  ;;  %v251_v19 = vpack.c.bf16 %v236_v28, %v235_v10  ;;  %v238_v34 = vsel %vm210_vm1, %v8992_v40, %v8162_v17  ;;  %v237_v33 = vsel %vm210_vm1, %v8987_v39, %v8161_v18  ;;  %7216 = vmatpush3.bf16.msra.mxu1 %v8317_v11 }
  0x9a   :  { %v252_v5 = vpack.c.bf16 %v238_v34, %v237_v33 }
  0xa0   :  { %7208 = vmatmul.mubr.msk.bf16.gmra.mrb[8].mxu1 %vm272_vm2, %v250_v16 }
  0xa1   :  { %7211 = vmatprep.mubr.msk.bf16.mxu1 %vm272_vm2, %v251_v19 }
  0xa8   :  { %7212 = vmatmul.mubr.msk.bf16.gmra.mrb[12].mxu1 %vm272_vm2, %v252_v5 }
 0x15a   :  { %v7189_v36 = vpop.f32.mrb[0].mxu0 }
 0x15b   :  { %v9090_v1 = vadd.f32 %v7189_v36, %v9087_v35  ;;  %v353_v6 = vpop.f32.mrb[1].mxu0 }
 0x15c   :  { %v7190_v0 = vpop.f32.mrb[2].mxu0  ;;  %v9109_v41 = vadd.f32 %v9087_v35, %v353_v6 }
 0x15d   :  { %v9093_v40 = vadd.f32 %v7190_v0, %v9087_v35  ;;  %804 = vrot.lane.b32.xlu0 %v9090_v1, %s8711_s4  ;;  %v356_v39 = vpop.f32.mrb[3].mxu0  ;;  %v6561_v32 = vmul.f32 -1.442695, %v9090_v1 }
 0x15e   :  { %v9115_v43 = vadd.f32 %v9087_v35, %v356_v39  ;;  %v6559_v9 = vmul.f32 -1.442695, %v9109_v41 }
 0x15f   :  { %806 = vrot.lane.b32.xlu1 %v9093_v40, %s8711_s4  ;;  %v6562_v42 = vmul.f32 -1.442695, %v9093_v40  ;;  %8350 = vpow2.f32 %v6561_v32 }
 0x160   :  { %v6560_v51 = vmul.f32 -1.442695, %v9115_v43 }
 0x161   :  { %8352 = vpow2.f32 %v6562_v42 }
 0x162   :  { %v7193_v22 = vpop.f32.mrb[4].mxu0 }
 0x163   :  { %v369_v23 = vpop.f32.mrb[5].mxu0  ;;  %v7201_v24 = vpop.f32.mrb[0].mxu1  ;;  %v9142_v54 = vadd.f32 %v7193_v22, %v9087_v35 }
 0x164   :  { %v9100_v25 = vadd.f32 %v7201_v24, %v9087_v35  ;;  %v7194_v30 = vpop.f32.mrb[6].mxu0  ;;  %v401_v4 = vpop.f32.mrb[1].mxu1  ;;  %v9147_v55 = vadd.f32 %v9087_v35, %v369_v23 }
 0x165   :  { %v372_v31 = vpop.f32.mrb[7].mxu0  ;;  %v7202_v2 = vpop.f32.mrb[2].mxu1  ;;  %v9126_v8 = vadd.f32 %v9087_v35, %v401_v4  ;;  %v9150_v56 = vadd.f32 %v7194_v30, %v9087_v35  ;;  %v6565_v26 = vmul.f32 -1.442695, %v9142_v54 }
 0x166   :  { %v9104_v37 = vadd.f32 %v7202_v2, %v9087_v35  ;;  %v404_v38 = vpop.f32.mrb[3].mxu1  ;;  %828 = vrot.lane.b32.xlu0 %v9100_v25, %s8711_s4  ;;  %v6573_v44 = vmul.f32 -1.442695, %v9100_v25  ;;  %v6563_v62 = vmul.f32 -1.442695, %v9147_v55  ;;  %v9170_v63 = vadd.f32 %v9087_v35, %v372_v31 }
 0x167   :  { %v9137_v52 = vadd.f32 %v9087_v35, %v404_v38  ;;  %v6571_v57 = vmul.f32 -1.442695, %v9126_v8  ;;  %v6566_v10 = vmul.f32 -1.442695, %v9150_v56 }
 0x168   :  { %830 = vrot.lane.b32.xlu1 %v9104_v37, %s8711_s4  ;;  %v6574_v14 = vmul.f32 -1.442695, %v9104_v37  ;;  %8354 = vpow2.f32 %v6573_v44 }
 0x169   :  { %8356 = vpow2.f32 %v6559_v9  ;;  %v8351_v59 = vpop.eup %8350  ;;  %v6572_v21 = vmul.f32 -1.442695, %v9137_v52 }
 0x16a   :  { %v9118_v45 = vpop.f32.mrb[8].mxu0  ;;  %800 = vrot.lane.b32.xlu0 %v9109_v41, %s8711_s4  ;;  %8358 = vpow2.f32 %v6574_v14  ;;  %v550_v7 = vadd.f32 1.0, %v8351_v59 }
 0x16b   :  { %v9123_v46 = vpop.f32.mrb[9].mxu0  ;;  %v7205_v47 = vpop.f32.mrb[4].mxu1  ;;  %8360 = vpow2.f32 %v6560_v51  ;;  %v9197_v0 = vadd.f32 %v9118_v45, %v9087_v35  ;;  %v6564_v45 = vmul.f32 -1.442695, %v9170_v63 }
 0x16c   :  { %v9128_v48 = vpop.f32.mrb[10].mxu0  ;;  %802 = vrot.lane.b32.xlu1 %v9115_v43, %s8711_s4  ;;  %v417_v49 = vpop.f32.mrb[5].mxu1  ;;  %v9164_v60 = vadd.f32 %v7205_v47, %v9087_v35  ;;  %8362 = vpow2.f32 %v6571_v57  ;;  %v9223_v9 = vadd.f32 %v9087_v35, %v9123_v46 }
 0x16d   :  { %v9133_v50 = vpop.f32.mrb[11].mxu0  ;;  %v7206_v15 = vpop.f32.mrb[6].mxu1  ;;  %v9173_v13 = vadd.f32 %v9087_v35, %v417_v49  ;;  %8364 = vpow2.f32 %v6572_v21  ;;  %v9209_v4 = vadd.f32 %v9128_v48, %v9087_v35 }
 0x16e   :  { %824 = vrot.lane.b32.xlu0 %v9126_v8, %s8711_s4  ;;  %v420_v53 = vpop.f32.mrb[7].mxu1  ;;  %v8353_v27 = vpop.eup %8352  ;;  %8366 = vpow2.f32 %v6565_v26  ;;  %v6577_v17 = vmul.f32 -1.442695, %v9164_v60  ;;  %v9188_v18 = vadd.f32 %v7206_v15, %v9087_v35  ;;  %v9230_v49 = vadd.f32 %v9087_v35, %v9133_v50 }
 0x16f   :  { %v551_v28 = vadd.f32 1.0, %v8353_v27  ;;  %8368 = vpow2.f32 %v6563_v62  ;;  %v9191_v19 = vadd.f32 %v9087_v35, %v420_v53  ;;  %v6575_v47 = vmul.f32 -1.442695, %v9173_v13 }
 0x170   :  { %826 = vrot.lane.b32.xlu1 %v9137_v52, %s8711_s4  ;;  %8370 = vrcp.f32 %v550_v7  ;;  %v6578_v31 = vmul.f32 -1.442695, %v9188_v18  ;;  %v6569_v50 = vmul.f32 -1.442695, %v9197_v0  ;;  %v6570_v62 = vmul.f32 -1.442695, %v9209_v4 }
 0x171   :  { %8372 = vpow2.f32 %v6566_v10  ;;  %v6576_v51 = vmul.f32 -1.442695, %v9191_v19 }
 0x172   :  { %812 = vrot.lane.b32.xlu0 %v9142_v54, %s8711_s4  ;;  %v8355_v29 = vpop.eup %8354  ;;  %8374 = vrcp.f32 %v551_v28  ;;  %v6567_v28 = vmul.f32 -1.442695, %v9223_v9 }
 0x173   :  { %v9155_v58 = vpop.f32.mrb[8].mxu1  ;;  %v8357_v16 = vpop.eup %8356  ;;  %v562_v33 = vadd.f32 1.0, %v8355_v29  ;;  %8376 = vpow2.f32 %v6577_v17  ;;  %v6568_v17 = vmul.f32 -1.442695, %v9230_v49 }
 0x174   :  { %814 = vrot.lane.b32.xlu1 %v9150_v56, %s8711_s4  ;;  %v9160_v20 = vpop.f32.mrb[9].mxu1  ;;  %v8359_v34 = vpop.eup %8358  ;;  %v548_v6 = vadd.f32 1.0, %v8357_v16 }
 0x175   :  { %v9166_v61 = vpop.f32.mrb[10].mxu1  ;;  %v8361_v36 = vpop.eup %8360  ;;  %v563_v23 = vadd.f32 1.0, %v8359_v34  ;;  %8378 = vrcp.f32 %v562_v33  ;;  %v9247_v34 = vadd.f32 %v9087_v35, %v9160_v20 }
 0x176   :  { %808 = vrot.lane.b32.xlu0 %v9147_v55, %s8711_s4  ;;  %v436_v3 = vpop.f32.mrb[11].mxu1  ;;  %v549_v38 = vadd.f32 1.0, %v8361_v36  ;;  %v8363_v44 = vpop.eup %8362  ;;  %8380 = vrcp.f32 %v548_v6  ;;  %v9251_v36 = vadd.f32 %v9166_v61, %v9087_v35  ;;  %v8318_v6 = vld [vmem:[%s11900_s28 + $0x8] ss:$0 sps:$4 sm:$0x11]  }
 0x177   :  { %v9178_v12 = vadd.f32 %v9087_v35, %v436_v3  ;;  %8382 = vrcp.f32 %v563_v23  ;;  %v8365_v48 = vpop.eup %8364  ;;  %v560_v15 = vadd.f32 1.0, %v8363_v44  ;;  %v11884_v23 = vmov 0.0   ;;  %8071 = vmatprep.subr.msk.bf16.mxu1 %vm315_vm0, %v8318_v6 }
 0x178   :  { %810 = vrot.lane.b32.xlu1 %v9170_v63, %s8711_s4  ;;  %8384 = vpow2.f32 %v6578_v31  ;;  %v8367_v14 = vpop.eup %8366  ;;  %v561_v57 = vadd.f32 1.0, %v8365_v48  ;;  %7247 = vmatprep.subr.bf16.mxu0 %v11884_v23  ;;  %v1016_v31 = vsel %vm315_vm0, %v8318_v6, 0  ;;  %v6579_v61 = vmul.f32 -1.442695, %v9247_v34 }
 0x179   :  { %8386 = vrcp.f32 %v549_v38  ;;  %v8369_v46 = vpop.eup %8368  ;;  %v554_v27 = vadd.f32 1.0, %v8367_v14  ;;  %7218 = vmatpush3.bf16.msra.mxu1 %v1016_v31  ;;  %v6582_v44 = vmul.f32 -1.442695, %v9251_v36  ;;  %v9266_v48 = vadd.f32 %v9155_v58, %v9087_v35  ;;  %7249 = vmatprep.mubr.msk.bf16.mxu0 %vm8714_vm3, %v11884_v23 }
 0x17a   :  { %832 = vrot.lane.b32.xlu0 %v9173_v13, %s8711_s4  ;;  %8388 = vpow2.f32 %v6564_v45  ;;  %v8371_v53 = vpop.eup %8370  ;;  %7261 = vmatprep.subr.bf16.mxu1 %v11884_v23 }
 0x17b   :  { %v7213_v5 = vpop.f32.mrb[12].mxu1  ;;  %8390 = vpow2.f32 %v6575_v47  ;;  %v8373_v59 = vpop.eup %8372 }
 0x17c   :  { %834 = vrot.lane.b32.xlu1 %v9191_v19, %s8711_s4  ;;  %v9202_v39 = vadd.f32 %v7213_v5, %v9087_v35  ;;  %v449_v22 = vpop.f32.mrb[13].mxu1  ;;  %v8375_v21 = vpop.eup %8374  ;;  %8392 = vrcp.f32 %v560_v15  ;;  %v555_v7 = vadd.f32 1.0, %v8373_v59 }
 0x17d   :  { %v9205_v24 = vadd.f32 %v9087_v35, %v449_v22  ;;  %v7214_v30 = vpop.f32.mrb[14].mxu1  ;;  %v8377_v26 = vpop.eup %8376  ;;  %8394 = vpow2.f32 %v6576_v51 }
 0x17e   :  { %11901 = vst [vmem:[#allocation2_spill] sm:$0xff] %v9202_v39  ;;  %820 = vrot.lane.b32.xlu0 %v9197_v0, %s8711_s4  ;;  %v9215_v2 = vadd.f32 %v7214_v30, %v9087_v35  ;;  %v452_v32 = vpop.f32.mrb[15].mxu1  ;;  %8396 = vrcp.f32 %v561_v57  ;;  %v566_v11 = vadd.f32 1.0, %v8377_v26  ;;  %v552_v30 = vadd.f32 1.0, %v8369_v46 }
 0x17f   :  { %v9218_v42 = vadd.f32 %v9087_v35, %v452_v32  ;;  %v8379_v3 = vpop.eup %8378  ;;  %8398 = vpow2.f32 %v6569_v50  ;;  %v6581_v57 = vmul.f32 -1.442695, %v9266_v48  ;;  %v6585_v6 = vmul.f32 -1.442695, %v9202_v39 }
 0x180   :  { %11902 = vst [vmem:[#allocation3_spill] sm:$0xff] %v9215_v2  ;;  %822 = vrot.lane.b32.xlu1 %v9209_v4, %s8711_s4  ;;  %v8381_v29 = vpop.eup %8380  ;;  %8400 = vrcp.f32 %v554_v27 }
 0x181   :  { %11903 = vst [vmem:[#allocation4_spill] sm:$0xff] %v9218_v42  ;;  %v8383_v10 = vpop.eup %8382  ;;  %8402 = vpow2.f32 %v6570_v62 }
 0x182   :  { %816 = vrot.lane.b32.xlu0 %v9223_v9, %s8711_s4  ;;  %v8385_v16 = vpop.eup %8384  ;;  %8404 = vrcp.f32 %v555_v7 }
 0x183   :  { %v8387_v33 = vpop.eup %8386  ;;  %v567_v5 = vadd.f32 1.0, %v8385_v16  ;;  %8406 = vpow2.f32 %v6567_v28 }
 0x184   :  { %818 = vrot.lane.b32.xlu1 %v9230_v49, %s8711_s4  ;;  %v8389_v22 = vpop.eup %8388  ;;  %8408 = vrcp.f32 %v566_v11 }
 0x185   :  { %v8391_v20 = vpop.eup %8390  ;;  %8410 = vpow2.f32 %v6568_v17  ;;  %v553_v38 = vadd.f32 1.0, %v8389_v22 }
 0x186   :  { %664 = vrot.lane.b32.xlu0 %v8371_v53, %s8712_s1  ;;  %v8393_v32 = vpop.eup %8392  ;;  %8412 = vrcp.f32 %v567_v5  ;;  %v564_v47 = vadd.f32 1.0, %v8391_v20 }
 0x187   :  { %v8395_v45 = vpop.eup %8394  ;;  %8414 = vrcp.f32 %v552_v30 }
 0x188   :  { %666 = vrot.lane.b32.xlu1 %v8375_v21, %s8712_s1  ;;  %v8397_v14 = vpop.eup %8396  ;;  %8416 = vpow2.f32 %v6579_v61  ;;  %v565_v51 = vadd.f32 1.0, %v8395_v45  ;;  %v6586_v61 = vmul.f32 -1.442695, %v9215_v2  ;;  %v6584_v45 = vmul.f32 -1.442695, %v9218_v42 }
 0x189   :  { %v8399_v15 = vpop.eup %8398  ;;  %8418 = vrcp.f32 %v553_v38  ;;  %v6583_v38 = vmul.f32 -1.442695, %v9205_v24 }
 0x18a   :  { %688 = vrot.lane.b32.xlu0 %v8379_v3, %s8712_s1  ;;  %v8401_v46 = vpop.eup %8400  ;;  %v558_v58 = vadd.f32 1.0, %v8399_v15  ;;  %8420 = vrcp.f32 %v564_v47 }
 0x18b   :  { %v8403_v53 = vpop.eup %8402  ;;  %8422 = vpow2.f32 %v6582_v44 }
 0x18c   :  { %690 = vrot.lane.b32.xlu1 %v8383_v10, %s8712_s1  ;;  %v8405_v35 = vpop.eup %8404  ;;  %v559_v21 = vadd.f32 1.0, %v8403_v53  ;;  %8424 = vrcp.f32 %v565_v51 }
 0x18d   :  { %v8407_v59 = vpop.eup %8406  ;;  %8426 = vpow2.f32 %v6581_v57 }
 0x18e   :  { %660 = vrot.lane.b32.xlu0 %v8381_v29, %s8712_s1  ;;  %v8409_v50 = vpop.eup %8408  ;;  %8428 = vrcp.f32 %v558_v58  ;;  %v556_v62 = vadd.f32 1.0, %v8407_v59 }
 0x18f   :  { %v8411_v27 = vpop.eup %8410  ;;  %8430 = vrcp.f32 %v559_v21 }
 0x190   :  { %662 = vrot.lane.b32.xlu1 %v8387_v33, %s8712_s1  ;;  %v8413_v26 = vpop.eup %8412  ;;  %v557_v7 = vadd.f32 1.0, %v8411_v27  ;;  %8432 = vrcp.f32 %v556_v62  ;;  %v6580_v33 = vmul.f32 -1.442695, %v9178_v12 }
 0x191   :  { %v8415_v3 = vpop.eup %8414 }
 0x192   :  { %684 = vrot.lane.b32.xlu0 %v8393_v32, %s8712_s1  ;;  %v8417_v29 = vpop.eup %8416  ;;  %8434 = vrcp.f32 %v557_v7 }
 0x193   :  { %v8419_v28 = vpop.eup %8418  ;;  %v568_v11 = vadd.f32 1.0, %v8417_v29 }
 0x194   :  { %686 = vrot.lane.b32.xlu1 %v8397_v14, %s8712_s1  ;;  %v8421_v10 = vpop.eup %8420 }
 0x195   :  { %v8423_v16 = vpop.eup %8422  ;;  %8436 = vrcp.f32 %v568_v11 }
 0x196   :  { %672 = vrot.lane.b32.xlu0 %v8401_v46, %s8712_s1  ;;  %v8425_v17 = vpop.eup %8424  ;;  %v571_v20 = vadd.f32 1.0, %v8423_v16  ;;  %8438 = vpow2.f32 %v6580_v33 }
 0x197   :  { %v8427_v5 = vpop.eup %8426  ;;  %8440 = vpow2.f32 %v6585_v6 }
 0x198   :  { %674 = vrot.lane.b32.xlu1 %v8405_v35, %s8712_s1  ;;  %v8429_v22 = vpop.eup %8428  ;;  %v570_v31 = vadd.f32 1.0, %v8427_v5  ;;  %8442 = vrcp.f32 %v571_v20 }
 0x199   :  { %v8431_v30 = vpop.eup %8430 }
 0x19a   :  { %696 = vrot.lane.b32.xlu0 %v8409_v50, %s8712_s1  ;;  %v8433_v32 = vpop.eup %8432  ;;  %8444 = vrcp.f32 %v570_v31 }
 0x19b   :  { %8446 = vpow2.f32 %v6586_v61 }
 0x19c   :  { %698 = vrot.lane.b32.xlu1 %v8413_v26, %s8712_s1  ;;  %v8435_v44 = vpop.eup %8434  ;;  %8448 = vpow2.f32 %v6583_v38 }
 0x19d   :  { %8450 = vpow2.f32 %v6584_v45 }
 0x19e   :  { %668 = vrot.lane.b32.xlu0 %v8415_v3, %s8712_s1 }
 0x19f   :  { %v8437_v47 = vpop.eup %8436 }
 0x1a0   :  { %670 = vrot.lane.b32.xlu1 %v8419_v28, %s8712_s1  ;;  %v8439_v14 = vpop.eup %8438 }
 0x1a1   :  { %v8441_v15 = vpop.eup %8440  ;;  %v569_v51 = vadd.f32 1.0, %v8439_v14 }
 0x1a2   :  { %692 = vrot.lane.b32.xlu0 %v8421_v10, %s8712_s1  ;;  %v8443_v46 = vpop.eup %8442  ;;  %v574_v57 = vadd.f32 1.0, %v8441_v15 }
 0x1a3   :  { %8452 = vrcp.f32 %v569_v51 }
 0x1a4   :  { %694 = vrot.lane.b32.xlu1 %v8425_v17, %s8712_s1  ;;  %v8445_v53 = vpop.eup %8444  ;;  %8454 = vrcp.f32 %v574_v57 }
 0x1a5   :  { %v8447_v35 = vpop.eup %8446 }
 0x1a6   :  { %680 = vrot.lane.b32.xlu0 %v8429_v22, %s8712_s1  ;;  %v8449_v58 = vpop.eup %8448  ;;  %v575_v59 = vadd.f32 1.0, %v8447_v35 }
 0x1a7   :  { %v8451_v50 = vpop.eup %8450  ;;  %v572_v21 = vadd.f32 1.0, %v8449_v58 }
 0x1a8   :  { %682 = vrot.lane.b32.xlu1 %v8431_v30, %s8712_s1  ;;  %8456 = vrcp.f32 %v575_v59  ;;  %v573_v27 = vadd.f32 1.0, %v8451_v50 }
 0x1a9   :  { %8458 = vrcp.f32 %v572_v21 }
 0x1aa   :  { %676 = vrot.lane.b32.xlu0 %v8433_v32, %s8712_s1  ;;  %8460 = vrcp.f32 %v573_v27 }
 0x1ac   :  { %678 = vrot.lane.b32.xlu1 %v8435_v44, %s8712_s1 }
 0x1ad   :  { %v8453_v26 = vpop.eup %8452 }
 0x1ae   :  { %836 = vrot.lane.b32.xlu0 %v9164_v60, %s8711_s4  ;;  %v8455_v62 = vpop.eup %8454 }
 0x1b0   :  { %838 = vrot.lane.b32.xlu1 %v9188_v18, %s8711_s4 }
 0x1b2   :  { %700 = vrot.lane.b32.xlu0 %v8437_v47, %s8712_s1  ;;  %v8457_v3 = vpop.eup %8456 }
 0x1b3   :  { %v8459_v7 = vpop.eup %8458 }
 0x1b4   :  { %706 = vrot.lane.b32.xlu1 %v8443_v46, %s8712_s1  ;;  %v8461_v29 = vpop.eup %8460 }
 0x1b6   :  { %704 = vrot.lane.b32.xlu0 %v8445_v53, %s8712_s1 }
 0x1b8   :  { %842 = vrot.lane.b32.xlu1 %v9178_v12, %s8711_s4 }
 0x1ba   :  { %840 = vrot.lane.b32.xlu0 %v9247_v34, %s8711_s4 }
 0x1bc   :  { %846 = vrot.lane.b32.xlu1 %v9251_v36, %s8711_s4 }
 0x1be   :  { %844 = vrot.lane.b32.xlu0 %v9266_v48, %s8711_s4 }
 0x1c0   :  { %850 = vrot.lane.b32.xlu1 %v9218_v42, %s8711_s4 }
 0x1c2   :  { %848 = vrot.lane.b32.xlu0 %v9205_v24, %s8711_s4 }
 0x1c4   :  { %702 = vrot.lane.b32.xlu1 %v8453_v26, %s8712_s1 }
 0x1c6   :  { %712 = vrot.lane.b32.xlu0 %v8455_v62, %s8712_s1 }
 0x1c8   :  { %714 = vrot.lane.b32.xlu1 %v8457_v3, %s8712_s1 }
 0x1ca   :  { %708 = vrot.lane.b32.xlu0 %v8459_v7, %s8712_s1 }
 0x1cc   :  { %710 = vrot.lane.b32.xlu1 %v8461_v29, %s8712_s1 }
 0x1ce   :  { %852 = vrot.lane.b32.xlu0 %v9202_v39, %s8711_s4 }
 0x1cf   :  { %v805_v28 = vpop.permute.xlu0 %804 }
 0x1d0   :  { %854 = vrot.lane.b32.xlu1 %v9215_v2, %s8711_s4 }
 0x1d1   :  { %v807_v10 = vpop.permute.xlu1 %806 }
 0x1d8   :  { %v9318_v11 = vpop.permute.xlu0 %828 }
 0x1da   :  { %v9320_v16 = vpop.permute.xlu1 %830 }
 0x1dc   :  { %v801_v17 = vpop.permute.xlu0 %800 }
 0x1de   :  { %v803_v33 = vpop.permute.xlu1 %802 }
 0x1e0   :  { %v9322_v5 = vpop.permute.xlu0 %824 }
 0x1e2   :  { %v9324_v6 = vpop.permute.xlu1 %826 }
 0x1e4   :  { %v813_v22 = vpop.permute.xlu0 %812 }
 0x1e6   :  { %v815_v20 = vpop.permute.xlu1 %814 }
 0x1e8   :  { %v809_v30 = vpop.permute.xlu0 %808 }
 0x1ea   :  { %v811_v31 = vpop.permute.xlu1 %810 }
 0x1ec   :  { %v9326_v61 = vpop.permute.xlu0 %832 }
 0x1ee   :  { %v9328_v32 = vpop.permute.xlu1 %834 }
 0x1f0   :  { %v9330_v38 = vpop.permute.xlu0 %820 }
 0x1f2   :  { %v9332_v44 = vpop.permute.xlu1 %822 }
 0x1f4   :  { %v9334_v45 = vpop.permute.xlu0 %816 }
 0x1f6   :  { %v9336_v47 = vpop.permute.xlu1 %818 }
 0x1f8   :  { %v665_v14 = vpop.permute.xlu0 %664 }
 0x1f9   :  { %v746_v57 = vmul.f32 %v665_v14, %v9090_v1 }
 0x1fa   :  { %v667_v15 = vpop.permute.xlu1 %666 }
 0x1fb   :  { %v747_v51 = vmul.f32 %v667_v15, %v9093_v40  ;;  %v886_v26 = vadd.f32 %v805_v28, %v746_v57  ;;  %v11905_v28 = vmov 0.0  }
 0x1fc   :  { %v9338_v46 = vpop.permute.xlu0 %688 }
 0x1fd   :  { %v887_v59 = vadd.f32 %v807_v10, %v747_v51  ;;  %v914_v40 = vmax.f32 %v886_v26, 0.0 }
 0x1fe   :  { %v9341_v53 = vpop.permute.xlu1 %690 }
 0x1ff   :  { %v915_v7 = vmax.f32 %v887_v59, 0.0 }
 0x200   :  { %v661_v35 = vpop.permute.xlu0 %660 }
 0x201   :  { %v744_v58 = vmul.f32 %v661_v35, %v9109_v41  ;;  %v941_v39 = vpack.c.bf16 %v915_v7, %v914_v40  ;;  %v9349_v41 = vld [vmem:[%s11904_s21] sm:$0xff]  }
 0x202   :  { %v663_v50 = vpop.permute.xlu1 %662 }
 0x203   :  { %v884_v21 = vadd.f32 %v801_v17, %v744_v58  ;;  %v745_v27 = vmul.f32 %v663_v50, %v9115_v43 }
 0x204   :  { %v685_v62 = vpop.permute.xlu0 %684 }
 0x205   :  { %v885_v3 = vadd.f32 %v803_v33, %v745_v27  ;;  %v912_v23 = vmax.f32 %v884_v21, 0.0  ;;  %v756_v40 = vmul.f32 %v685_v62, %v9126_v8  ;;  %v759_v62 = vmul.f32 %v9341_v53, %v9104_v37 }
 0x206   :  { %v687_v29 = vpop.permute.xlu1 %686 }
 0x207   :  { %v913_v2 = vmax.f32 %v885_v3, 0.0 }
 0x208   :  { %v673_v15 = vpop.permute.xlu0 %672 }
 0x209   :  { %v940_v42 = vpack.c.bf16 %v913_v2, %v912_v23 }
 0x20a   :  { %v675_v1 = vpop.permute.xlu1 %674 }
 0x20b   :  { %7219 = vmatprep.mubr.msk.bf16.mxu1 %vm272_vm2, %v940_v42  ;;  %7248 = vmatpush3.bf16.msra.mxu0 %v940_v42  ;;  %v751_v2 = vmul.f32 %v675_v1, %v9150_v56  ;;  %v750_v42 = vmul.f32 %v673_v15, %v9142_v54  ;;  %v9369_v56 = vld [vmem:[%s11904_s21 + $0x8] sm:$0xff]  }
 0x20c   :  { %7220 = vmatmul.mubr.msk.bf16.vlgmr.msra.gmra.mrb[16].mxu1 %vm272_vm2, %v941_v39  ;;  %v9353_v43 = vpop.permute.xlu0 %696  ;;  %7275 = vmatprep.subr.bf16.mxu0 %v11905_v28 }
 0x20d   :  { %7262 = vmatpush3.bf16.msra.mxu1 %v941_v39  ;;  %v891_v33 = vadd.f32 %v815_v20, %v751_v2  ;;  %v890_v57 = vadd.f32 %v813_v22, %v750_v42  ;;  %v757_v22 = vmul.f32 %v687_v29, %v9137_v52 }
 0x20e   :  { %v9357_v23 = vpop.permute.xlu1 %698  ;;  %7250 = vmatmul.mubr.msk.bf16.vlgmr.msra.gmra.mrb[12].mxu0 %vm1184_vm4, %v9349_v41  ;;  %7289 = vmatprep.subr.bf16.mxu1 %v11905_v28 }
 0x20f   :  { %7253 = vmatprep.mubr.msk.bf16.mxu0 %vm8714_vm3, %v11905_v28  ;;  %v919_v59 = vmax.f32 %v891_v33, 0.0  ;;  %v918_v20 = vmax.f32 %v890_v57, 0.0  ;;  %v758_v33 = vmul.f32 %v9338_v46, %v9100_v25 }
 0x210   :  { %v669_v10 = vpop.permute.xlu0 %668 }
 0x211   :  { %v748_v17 = vmul.f32 %v669_v10, %v9147_v55  ;;  %v9376_v26 = vpack.c.bf16 %v919_v59, %v918_v20  ;;  %v898_v25 = vadd.f32 %v9318_v11, %v758_v33  ;;  %v763_v11 = vmul.f32 %v9357_v23, %v9188_v18 }
 0x212   :  { %v671_v14 = vpop.permute.xlu1 %670 }
 0x213   :  { %v888_v39 = vadd.f32 %v809_v30, %v748_v17  ;;  %v749_v51 = vmul.f32 %v671_v14, %v9170_v63  ;;  %v9381_v63 = vld [vmem:[%s11904_s21 + $0x10] sm:$0xff]  }
 0x214   :  { %v693_v35 = vpop.permute.xlu0 %692 }
 0x215   :  { %v889_v58 = vadd.f32 %v811_v31, %v749_v51  ;;  %v916_v54 = vmax.f32 %v888_v39, 0.0 }
 0x216   :  { %v695_v50 = vpop.permute.xlu1 %694  ;;  %7254 = vmatmul.mubr.msk.bf16.gmra.mrb[16].mxu0 %vm1184_vm4, %v9369_v56 }
 0x217   :  { %v917_v55 = vmax.f32 %v889_v58, 0.0  ;;  %7257 = vmatprep.mubr.msk.bf16.mxu0 %vm8714_vm3, %v11905_v28  ;;  %v926_v58 = vmax.f32 %v898_v25, 0.0 }
 0x218   :  { %v681_v21 = vpop.permute.xlu0 %680 }
 0x219   :  { %v942_v27 = vpack.c.bf16 %v917_v55, %v916_v54  ;;  %v754_v3 = vmul.f32 %v681_v21, %v9197_v0  ;;  %v762_v55 = vmul.f32 %v9353_v43, %v9164_v60 }
 0x21a   :  { %v683_v30 = vpop.permute.xlu1 %682 }
 0x21b   :  { %v755_v31 = vmul.f32 %v683_v30, %v9209_v4  ;;  %7223 = vmatprep.mubr.msk.bf16.mxu1 %vm272_vm2, %v942_v27  ;;  %7276 = vmatpush3.bf16.msra.mxu0 %v942_v27  ;;  %v897_v4 = vadd.f32 %v9324_v6, %v757_v22  ;;  %v894_v2 = vadd.f32 %v9330_v38, %v754_v3 }
 0x21c   :  { %7224 = vmatmul.mubr.msk.bf16.gmra.mrb[20].mxu1 %vm272_vm2, %v9376_v26  ;;  %v677_v7 = vpop.permute.xlu0 %676  ;;  %7303 = vmatprep.subr.bf16.mxu0 %v11905_v28 }
 0x21d   :  { %v752_v15 = vmul.f32 %v677_v7, %v9223_v9  ;;  %v895_v1 = vadd.f32 %v9332_v44, %v755_v31  ;;  %v896_v9 = vadd.f32 %v9322_v5, %v756_v40  ;;  %v925_v6 = vmax.f32 %v897_v4, 0.0 }
 0x21e   :  { %v679_v52 = vpop.permute.xlu1 %678  ;;  %7258 = vmatmul.mubr.msk.bf16.gmra.mrb[20].mxu0 %vm1184_vm4, %v9381_v63  ;;  %v922_v14 = vmax.f32 %v894_v2, 0.0  ;;  %v760_v5 = vmul.f32 %v693_v35, %v9173_v13 }
 0x21f   :  { %v892_v0 = vadd.f32 %v9334_v45, %v752_v15  ;;  %v753_v29 = vmul.f32 %v679_v52, %v9230_v49  ;;  %7277 = vmatprep.mubr.msk.bf16.mxu0 %vm8714_vm3, %v11905_v28  ;;  %v923_v42 = vmax.f32 %v895_v1, 0.0  ;;  %v761_v45 = vmul.f32 %v695_v50, %v9191_v19 }
 0x220   :  { %v837_v8 = vpop.permute.xlu0 %836  ;;  %v924_v39 = vmax.f32 %v896_v9, 0.0 }
 0x221   :  { %v893_v44 = vadd.f32 %v9336_v47, %v753_v29  ;;  %v920_v17 = vmax.f32 %v892_v0, 0.0  ;;  %v899_v47 = vadd.f32 %v9320_v16, %v759_v62  ;;  %v9410_v57 = vpack.c.bf16 %v923_v42, %v922_v14 }
 0x222   :  { %v839_v10 = vpop.permute.xlu1 %838  ;;  %v946_v19 = vpack.c.bf16 %v925_v6, %v924_v39  ;;  %v901_v53 = vadd.f32 %v9328_v32, %v761_v45  ;;  %v900_v16 = vadd.f32 %v9326_v61, %v760_v5  ;;  %v902_v27 = vadd.f32 %v837_v8, %v762_v55 }
 0x223   :  { %v921_v49 = vmax.f32 %v893_v44, 0.0  ;;  %v927_v46 = vmax.f32 %v899_v47, 0.0  ;;  %v903_v20 = vadd.f32 %v839_v10, %v763_v11  ;;  %v11906_v10 = vld [vmem:[#allocation2_spill] sm:$0xff] }
 0x224   :  { %v701_v38 = vpop.permute.xlu0 %700  ;;  %v929_v35 = vmax.f32 %v901_v53, 0.0  ;;  %v928_v50 = vmax.f32 %v900_v16, 0.0  ;;  %v930_v43 = vmax.f32 %v902_v27, 0.0 }
 0x225   :  { %v944_v51 = vpack.c.bf16 %v921_v49, %v920_v17  ;;  %v9426_v54 = vpack.c.bf16 %v927_v46, %v926_v58  ;;  %v931_v23 = vmax.f32 %v903_v20, 0.0  ;;  %v764_v31 = vmul.f32 %v701_v38, %v9247_v34  ;;  %v11907_v17 = vld [vmem:[#allocation4_spill] sm:$0xff] }
 0x226   :  { %v707_v37 = vpop.permute.xlu1 %706  ;;  %7278 = vmatmul.mubr.msk.bf16.vlgmr.msra.gmra.mrb[24].mxu0 %vm1184_vm4, %v9349_v41  ;;  %v9432_v21 = vpack.c.bf16 %v929_v35, %v928_v50 }
 0x227   :  { %7227 = vmatprep.mubr.msk.bf16.mxu1 %vm272_vm2, %v944_v51  ;;  %7304 = vmatpush3.bf16.msra.mxu0 %v944_v51  ;;  %v9442_v3 = vpack.c.bf16 %v931_v23, %v930_v43  ;;  %v767_v7 = vmul.f32 %v707_v37, %v9251_v36 }
 0x228   :  { %7228 = vmatmul.mubr.msk.bf16.gmra.mrb[24].mxu1 %vm272_vm2, %v9410_v57  ;;  %v705_v13 = vpop.permute.xlu0 %704  ;;  %7281 = vmatprep.mubr.msk.bf16.mxu0 %vm8714_vm3, %v11905_v28 }
 0x229   :  { %7231 = vmatprep.mubr.msk.bf16.mxu1 %vm272_vm2, %v946_v19  ;;  %7331 = vmatprep.subr.bf16.mxu0 %v11905_v28  ;;  %v766_v30 = vmul.f32 %v705_v13, %v9266_v48 }
 0x22a   :  { %v843_v32 = vpop.permute.xlu1 %842 }
 0x22c   :  { %v841_v59 = vpop.permute.xlu0 %840 }
 0x22d   :  { %v904_v1 = vadd.f32 %v841_v59, %v764_v31 }
 0x22e   :  { %v847_v61 = vpop.permute.xlu1 %846  ;;  %7282 = vmatmul.mubr.msk.bf16.gmra.mrb[28].mxu0 %vm1184_vm4, %v9369_v56 }
 0x22f   :  { %7285 = vmatprep.mubr.msk.bf16.mxu0 %vm8714_vm3, %v11905_v28  ;;  %v907_v4 = vadd.f32 %v847_v61, %v767_v7  ;;  %v932_v36 = vmax.f32 %v904_v1, 0.0 }
 0x230   :  { %7232 = vmatmul.mubr.msk.bf16.gmra.mrb[28].mxu1 %vm272_vm2, %v9426_v54  ;;  %v845_v18 = vpop.permute.xlu0 %844 }
 0x231   :  { %7235 = vmatprep.mubr.msk.bf16.mxu1 %vm272_vm2, %v9432_v21  ;;  %v906_v40 = vadd.f32 %v845_v18, %v766_v30  ;;  %v935_v8 = vmax.f32 %v907_v4, 0.0 }
 0x232   :  { %v851_v60 = vpop.permute.xlu1 %850 }
 0x233   :  { %v934_v0 = vmax.f32 %v906_v40, 0.0  ;;  %v8324_v40 = vld [vmem:[%s11900_s28 + $0x18] sm:$0xff]  }
 0x234   :  { %v849_v22 = vpop.permute.xlu0 %848 }
 0x235   :  { %v9453_v42 = vpack.c.bf16 %v935_v8, %v934_v0 }
 0x236   :  { %v703_v15 = vpop.permute.xlu1 %702  ;;  %7286 = vmatmul.mubr.msk.bf16.gmra.mrb[32].mxu0 %vm1184_vm4, %v9381_v63 }
 0x237   :  { %v765_v52 = vmul.f32 %v703_v15, %v9178_v12  ;;  %7305 = vmatprep.mubr.msk.bf16.mxu0 %vm8714_vm3, %v11905_v28 }
 0x238   :  { %7236 = vmatmul.mubr.msk.bf16.gmra.mrb[32].mxu1 %vm272_vm2, %v9442_v3  ;;  %v713_v34 = vpop.permute.xlu0 %712 }
 0x239   :  { %v905_v48 = vadd.f32 %v843_v32, %v765_v52  ;;  %v770_v6 = vmul.f32 %v713_v34, %v11906_v10 }
 0x23a   :  { %v715_v29 = vpop.permute.xlu1 %714 }
 0x23b   :  { %v933_v2 = vmax.f32 %v905_v48, 0.0 }
 0x23c   :  { %v709_v9 = vpop.permute.xlu0 %708 }
 0x23d   :  { %v950_v44 = vpack.c.bf16 %v933_v2, %v932_v36  ;;  %v768_v62 = vmul.f32 %v709_v9, %v9205_v24  ;;  %v11908_v24 = vld [vmem:[#allocation3_spill] sm:$0xff] }
 0x23e   :  { %v711_v12 = vpop.permute.xlu1 %710  ;;  %7306 = vmatmul.mubr.msk.bf16.vlgmr.msra.gmra.mrb[36].mxu0 %vm1184_vm4, %v9349_v41  ;;  %v771_v14 = vmul.f32 %v715_v29, %v11908_v24 }
 0x23f   :  { %v908_v45 = vadd.f32 %v849_v22, %v768_v62  ;;  %v769_v49 = vmul.f32 %v711_v12, %v11907_v17  ;;  %7332 = vmatpush3.bf16.msra.mxu0 %v946_v19  ;;  %7239 = vmatprep.mubr.msk.bf16.mxu1 %vm272_vm2, %v950_v44 }
 0x240   :  { %7240 = vmatmul.mubr.msk.bf16.gmra.mrb[36].mxu1 %vm272_vm2, %v9453_v42  ;;  %v853_v33 = vpop.permute.xlu0 %852  ;;  %7309 = vmatprep.mubr.msk.bf16.mxu0 %vm8714_vm3, %v11905_v28 }
 0x241   :  { %v909_v38 = vadd.f32 %v851_v60, %v769_v49  ;;  %v910_v39 = vadd.f32 %v853_v33, %v770_v6  ;;  %7359 = vmatprep.subr.bf16.mxu0 %v11905_v28  ;;  %v936_v51 = vmax.f32 %v908_v45, 0.0 }
 0x242   :  { %v855_v5 = vpop.permute.xlu1 %854 }
 0x243   :  { %v937_v47 = vmax.f32 %v909_v38, 0.0  ;;  %v911_v37 = vadd.f32 %v855_v5, %v771_v14  ;;  %v938_v53 = vmax.f32 %v910_v39, 0.0  ;;  %v8325_v39 = vld [vmem:[%s11900_s28 + $0x20] ss:$0 sps:$4 sm:$0x11]  }
 0x245   :  { %v952_v19 = vpack.c.bf16 %v937_v47, %v936_v51  ;;  %v939_v25 = vmax.f32 %v911_v37, 0.0  ;;  %v2307_v37 = vsel %vm315_vm0, %v8325_v39, 0 }
 0x246   :  { %7310 = vmatmul.mubr.msk.bf16.gmra.mrb[40].mxu0 %vm1184_vm4, %v9369_v56 }
 0x247   :  { %v9468_v13 = vpack.c.bf16 %v939_v25, %v938_v53  ;;  %7243 = vmatprep.mubr.msk.bf16.mxu1 %vm272_vm2, %v952_v19  ;;  %7313 = vmatprep.mubr.msk.bf16.mxu0 %vm8714_vm3, %v11905_v28 }
 0x249   :  { %7244 = vmatmul.mubr.msk.bf16.gmra.mrb[40].mxu1 %vm272_vm2, %v9468_v13 }
 0x24a   :  { %7263 = vmatprep.mubr.msk.bf16.mxu1 %vm8714_vm3, %v11905_v28 }
 0x24e   :  { %7314 = vmatmul.mubr.msk.bf16.gmra.mrb[44].mxu0 %vm1184_vm4, %v9381_v63 }
 0x24f   :  { %7333 = vmatprep.mubr.msk.bf16.mxu0 %vm8714_vm3, %v11905_v28 }
 0x251   :  { %7264 = vmatmul.mubr.msk.bf16.vlgmr.msra.gmra.mrb[44].mxu1 %vm1184_vm4, %v9349_v41 }
 0x252   :  { %7290 = vmatpush3.bf16.msra.mxu1 %v9376_v26  ;;  %7267 = vmatprep.mubr.msk.bf16.mxu1 %vm8714_vm3, %v11905_v28  ;;  %v8322_v26 = vld [vmem:[%s11900_s28 + $0xc] sm:$0xff]  }
 0x253   :  { %7317 = vmatprep.subr.bf16.mxu1 %v11905_v28 }
 0x256   :  { %7334 = vmatmul.mubr.msk.bf16.vlgmr.msra.gmra.mrb[48].mxu0 %vm1184_vm4, %v9349_v41 }
 0x257   :  { %7360 = vmatpush3.bf16.msra.mxu0 %v9432_v21  ;;  %7337 = vmatprep.mubr.msk.bf16.mxu0 %vm8714_vm3, %v11905_v28 }
 0x258   :  { %7387 = vmatprep.subr.bf16.mxu0 %v11905_v28 }
 0x259   :  { %7268 = vmatmul.mubr.msk.bf16.gmra.mrb[48].mxu1 %vm1184_vm4, %v9369_v56 }
 0x25a   :  { %7271 = vmatprep.mubr.msk.bf16.mxu1 %vm8714_vm3, %v11905_v28 }
 0x25e   :  { %7338 = vmatmul.mubr.msk.bf16.gmra.mrb[52].mxu0 %vm1184_vm4, %v9369_v56 }
 0x25f   :  { %7341 = vmatprep.mubr.msk.bf16.mxu0 %vm8714_vm3, %v11905_v28 }
 0x261   :  { %7272 = vmatmul.mubr.msk.bf16.gmra.mrb[52].mxu1 %vm1184_vm4, %v9381_v63 }
 0x262   :  { %7291 = vmatprep.mubr.msk.bf16.mxu1 %vm8714_vm3, %v11905_v28 }
 0x266   :  { %7342 = vmatmul.mubr.msk.bf16.gmra.mrb[56].mxu0 %vm1184_vm4, %v9381_v63 }
 0x267   :  { %7361 = vmatprep.mubr.msk.bf16.mxu0 %vm8714_vm3, %v11905_v28 }
 0x269   :  { %7292 = vmatmul.mubr.msk.bf16.vlgmr.msra.gmra.mrb[56].mxu1 %vm1184_vm4, %v9349_v41 }
 0x26a   :  { %7318 = vmatpush3.bf16.msra.mxu1 %v9410_v57  ;;  %7295 = vmatprep.mubr.msk.bf16.mxu1 %vm8714_vm3, %v11905_v28  ;;  %v8323_v57 = vld [vmem:[%s11900_s28 + $0x14] ss:$0 sps:$4 sm:$0x11]  }
 0x26b   :  { %7345 = vmatprep.subr.bf16.mxu1 %v11905_v28  ;;  %v2062_v35 = vsel %vm315_vm0, %v8323_v57, 0 }
 0x26e   :  { %7362 = vmatmul.mubr.msk.bf16.vlgmr.msra.gmra.mrb[60].mxu0 %vm1184_vm4, %v9349_v41 }
 0x26f   :  { %7388 = vmatpush3.bf16.msra.mxu0 %v950_v44  ;;  %7365 = vmatprep.mubr.msk.bf16.mxu0 %vm8714_vm3, %v11905_v28 }
 0x270   :  { %7415 = vmatprep.subr.bf16.mxu0 %v11905_v28 }
 0x271   :  { %7296 = vmatmul.mubr.msk.bf16.gmra.mrb[60].mxu1 %vm1184_vm4, %v9369_v56 }
 0x272   :  { %7299 = vmatprep.mubr.msk.bf16.mxu1 %vm8714_vm3, %v11905_v28 }
 0x276   :  { %7366 = vmatmul.mubr.msk.bf16.gmra.mrb[64].mxu0 %vm1184_vm4, %v9369_v56 }
 0x277   :  { %7369 = vmatprep.mubr.msk.bf16.mxu0 %vm8714_vm3, %v11905_v28 }
 0x279   :  { %7300 = vmatmul.mubr.msk.bf16.gmra.mrb[64].mxu1 %vm1184_vm4, %v9381_v63 }
 0x27a   :  { %7319 = vmatprep.mubr.msk.bf16.mxu1 %vm8714_vm3, %v11905_v28 }
 0x27e   :  { %7370 = vmatmul.mubr.msk.bf16.gmra.mrb[68].mxu0 %vm1184_vm4, %v9381_v63 }
 0x27f   :  { %7389 = vmatprep.mubr.msk.bf16.mxu0 %vm8714_vm3, %v11905_v28 }
 0x281   :  { %7320 = vmatmul.mubr.msk.bf16.vlgmr.msra.gmra.mrb[68].mxu1 %vm1184_vm4, %v9349_v41 }
 0x282   :  { %7346 = vmatpush3.bf16.msra.mxu1 %v9426_v54  ;;  %7323 = vmatprep.mubr.msk.bf16.mxu1 %vm8714_vm3, %v11905_v28 }
 0x283   :  { %7373 = vmatprep.subr.bf16.mxu1 %v11905_v28 }
 0x286   :  { %7390 = vmatmul.mubr.msk.bf16.vlgmr.msra.gmra.mrb[72].mxu0 %vm1184_vm4, %v9349_v41 }
 0x287   :  { %7416 = vmatpush3.bf16.msra.mxu0 %v952_v19  ;;  %7393 = vmatprep.mubr.msk.bf16.mxu0 %vm8714_vm3, %v11905_v28 }
 0x289   :  { %7324 = vmatmul.mubr.msk.bf16.gmra.mrb[72].mxu1 %vm1184_vm4, %v9369_v56 }
 0x28a   :  { %7327 = vmatprep.mubr.msk.bf16.mxu1 %vm8714_vm3, %v11905_v28 }
 0x28e   :  { %7394 = vmatmul.mubr.msk.bf16.gmra.mrb[76].mxu0 %vm1184_vm4, %v9369_v56 }
 0x28f   :  { %7397 = vmatprep.mubr.msk.bf16.mxu0 %vm8714_vm3, %v11905_v28 }
 0x291   :  { %7328 = vmatmul.mubr.msk.bf16.gmra.mrb[76].mxu1 %vm1184_vm4, %v9381_v63 }
 0x292   :  { %7347 = vmatprep.mubr.msk.bf16.mxu1 %vm8714_vm3, %v11905_v28 }
 0x296   :  { %7398 = vmatmul.mubr.msk.bf16.gmra.mrb[80].mxu0 %vm1184_vm4, %v9381_v63 }
 0x297   :  { %7417 = vmatprep.mubr.msk.bf16.mxu0 %vm8714_vm3, %v11905_v28 }
 0x299   :  { %7348 = vmatmul.mubr.msk.bf16.vlgmr.msra.gmra.mrb[80].mxu1 %vm1184_vm4, %v9349_v41 }
 0x29a   :  { %7374 = vmatpush3.bf16.msra.mxu1 %v9442_v3  ;;  %7351 = vmatprep.mubr.msk.bf16.mxu1 %vm8714_vm3, %v11905_v28 }
 0x29b   :  { %7401 = vmatprep.subr.bf16.mxu1 %v11905_v28 }
 0x29e   :  { %7418 = vmatmul.mubr.msk.bf16.vlgmr.msra.gmra.mrb[84].mxu0 %vm1184_vm4, %v9349_v41 }
 0x29f   :  { %7421 = vmatprep.mubr.msk.bf16.mxu0 %vm8714_vm3, %v11905_v28 }
 0x2a1   :  { %7352 = vmatmul.mubr.msk.bf16.gmra.mrb[84].mxu1 %vm1184_vm4, %v9369_v56 }
 0x2a2   :  { %7355 = vmatprep.mubr.msk.bf16.mxu1 %vm8714_vm3, %v11905_v28 }
 0x2a6   :  { %7422 = vmatmul.mubr.msk.bf16.gmra.mrb[88].mxu0 %vm1184_vm4, %v9369_v56 }
 0x2a7   :  { %7425 = vmatprep.mubr.msk.bf16.mxu0 %vm8714_vm3, %v11905_v28 }
 0x2a9   :  { %7356 = vmatmul.mubr.msk.bf16.gmra.mrb[88].mxu1 %vm1184_vm4, %v9381_v63 }
 0x2aa   :  { %7375 = vmatprep.mubr.msk.bf16.mxu1 %vm8714_vm3, %v11905_v28 }
 0x2ae   :  { %7426 = vmatmul.mubr.msk.bf16.gmra.mrb[92].mxu0 %vm1184_vm4, %v9381_v63 }
 0x2b1   :  { %7376 = vmatmul.mubr.msk.bf16.vlgmr.msra.gmra.mrb[92].mxu1 %vm1184_vm4, %v9349_v41 }
 0x2b2   :  { %7402 = vmatpush3.bf16.msra.mxu1 %v9453_v42  ;;  %7379 = vmatprep.mubr.msk.bf16.mxu1 %vm8714_vm3, %v11905_v28 }
 0x2b3   :  { %7429 = vmatprep.subr.bf16.mxu1 %v11905_v28 }
 0x2b9   :  { %7380 = vmatmul.mubr.msk.bf16.gmra.mrb[96].mxu1 %vm1184_vm4, %v9369_v56 }
 0x2ba   :  { %7383 = vmatprep.mubr.msk.bf16.mxu1 %vm8714_vm3, %v11905_v28 }
 0x2c1   :  { %7384 = vmatmul.mubr.msk.bf16.gmra.mrb[100].mxu1 %vm1184_vm4, %v9381_v63 }
 0x2c2   :  { %7403 = vmatprep.mubr.msk.bf16.mxu1 %vm8714_vm3, %v11905_v28 }
 0x2c9   :  { %7404 = vmatmul.mubr.msk.bf16.vlgmr.msra.gmra.mrb[104].mxu1 %vm1184_vm4, %v9349_v41 }
 0x2ca   :  { %7430 = vmatpush3.bf16.msra.mxu1 %v9468_v13  ;;  %7407 = vmatprep.mubr.msk.bf16.mxu1 %vm8714_vm3, %v11905_v28 }
 0x2cb   :  { %7443 = vmatprep.subr.bf16.mxu1 %v8322_v26 }
 0x2d1   :  { %7408 = vmatmul.mubr.msk.bf16.gmra.mrb[108].mxu1 %vm1184_vm4, %v9369_v56 }
 0x2d2   :  { %7411 = vmatprep.mubr.msk.bf16.mxu1 %vm8714_vm3, %v11905_v28 }
 0x2d9   :  { %7412 = vmatmul.mubr.msk.bf16.gmra.mrb[112].mxu1 %vm1184_vm4, %v9381_v63 }
 0x2da   :  { %7431 = vmatprep.mubr.msk.bf16.mxu1 %vm8714_vm3, %v11905_v28 }
 0x2e1   :  { %7432 = vmatmul.mubr.msk.bf16.vlgmr.msra.gmra.mrb[116].mxu1 %vm1184_vm4, %v9349_v41  ;;  %v1228_v16 = vpop.f32.mrb[12].mxu0 }
 0x2e2   :  { %7435 = vmatprep.mubr.msk.bf16.mxu1 %vm8714_vm3, %v11905_v28  ;;  %v7251_v46 = vpop.f32.mrb[13].mxu0  ;;  %7444 = vmatpush3.bf16.msra.mxu1 %v8322_v26 }
 0x2e3   :  { %v1231_v32 = vpop.f32.mrb[14].mxu0  ;;  %8072 = vmatprep.subr.msk.bf16.mxu1 %vm315_vm0, %v8323_v57 }
 0x2e4   :  { %v1992_v58 = vpack.c.bf16 %v1231_v32, %v1228_v16  ;;  %v7252_v11 = vpop.f32.mrb[15].mxu0 }
 0x2e6   :  { %7446 = vmatpush3.bf16.msra.mxu1 %v2062_v35 }
 0x2e7   :  { %7475 = vmatprep.subr.bf16.mxu1 %v8324_v40 }
 0x2e9   :  { %7436 = vmatmul.mubr.msk.bf16.gmra.mrb[120].mxu1 %vm1184_vm4, %v9369_v56  ;;  %v9627_v59 = vpop.f32.mrb[16].mxu0 }
 0x2ea   :  { %7439 = vmatprep.mubr.msk.bf16.mxu1 %vm8714_vm3, %v11905_v28  ;;  %v7255_v41 = vpop.f32.mrb[17].mxu0 }
 0x2eb   :  { %v9631_v50 = vpop.f32.mrb[18].mxu0 }
 0x2ec   :  { %v7256_v55 = vpop.f32.mrb[19].mxu0 }
 0x2f1   :  { %7440 = vmatmul.mubr.msk.bf16.gmra.mrb[124].mxu1 %vm1184_vm4, %v9381_v63  ;;  %v9637_v20 = vpop.f32.mrb[20].mxu0 }
 0x2f2   :  { %7447 = vmatprep.mubr.msk.bf16.mxu1 %vm272_vm2, %v1992_v58  ;;  %v7259_v56 = vpop.f32.mrb[21].mxu0 }
 0x2f3   :  { %v9640_v61 = vpop.f32.mrb[22].mxu0 }
 0x2f4   :  { %v7260_v27 = vpop.f32.mrb[23].mxu0 }
 0x2f9   :  { %v1342_v18 = vpop.f32.mrb[24].mxu0 }
 0x2fa   :  { %v7279_v23 = vpop.f32.mrb[25].mxu0 }
 0x2fb   :  { %v1345_v60 = vpop.f32.mrb[26].mxu0 }
 0x2fc   :  { %v1994_v43 = vpack.c.bf16 %v1345_v60, %v1342_v18  ;;  %v7280_v30 = vpop.f32.mrb[27].mxu0 }
 0x301   :  { %v9644_v22 = vpop.f32.mrb[28].mxu0 }
 0x302   :  { %v7283_v31 = vpop.f32.mrb[29].mxu0 }
 0x303   :  { %v9646_v63 = vpop.f32.mrb[30].mxu0 }
 0x304   :  { %v7284_v7 = vpop.f32.mrb[31].mxu0 }
 0x309   :  { %v9653_v15 = vpop.f32.mrb[32].mxu0 }
 0x30a   :  { %v7287_v1 = vpop.f32.mrb[33].mxu0 }
 0x30b   :  { %v9655_v52 = vpop.f32.mrb[34].mxu0 }
 0x30c   :  { %v7288_v34 = vpop.f32.mrb[35].mxu0 }
 0x311   :  { %v1456_v48 = vpop.f32.mrb[36].mxu0 }
 0x312   :  { %v7307_v0 = vpop.f32.mrb[37].mxu0 }
 0x313   :  { %v1459_v29 = vpop.f32.mrb[38].mxu0 }
 0x314   :  { %v1996_v36 = vpack.c.bf16 %v1459_v29, %v1456_v48  ;;  %v7308_v2 = vpop.f32.mrb[39].mxu0 }
 0x319   :  { %v9659_v8 = vpop.f32.mrb[40].mxu0 }
 0x31a   :  { %v7311_v9 = vpop.f32.mrb[41].mxu0 }
 0x31b   :  { %v9661_v44 = vpop.f32.mrb[42].mxu0 }
 0x31c   :  { %v7312_v42 = vpop.f32.mrb[43].mxu0 }
 0x321   :  { %v9665_v12 = vpop.f32.mrb[44].mxu0 }
 0x322   :  { %v7315_v10 = vpop.f32.mrb[45].mxu0 }
 0x323   :  { %v9667_v6 = vpop.f32.mrb[46].mxu0 }
 0x324   :  { %v1285_v45 = vpop.f32.mrb[44].mxu1  ;;  %v7316_v49 = vpop.f32.mrb[47].mxu0 }
 0x325   :  { %v7265_v33 = vpop.f32.mrb[45].mxu1 }
 0x326   :  { %v1288_v24 = vpop.f32.mrb[46].mxu1 }
 0x327   :  { %v1993_v14 = vpack.c.bf16 %v1288_v24, %v1285_v45  ;;  %v7266_v38 = vpop.f32.mrb[47].mxu1 }
 0x329   :  { %7448 = vmatmul.mubr.msk.bf16.vlgmr.msra.gmra.mrb[16].mxu1 %vm272_vm2, %v1993_v14  ;;  %v9675_v5 = vpop.f32.mrb[48].mxu0 }
 0x32a   :  { %7451 = vmatprep.mubr.msk.bf16.mxu1 %vm272_vm2, %v1994_v43  ;;  %v7335_v51 = vpop.f32.mrb[49].mxu0  ;;  %7476 = vmatpush3.bf16.msra.mxu1 %v8324_v40  ;;  %v9707_v43 = vld [vmem:[%s11900_s28 + $0x24] sm:$0xff]  }
 0x32b   :  { %v9678_v47 = vpop.f32.mrb[50].mxu0  ;;  %8073 = vmatprep.subr.msk.bf16.mxu1 %vm315_vm0, %v8325_v39 }
 0x32c   :  { %v9682_v19 = vpop.f32.mrb[48].mxu1  ;;  %v1998_v53 = vpack.c.bf16 %v9678_v47, %v9675_v5  ;;  %v7336_v25 = vpop.f32.mrb[51].mxu0 }
 0x32d   :  { %v7269_v13 = vpop.f32.mrb[49].mxu1 }
 0x32e   :  { %v9686_v26 = vpop.f32.mrb[50].mxu1  ;;  %7478 = vmatpush3.bf16.msra.mxu1 %v2307_v37 }
 0x32f   :  { %v7270_v16 = vpop.f32.mrb[51].mxu1  ;;  %7507 = vmatprep.subr.bf16.mxu1 %v9707_v43 }
 0x331   :  { %v9690_v46 = vpop.f32.mrb[52].mxu0 }
 0x332   :  { %v7339_v32 = vpop.f32.mrb[53].mxu0 }
 0x333   :  { %v9692_v35 = vpop.f32.mrb[54].mxu0 }
 0x334   :  { %v9694_v58 = vpop.f32.mrb[52].mxu1  ;;  %v7340_v41 = vpop.f32.mrb[55].mxu0 }
 0x335   :  { %v7273_v55 = vpop.f32.mrb[53].mxu1 }
 0x336   :  { %v9698_v56 = vpop.f32.mrb[54].mxu1 }
 0x337   :  { %v7274_v18 = vpop.f32.mrb[55].mxu1 }
 0x339   :  { %v9702_v23 = vpop.f32.mrb[56].mxu0 }
 0x33a   :  { %v7343_v60 = vpop.f32.mrb[57].mxu0 }
 0x33b   :  { %v9709_v30 = vpop.f32.mrb[58].mxu0 }
 0x33c   :  { %v1399_v31 = vpop.f32.mrb[56].mxu1  ;;  %v7344_v40 = vpop.f32.mrb[59].mxu0 }
 0x33d   :  { %v7293_v1 = vpop.f32.mrb[57].mxu1 }
 0x33e   :  { %v1402_v34 = vpop.f32.mrb[58].mxu1 }
 0x33f   :  { %v1995_v48 = vpack.c.bf16 %v1402_v34, %v1399_v31  ;;  %v7294_v0 = vpop.f32.mrb[59].mxu1 }
 0x341   :  { %7452 = vmatmul.mubr.msk.bf16.gmra.mrb[20].mxu1 %vm272_vm2, %v1995_v48  ;;  %v9715_v29 = vpop.f32.mrb[60].mxu0 }
 0x342   :  { %7455 = vmatprep.mubr.msk.bf16.mxu1 %vm272_vm2, %v1996_v36  ;;  %v7363_v2 = vpop.f32.mrb[61].mxu0 }
 0x343   :  { %v9718_v9 = vpop.f32.mrb[62].mxu0 }
 0x344   :  { %v9720_v42 = vpop.f32.mrb[60].mxu1  ;;  %v2000_v10 = vpack.c.bf16 %v9718_v9, %v9715_v29  ;;  %v7364_v45 = vpop.f32.mrb[63].mxu0 }
 0x345   :  { %v7297_v49 = vpop.f32.mrb[61].mxu1 }
 0x346   :  { %v9724_v33 = vpop.f32.mrb[62].mxu1 }
 0x347   :  { %v7298_v14 = vpop.f32.mrb[63].mxu1 }
 0x349   :  { %v9728_v38 = vpop.f32.mrb[64].mxu0 }
 0x34a   :  { %v7367_v39 = vpop.f32.mrb[65].mxu0 }
 0x34b   :  { %v9730_v36 = vpop.f32.mrb[66].mxu0 }
 0x34c   :  { %v9732_v51 = vpop.f32.mrb[64].mxu1  ;;  %v7368_v25 = vpop.f32.mrb[67].mxu0 }
 0x34d   :  { %v7301_v13 = vpop.f32.mrb[65].mxu1 }
 0x34e   :  { %v9736_v16 = vpop.f32.mrb[66].mxu1 }
 0x34f   :  { %v7302_v41 = vpop.f32.mrb[67].mxu1 }
 0x351   :  { %v9740_v55 = vpop.f32.mrb[68].mxu0 }
 0x352   :  { %v7371_v18 = vpop.f32.mrb[69].mxu0 }
 0x353   :  { %v9742_v60 = vpop.f32.mrb[70].mxu0 }
 0x354   :  { %v1513_v31 = vpop.f32.mrb[68].mxu1  ;;  %v7372_v1 = vpop.f32.mrb[71].mxu0 }
 0x355   :  { %v7321_v34 = vpop.f32.mrb[69].mxu1 }
 0x356   :  { %v1516_v48 = vpop.f32.mrb[70].mxu1 }
 0x357   :  { %v1997_v0 = vpack.c.bf16 %v1516_v48, %v1513_v31  ;;  %v7322_v29 = vpop.f32.mrb[71].mxu1 }
 0x359   :  { %7456 = vmatmul.mubr.msk.bf16.gmra.mrb[24].mxu1 %vm272_vm2, %v1997_v0  ;;  %v1798_v2 = vpop.f32.mrb[72].mxu0 }
 0x35a   :  { %7459 = vmatprep.mubr.msk.bf16.mxu1 %vm272_vm2, %v1998_v53  ;;  %v7391_v9 = vpop.f32.mrb[73].mxu0 }
 0x35b   :  { %v1801_v45 = vpop.f32.mrb[74].mxu0 }
 0x35c   :  { %v9751_v49 = vpop.f32.mrb[72].mxu1  ;;  %v2002_v14 = vpack.c.bf16 %v1801_v45, %v1798_v2  ;;  %v7392_v39 = vpop.f32.mrb[75].mxu0 }
 0x35d   :  { %v7325_v25 = vpop.f32.mrb[73].mxu1 }
 0x35e   :  { %v9753_v13 = vpop.f32.mrb[74].mxu1 }
 0x35f   :  { %v7326_v18 = vpop.f32.mrb[75].mxu1 }
 0x361   :  { %v9757_v31 = vpop.f32.mrb[76].mxu0 }
 0x362   :  { %v7395_v1 = vpop.f32.mrb[77].mxu0 }
 0x363   :  { %v9759_v34 = vpop.f32.mrb[78].mxu0 }
 0x364   :  { %v9761_v5 = vpop.f32.mrb[76].mxu1  ;;  %v7396_v53 = vpop.f32.mrb[79].mxu0 }
 0x365   :  { %v7329_v48 = vpop.f32.mrb[77].mxu1 }
 0x366   :  { %v9765_v0 = vpop.f32.mrb[78].mxu1 }
 0x367   :  { %v7330_v2 = vpop.f32.mrb[79].mxu1 }
 0x369   :  { %v9769_v9 = vpop.f32.mrb[80].mxu0 }
 0x36a   :  { %11909 = vst [vmem:[#allocation2_spill] sm:$0xff] %v9769_v9  ;;  %v7399_v45 = vpop.f32.mrb[81].mxu0 }
 0x36b   :  { %v9771_v39 = vpop.f32.mrb[82].mxu0 }
 0x36c   :  { %11910 = vst [vmem:[#allocation4_spill] sm:$0xff] %v9771_v39  ;;  %v1627_v25 = vpop.f32.mrb[80].mxu1  ;;  %v7400_v1 = vpop.f32.mrb[83].mxu0 }
 0x36d   :  { %v7349_v40 = vpop.f32.mrb[81].mxu1 }
 0x36e   :  { %v1630_v7 = vpop.f32.mrb[82].mxu1 }
 0x36f   :  { %v1999_v53 = vpack.c.bf16 %v1630_v7, %v1627_v25  ;;  %v7350_v48 = vpop.f32.mrb[83].mxu1 }
 0x371   :  { %7460 = vmatmul.mubr.msk.bf16.gmra.mrb[28].mxu1 %vm272_vm2, %v1999_v53  ;;  %v1912_v17 = vpop.f32.mrb[84].mxu0 }
 0x372   :  { %7463 = vmatprep.mubr.msk.bf16.mxu1 %vm272_vm2, %v2000_v10  ;;  %v7419_v2 = vpop.f32.mrb[85].mxu0 }
 0x373   :  { %v1915_v29 = vpop.f32.mrb[86].mxu0 }
 0x374   :  { %v9777_v32 = vpop.f32.mrb[84].mxu1  ;;  %v2004_v45 = vpack.c.bf16 %v1915_v29, %v1912_v17  ;;  %v7420_v4 = vpop.f32.mrb[87].mxu0 }
 0x375   :  { %v7353_v27 = vpop.f32.mrb[85].mxu1 }
 0x376   :  { %v9779_v21 = vpop.f32.mrb[86].mxu1 }
 0x377   :  { %v7354_v1 = vpop.f32.mrb[87].mxu1 }
 0x379   :  { %v9783_v7 = vpop.f32.mrb[88].mxu0 }
 0x37a   :  { %v7423_v25 = vpop.f32.mrb[89].mxu0 }
 0x37b   :  { %v9785_v53 = vpop.f32.mrb[90].mxu0 }
 0x37c   :  { %v9787_v48 = vpop.f32.mrb[88].mxu1  ;;  %v7424_v2 = vpop.f32.mrb[91].mxu0 }
 0x37d   :  { %v7357_v17 = vpop.f32.mrb[89].mxu1 }
 0x37e   :  { %v9791_v4 = vpop.f32.mrb[90].mxu1 }
 0x37f   :  { %v7358_v29 = vpop.f32.mrb[91].mxu1 }
 0x384   :  { %v1741_v18 = vpop.f32.mrb[92].mxu1 }
 0x385   :  { %v7377_v1 = vpop.f32.mrb[93].mxu1 }
 0x386   :  { %v1744_v47 = vpop.f32.mrb[94].mxu1 }
 0x387   :  { %v2001_v37 = vpack.c.bf16 %v1744_v47, %v1741_v18  ;;  %v7378_v25 = vpop.f32.mrb[95].mxu1 }
 0x389   :  { %7464 = vmatmul.mubr.msk.bf16.gmra.mrb[32].mxu1 %vm272_vm2, %v2001_v37 }
 0x38a   :  { %7467 = vmatprep.mubr.msk.bf16.mxu1 %vm272_vm2, %v2002_v14 }
 0x38c   :  { %v9797_v40 = vpop.f32.mrb[96].mxu1 }
 0x38d   :  { %v7381_v10 = vpop.f32.mrb[97].mxu1 }
 0x38e   :  { %v1752_v2 = vpop.f32.mrb[98].mxu1  ;;  %v9807_v10 = vpop.f32.mrb[92].mxu0 }
 0x38f   :  { %v2246_v17 = vpack.c.bf16 %v1752_v2, %v9797_v40  ;;  %v7382_v11 = vpop.f32.mrb[99].mxu1 }
 0x390   :  { %v7427_v11 = vpop.f32.mrb[93].mxu0 }
 0x391   :  { %v1931_v40 = vpop.f32.mrb[94].mxu0 }
 0x392   :  { %v2494_v2 = vpack.c.bf16 %v1931_v40, %v9807_v10  ;;  %v7428_v24 = vpop.f32.mrb[95].mxu0  ;;  %v11912_v10 = vpack.c.bf16 %v9631_v50, %v9627_v59  ;;  %v11914_v59 = vpack.c.bf16 %v9646_v63, %v9644_v22  ;;  %v11916_v22 = vpack.c.bf16 %v9661_v44, %v9659_v8 }
 0x393   :  { %v11917_v63 = vpack.c.bf16 %v9753_v13, %v9751_v49  ;;  %v11920_v8 = vpack.c.bf16 %v9730_v36, %v9728_v38  ;;  %v11921_v44 = vpack.c.bf16 %v9759_v34, %v9757_v31  ;;  %v11935_v38 = vld [vmem:[#allocation2_spill] sm:$0xff]  ;;  %v8329_v36 = vld [vmem:[%s11864_s6 + $0x8] sm:$0xff]  }
 0x394   :  { %v9800_v41 = vpop.f32.mrb[100].mxu1 }
 0x395   :  { %11911 = vst [vmem:[#allocation3_spill] sm:$0xff] %v9800_v41  ;;  %v7385_v27 = vpop.f32.mrb[101].mxu1 }
 0x396   :  { %v9802_v29 = vpop.f32.mrb[102].mxu1 }
 0x397   :  { %v7386_v18 = vpop.f32.mrb[103].mxu1 }
 0x39c   :  { %v1855_v1 = vpop.f32.mrb[104].mxu1 }
 0x39d   :  { %v7405_v37 = vpop.f32.mrb[105].mxu1 }
 0x39e   :  { %v1858_v25 = vpop.f32.mrb[106].mxu1 }
 0x39f   :  { %v2003_v14 = vpack.c.bf16 %v1858_v25, %v1855_v1  ;;  %v7406_v62 = vpop.f32.mrb[107].mxu1 }
 0x3a1   :  { %7468 = vmatmul.mubr.msk.bf16.gmra.mrb[36].mxu1 %vm272_vm2, %v2003_v14 }
 0x3a2   :  { %7471 = vmatprep.mubr.msk.bf16.mxu1 %vm272_vm2, %v2004_v45 }
 0x3a4   :  { %v1863_v27 = vpop.f32.mrb[108].mxu1 }
 0x3a5   :  { %v7409_v3 = vpop.f32.mrb[109].mxu1 }
 0x3a6   :  { %v1866_v47 = vpop.f32.mrb[110].mxu1 }
 0x3a7   :  { %v2248_v18 = vpack.c.bf16 %v1866_v47, %v1863_v27  ;;  %v7410_v57 = vpop.f32.mrb[111].mxu1 }
 0x3ac   :  { %v1871_v37 = vpop.f32.mrb[112].mxu1 }
 0x3ad   :  { %v7413_v54 = vpop.f32.mrb[113].mxu1 }
 0x3ae   :  { %v1874_v1 = vpop.f32.mrb[114].mxu1  ;;  %v8327_v54 = vld [vmem:[%s11900_s28 + $0x2c] ss:$0 sps:$4 sm:$0x11]  }
 0x3af   :  { %v2493_v62 = vpack.c.bf16 %v1874_v1, %v1871_v37  ;;  %v7414_v25 = vpop.f32.mrb[115].mxu1  ;;  %v2552_v50 = vsel %vm315_vm0, %v8327_v54, 0 }
 0x3b4   :  { %v1969_v14 = vpop.f32.mrb[116].mxu1 }
 0x3b5   :  { %v7433_v9 = vpop.f32.mrb[117].mxu1 }
 0x3b6   :  { %v1972_v39 = vpop.f32.mrb[118].mxu1  ;;  %v11913_v9 = vpack.c.bf16 %v9686_v26, %v9682_v19  ;;  %v11915_v19 = vpack.c.bf16 %v9724_v33, %v9720_v42  ;;  %v11918_v26 = vpack.c.bf16 %v9692_v35, %v9690_v46  ;;  %v11922_v46 = vpack.c.bf16 %v9785_v53, %v9783_v7 }
 0x3b7   :  { %v2005_v41 = vpack.c.bf16 %v1972_v39, %v1969_v14  ;;  %v7434_v45 = vpop.f32.mrb[119].mxu1  ;;  %v11924_v35 = vpack.c.bf16 %v9698_v56, %v9694_v58  ;;  %v11925_v42 = vpack.c.bf16 %v9655_v52, %v9653_v15  ;;  %v11926_v33 = vpack.c.bf16 %v9736_v16, %v9732_v51  ;;  %v11934_v56 = vld [vmem:[#allocation4_spill] sm:$0xff]  ;;  %v9924_v51 = vld [vmem:[%s11865_s5] ss:$0 sm:$0xff]  ;;  %s8715_s5 = smov 18  }
 0x3b8   :  { %v11929_v15 = vpack.c.bf16 %v9709_v30, %v9702_v23  ;;  %v11930_v52 = vpack.c.bf16 %v9791_v4, %v9787_v48  ;;  %v11936_v23 = vpack.c.bf16 %v11934_v56, %v11935_v38  ;;  %v8328_v30 = vld [vmem:[%s11864_s6] sm:$0xff]  }
 0x3b9   :  { %7472 = vmatmul.mubr.msk.bf16.gmra.mrb[40].mxu1 %vm272_vm2, %v2005_v41  ;;  %7539 = vmatprep.subr.bf16.mxu0 %v8328_v30 }
 0x3ba   :  { %7479 = vmatprep.mubr.msk.bf16.mxu1 %vm272_vm2, %v11912_v10  ;;  %7540 = vmatpush3.bf16.msra.mxu0 %v8328_v30 }
 0x3bb   :  { %7541 = vmatprep.subr.bf16.mxu0 %v8329_v36 }
 0x3bc   :  { %v1977_v3 = vpop.f32.mrb[120].mxu1 }
 0x3bd   :  { %v7437_v24 = vpop.f32.mrb[121].mxu1 }
 0x3be   :  { %v1980_v57 = vpop.f32.mrb[122].mxu1  ;;  %7542 = vmatpush3.bf16.msra.mxu0 %v8329_v36 }
 0x3bf   :  { %v2250_v47 = vpack.c.bf16 %v1980_v57, %v1977_v3  ;;  %v7438_v11 = vpop.f32.mrb[123].mxu1 }
 0x3c1   :  { %7480 = vmatmul.mubr.msk.bf16.vlgmr.msra.gmra.mrb[16].mxu1 %vm272_vm2, %v11913_v9 }
 0x3c2   :  { %7508 = vmatpush3.bf16.msra.mxu1 %v9707_v43  ;;  %7483 = vmatprep.mubr.msk.bf16.mxu1 %vm272_vm2, %v11914_v59  ;;  %v11919_v43 = vpack.c.bf16 %v9779_v21, %v9777_v32  ;;  %v11923_v21 = vpack.c.bf16 %v9640_v61, %v9637_v20  ;;  %v11927_v20 = vpack.c.bf16 %v9667_v6, %v9665_v12  ;;  %v11932_v6 = vld [vmem:[#allocation3_spill] sm:$0xff] }
 0x3c3   :  { %8074 = vmatprep.subr.msk.bf16.mxu1 %vm315_vm0, %v8327_v54  ;;  %v11928_v61 = vpack.c.bf16 %v9765_v0, %v9761_v5  ;;  %v11931_v12 = vpack.c.bf16 %v9742_v60, %v9740_v55  ;;  %v11933_v58 = vpack.c.bf16 %v9802_v29, %v11932_v6  ;;  %v8330_v60 = vld [vmem:[%s11864_s6 + $0x10] ss:$0 sps:$4 sm:$0x33]  }
 0x3c4   :  { %v1985_v41 = vpop.f32.mrb[124].mxu1  ;;  %8075 = vmatprep.subr.msk.bf16.mxu0 %vm2951_vm5, %v8330_v60  ;;  %v2953_v5 = vsel %vm2951_vm5, %v8330_v60, 0 }
 0x3c5   :  { %v7441_v39 = vpop.f32.mrb[125].mxu1  ;;  %7544 = vmatpush3.bf16.msra.mxu0 %v2953_v5 }
 0x3c6   :  { %7510 = vmatpush3.bf16.msra.mxu1 %v2552_v50  ;;  %v1988_v40 = vpop.f32.mrb[126].mxu1 }
 0x3c7   :  { %v2495_v27 = vpack.c.bf16 %v1988_v40, %v1985_v41  ;;  %v7442_v37 = vpop.f32.mrb[127].mxu1  ;;  %7649 = vmatprep.subr.bf16.mxu1 %v11905_v28 }
 0x3c9   :  { %7484 = vmatmul.mubr.msk.bf16.gmra.mrb[20].mxu1 %vm272_vm2, %v11915_v19 }
 0x3ca   :  { %7487 = vmatprep.mubr.msk.bf16.mxu1 %vm272_vm2, %v11916_v22 }
 0x3d1   :  { %7488 = vmatmul.mubr.msk.bf16.gmra.mrb[24].mxu1 %vm272_vm2, %v11917_v63 }
 0x3d2   :  { %7491 = vmatprep.mubr.msk.bf16.mxu1 %vm272_vm2, %v11918_v26 }
 0x3d9   :  { %7492 = vmatmul.mubr.msk.bf16.gmra.mrb[28].mxu1 %vm272_vm2, %v11919_v43 }
 0x3da   :  { %7495 = vmatprep.mubr.msk.bf16.mxu1 %vm272_vm2, %v11920_v8 }
 0x3e1   :  { %7496 = vmatmul.mubr.msk.bf16.gmra.mrb[32].mxu1 %vm272_vm2, %v2246_v17 }
 0x3e2   :  { %7499 = vmatprep.mubr.msk.bf16.mxu1 %vm272_vm2, %v11921_v44 }
 0x3e9   :  { %7500 = vmatmul.mubr.msk.bf16.gmra.mrb[36].mxu1 %vm272_vm2, %v2248_v18 }
 0x3ea   :  { %7503 = vmatprep.mubr.msk.bf16.mxu1 %vm272_vm2, %v11922_v46 }
 0x3f1   :  { %7504 = vmatmul.mubr.msk.bf16.gmra.mrb[40].mxu1 %vm272_vm2, %v2250_v47 }
 0x3f2   :  { %7511 = vmatprep.mubr.msk.bf16.mxu1 %vm272_vm2, %v11923_v21 }
 0x3f9   :  { %7512 = vmatmul.mubr.msk.bf16.vlgmr.msra.gmra.mrb[16].mxu1 %vm272_vm2, %v11924_v35 }
 0x3fa   :  { %7515 = vmatprep.mubr.msk.bf16.mxu1 %vm272_vm2, %v11925_v42 }
 0x401   :  { %7516 = vmatmul.mubr.msk.bf16.gmra.mrb[20].mxu1 %vm272_vm2, %v11926_v33 }
 0x402   :  { %7519 = vmatprep.mubr.msk.bf16.mxu1 %vm272_vm2, %v11927_v20 }
 0x409   :  { %7520 = vmatmul.mubr.msk.bf16.gmra.mrb[24].mxu1 %vm272_vm2, %v11928_v61 }
 0x40a   :  { %7523 = vmatprep.mubr.msk.bf16.mxu1 %vm272_vm2, %v11929_v15 }
 0x411   :  { %7524 = vmatmul.mubr.msk.bf16.gmra.mrb[28].mxu1 %vm272_vm2, %v11930_v52 }
 0x412   :  { %7527 = vmatprep.mubr.msk.bf16.mxu1 %vm272_vm2, %v11931_v12 }
 0x419   :  { %7528 = vmatmul.mubr.msk.bf16.gmra.mrb[32].mxu1 %vm272_vm2, %v11933_v58 }
 0x41a   :  { %7531 = vmatprep.mubr.msk.bf16.mxu1 %vm272_vm2, %v11936_v23 }
 0x421   :  { %7532 = vmatmul.mubr.msk.bf16.gmra.mrb[36].mxu1 %vm272_vm2, %v2493_v62 }
 0x422   :  { %7535 = vmatprep.mubr.msk.bf16.mxu1 %vm272_vm2, %v2494_v2 }
 0x429   :  { %7536 = vmatmul.mubr.msk.bf16.gmra.mrb[40].mxu1 %vm272_vm2, %v2495_v27 }
 0x42a   :  { %7651 = vmatprep.mubr.msk.bf16.mxu1 %vm8714_vm3, %v11905_v28 }
 0x4cc   :  { %v7513_v16 = vpop.f32.mrb[16].mxu1 }
 0x4cd   :  { %v9927_v32 = vadd.f32 %v7513_v16, %v9924_v51  ;;  %v2588_v55 = vpop.f32.mrb[17].mxu1 }
 0x4ce   :  { %v9933_v49 = vadd.f32 %v9924_v51, %v2588_v55  ;;  %v7514_v13 = vpop.f32.mrb[18].mxu1 }
 0x4cf   :  { %v9936_v31 = vadd.f32 %v7514_v13, %v9924_v51  ;;  %v2591_v34 = vpop.f32.mrb[19].mxu1  ;;  %v2729_v7 = vmax.f32 %v9927_v32, 0.0 }
 0x4d0   :  { %v9941_v0 = vadd.f32 %v9924_v51, %v2591_v34 }
 0x4d1   :  { %v2730_v53 = vmax.f32 %v9936_v31, 0.0 }
 0x4d3   :  { %v8163_v48 = vpack.i.bf16 %v2730_v53, %v2729_v7 }
 0x4d4   :  { %v7517_v4 = vpop.f32.mrb[20].mxu1 }
 0x4d5   :  { %v9950_v17 = vadd.f32 %v7517_v4, %v9924_v51  ;;  %8164 = vrot.lane.b32.xlu0 %v8163_v48, %s8715_s5  ;;  %v2604_v29 = vpop.f32.mrb[21].mxu1 }
 0x4d6   :  { %v9954_v2 = vadd.f32 %v9924_v51, %v2604_v29  ;;  %v7518_v18 = vpop.f32.mrb[22].mxu1 }
 0x4d7   :  { %v9957_v1 = vadd.f32 %v7518_v18, %v9924_v51  ;;  %v2607_v62 = vpop.f32.mrb[23].mxu1  ;;  %v2733_v14 = vmax.f32 %v9950_v17, 0.0 }
 0x4d8   :  { %v9960_v25 = vadd.f32 %v9924_v51, %v2607_v62  ;;  %v2731_v10 = vmax.f32 %v9954_v2, 0.0 }
 0x4d9   :  { %v2734_v45 = vmax.f32 %v9957_v1, 0.0 }
 0x4da   :  { %v2732_v3 = vmax.f32 %v9960_v25, 0.0 }
 0x4db   :  { %v8173_v24 = vpack.i.bf16 %v2734_v45, %v2733_v14 }
 0x4dc   :  { %v8168_v57 = vpack.i.bf16 %v2732_v3, %v2731_v10  ;;  %v7521_v54 = vpop.f32.mrb[24].mxu1 }
 0x4dd   :  { %v9975_v47 = vadd.f32 %v7521_v54, %v9924_v51  ;;  %8174 = vrot.lane.b32.xlu0 %v8173_v24, %s8715_s5  ;;  %v2620_v11 = vpop.f32.mrb[25].mxu1 }
 0x4de   :  { %v9979_v9 = vadd.f32 %v9924_v51, %v2620_v11  ;;  %8169 = vrot.lane.b32.xlu1 %v8168_v57, %s8715_s5  ;;  %v7522_v59 = vpop.f32.mrb[26].mxu1 }
 0x4df   :  { %v9983_v50 = vadd.f32 %v7522_v59, %v9924_v51  ;;  %v2623_v41 = vpop.f32.mrb[27].mxu1  ;;  %v2737_v40 = vmax.f32 %v9975_v47, 0.0 }
 0x4e0   :  { %v9986_v39 = vadd.f32 %v9924_v51, %v2623_v41  ;;  %v2735_v37 = vmax.f32 %v9979_v9, 0.0 }
 0x4e1   :  { %v2738_v27 = vmax.f32 %v9983_v50, 0.0 }
 0x4e2   :  { %v2736_v19 = vmax.f32 %v9986_v39, 0.0 }
 0x4e3   :  { %v8183_v22 = vpack.i.bf16 %v2738_v27, %v2737_v40 }
 0x4e4   :  { %v8178_v63 = vpack.i.bf16 %v2736_v19, %v2735_v37  ;;  %v7525_v26 = vpop.f32.mrb[28].mxu1 }
 0x4e5   :  { %v10001_v43 = vadd.f32 %v7525_v26, %v9924_v51  ;;  %8184 = vrot.lane.b32.xlu0 %v8183_v22, %s8715_s5  ;;  %v2636_v8 = vpop.f32.mrb[29].mxu1 }
 0x4e6   :  { %v7890_v44 = vadd.f32 %v9924_v51, %v2636_v8  ;;  %8179 = vrot.lane.b32.xlu1 %v8178_v63, %s8715_s5  ;;  %v7526_v46 = vpop.f32.mrb[30].mxu1 }
 0x4e7   :  { %v10007_v21 = vadd.f32 %v7526_v46, %v9924_v51  ;;  %v2639_v35 = vpop.f32.mrb[31].mxu1 }
 0x4e8   :  { %v7892_v42 = vadd.f32 %v9924_v51, %v2639_v35  ;;  %v2739_v33 = vmax.f32 %v7890_v44, 0.0 }
 0x4ea   :  { %v2740_v20 = vmax.f32 %v7892_v42, 0.0 }
 0x4ec   :  { %v8188_v61 = vpack.i.bf16 %v2740_v20, %v2739_v33  ;;  %v7529_v15 = vpop.f32.mrb[32].mxu1 }
 0x4ed   :  { %v10011_v52 = vadd.f32 %v7529_v15, %v9924_v51  ;;  %v2652_v12 = vpop.f32.mrb[33].mxu1 }
 0x4ee   :  { %v10014_v6 = vadd.f32 %v9924_v51, %v2652_v12  ;;  %8189 = vrot.lane.b32.xlu1 %v8188_v61, %s8715_s5  ;;  %v7530_v58 = vpop.f32.mrb[34].mxu1 }
 0x4ef   :  { %v10018_v56 = vadd.f32 %v7530_v58, %v9924_v51  ;;  %v2655_v38 = vpop.f32.mrb[35].mxu1  ;;  %v2745_v30 = vmax.f32 %v10011_v52, 0.0 }
 0x4f0   :  { %v10021_v23 = vadd.f32 %v9924_v51, %v2655_v38  ;;  %v2743_v16 = vmax.f32 %v10014_v6, 0.0 }
 0x4f1   :  { %v2746_v36 = vmax.f32 %v10018_v56, 0.0 }
 0x4f2   :  { %v2744_v55 = vmax.f32 %v10021_v23, 0.0 }
 0x4f3   :  { %v8198_v60 = vpack.i.bf16 %v2746_v36, %v2745_v30 }
 0x4f4   :  { %v8193_v13 = vpack.i.bf16 %v2744_v55, %v2743_v16  ;;  %v7533_v34 = vpop.f32.mrb[36].mxu1 }
 0x4f5   :  { %v10036_v5 = vadd.f32 %v7533_v34, %v9924_v51  ;;  %8199 = vrot.lane.b32.xlu1 %v8198_v60, %s8715_s5  ;;  %v2668_v48 = vpop.f32.mrb[37].mxu1 }
 0x4f6   :  { %v10040_v4 = vadd.f32 %v9924_v51, %v2668_v48  ;;  %8194 = vrot.lane.b32.xlu0 %v8193_v13, %s8715_s5  ;;  %v7534_v29 = vpop.f32.mrb[38].mxu1  ;;  %v2728_v13 = vmax.f32 %v9941_v0, 0.0 }
 0x4f7   :  { %v10044_v18 = vadd.f32 %v7534_v29, %v9924_v51  ;;  %v2671_v62 = vpop.f32.mrb[39].mxu1  ;;  %v2749_v57 = vmax.f32 %v10036_v5, 0.0 }
 0x4f8   :  { %v10047_v24 = vadd.f32 %v9924_v51, %v2671_v62  ;;  %v2747_v11 = vmax.f32 %v10040_v4, 0.0 }
 0x4f9   :  { %v2750_v54 = vmax.f32 %v10044_v18, 0.0 }
 0x4fa   :  { %v2748_v59 = vmax.f32 %v10047_v24, 0.0 }
 0x4fb   :  { %v8208_v41 = vpack.i.bf16 %v2750_v54, %v2749_v57 }
 0x4fc   :  { %v8203_v22 = vpack.i.bf16 %v2748_v59, %v2747_v11  ;;  %v7537_v63 = vpop.f32.mrb[40].mxu1 }
 0x4fd   :  { %v7901_v26 = vadd.f32 %v7537_v63, %v9924_v51  ;;  %8209 = vrot.lane.b32.xlu1 %v8208_v41, %s8715_s5  ;;  %v2684_v8 = vpop.f32.mrb[41].mxu1 }
 0x4fe   :  { %v10064_v44 = vadd.f32 %v9924_v51, %v2684_v8  ;;  %8204 = vrot.lane.b32.xlu0 %v8203_v22, %s8715_s5  ;;  %v7538_v46 = vpop.f32.mrb[42].mxu1 }
 0x4ff   :  { %v7903_v35 = vadd.f32 %v7538_v46, %v9924_v51  ;;  %v2687_v42 = vpop.f32.mrb[43].mxu1  ;;  %v2753_v20 = vmax.f32 %v7901_v26, 0.0 }
 0x500   :  { %v10069_v33 = vadd.f32 %v9924_v51, %v2687_v42  ;;  %v2751_v15 = vmax.f32 %v10064_v44, 0.0  ;;  %v2727_v51 = vmax.f32 %v9933_v49, 0.0  ;;  %v10162_v44 = vld [vmem:[%s11866_s7] ss:$0 sm:$0xff]  ;;  %s8717_s7 = smov 96  }
 0x501   :  { %v2754_v61 = vmax.f32 %v7903_v35, 0.0 }
 0x502   :  { %v2752_v12 = vmax.f32 %v10069_v33, 0.0 }
 0x503   :  { %v8218_v58 = vpack.i.bf16 %v2754_v61, %v2753_v20 }
 0x504   :  { %v8213_v38 = vpack.i.bf16 %v2752_v12, %v2751_v15 }
 0x505   :  { %8219 = vrot.lane.b32.xlu1 %v8218_v58, %s8715_s5 }
 0x506   :  { %8214 = vrot.lane.b32.xlu0 %v8213_v38, %s8715_s5 }
 0x547   :  { %v8165_v60 = vpop.permute.xlu0 %8164 }
 0x548   :  { %v8167_v34 = vunpack.i.h.bf16 %v8165_v60  ;;  %v8166_v48 = vunpack.i.l.bf16 %v8165_v60 }
 0x54a   :  { %v2851_v29 = vsel %vm272_vm2, %v2727_v51, %v8166_v48  ;;  %v2852_v62 = vsel %vm272_vm2, %v2728_v13, %v8167_v34 }
 0x54b   :  { %v2875_v41 = vpack.c.bf16 %v2852_v62, %v2851_v29  ;;  %v2741_v29 = vmax.f32 %v10001_v43, 0.0  ;;  %v2742_v62 = vmax.f32 %v10007_v21, 0.0 }
 0x54d   :  { %7545 = vmatprep.mubr.msk.bf16.mxu0 %vm2914_vm6, %v2875_v41 }
 0x54f   :  { %v8175_v22 = vpop.permute.xlu0 %8174 }
 0x550   :  { %v8177_v63 = vunpack.i.h.bf16 %v8175_v22  ;;  %v8176_v26 = vunpack.i.l.bf16 %v8175_v22  ;;  %v8170_v8 = vpop.permute.xlu1 %8169 }
 0x551   :  { %v8172_v46 = vunpack.i.h.bf16 %v8170_v8  ;;  %v8171_v35 = vunpack.i.l.bf16 %v8170_v8 }
 0x552   :  { %v2855_v49 = vsel %vm272_vm2, %v2731_v10, %v8176_v26  ;;  %v2856_v0 = vsel %vm272_vm2, %v2732_v3, %v8177_v63 }
 0x553   :  { %v2854_v42 = vsel %vm272_vm2, %v2730_v53, %v8172_v46  ;;  %v2853_v20 = vsel %vm272_vm2, %v2729_v7, %v8171_v35  ;;  %v2877_v58 = vpack.c.bf16 %v2856_v0, %v2855_v49 }
 0x554   :  { %v2876_v61 = vpack.c.bf16 %v2854_v42, %v2853_v20 }
 0x556   :  { %7546 = vmatmul.mubr.msk.bf16.vlgmr.msra.gmra.mrb[96].mxu0 %vm2914_vm6, %v2876_v61 }
 0x557   :  { %7549 = vmatprep.mubr.msk.bf16.mxu0 %vm2914_vm6, %v2877_v58  ;;  %v8185_v2 = vpop.permute.xlu0 %8184 }
 0x558   :  { %v8187_v10 = vunpack.i.h.bf16 %v8185_v2  ;;  %v8186_v38 = vunpack.i.l.bf16 %v8185_v2  ;;  %v8180_v25 = vpop.permute.xlu1 %8179 }
 0x559   :  { %v8182_v60 = vunpack.i.h.bf16 %v8180_v25  ;;  %v8181_v3 = vunpack.i.l.bf16 %v8180_v25 }
 0x55a   :  { %v2859_v31 = vsel %vm272_vm2, %v2735_v37, %v8186_v38  ;;  %v2860_v32 = vsel %vm272_vm2, %v2736_v19, %v8187_v10 }
 0x55b   :  { %v2858_v7 = vsel %vm272_vm2, %v2734_v45, %v8182_v60  ;;  %v2857_v53 = vsel %vm272_vm2, %v2733_v14, %v8181_v3  ;;  %v2879_v13 = vpack.c.bf16 %v2860_v32, %v2859_v31 }
 0x55c   :  { %v2878_v51 = vpack.c.bf16 %v2858_v7, %v2857_v53 }
 0x55e   :  { %7550 = vmatmul.mubr.msk.bf16.gmra.mrb[100].mxu0 %vm2914_vm6, %v2878_v51 }
 0x55f   :  { %7553 = vmatprep.mubr.msk.bf16.mxu0 %vm2914_vm6, %v2879_v13 }
 0x560   :  { %v8190_v9 = vpop.permute.xlu1 %8189 }
 0x561   :  { %v8192_v37 = vunpack.i.h.bf16 %v8190_v9  ;;  %v8191_v34 = vunpack.i.l.bf16 %v8190_v9 }
 0x563   :  { %v2862_v39 = vsel %vm272_vm2, %v2738_v27, %v8192_v37  ;;  %v2861_v1 = vsel %vm272_vm2, %v2737_v40, %v8191_v34 }
 0x564   :  { %v2880_v17 = vpack.c.bf16 %v2862_v39, %v2861_v1 }
 0x566   :  { %7554 = vmatmul.mubr.msk.bf16.gmra.mrb[104].mxu0 %vm2914_vm6, %v2880_v17 }
 0x567   :  { %v8200_v14 = vpop.permute.xlu1 %8199 }
 0x568   :  { %v8202_v45 = vunpack.i.h.bf16 %v8200_v14  ;;  %v8201_v19 = vunpack.i.l.bf16 %v8200_v14  ;;  %v8195_v48 = vpop.permute.xlu0 %8194 }
 0x569   :  { %v8197_v41 = vunpack.i.h.bf16 %v8195_v48  ;;  %v8196_v22 = vunpack.i.l.bf16 %v8195_v48 }
 0x56a   :  { %v2865_v50 = vsel %vm272_vm2, %v2743_v16, %v8201_v19  ;;  %v2866_v47 = vsel %vm272_vm2, %v2744_v55, %v8202_v45 }
 0x56b   :  { %v2864_v40 = vsel %vm272_vm2, %v2742_v62, %v8197_v41  ;;  %v2863_v27 = vsel %vm272_vm2, %v2741_v29, %v8196_v22  ;;  %v2882_v26 = vpack.c.bf16 %v2866_v47, %v2865_v50 }
 0x56c   :  { %v2881_v63 = vpack.c.bf16 %v2864_v40, %v2863_v27 }
 0x56e   :  { %7557 = vmatprep.mubr.msk.bf16.mxu0 %vm2914_vm6, %v2881_v63 }
 0x56f   :  { %7558 = vmatmul.mubr.msk.bf16.gmra.mrb[108].mxu0 %vm2914_vm6, %v2882_v26  ;;  %v8210_v43 = vpop.permute.xlu1 %8209 }
 0x570   :  { %v8212_v21 = vunpack.i.h.bf16 %v8210_v43  ;;  %v8211_v8 = vunpack.i.l.bf16 %v8210_v43  ;;  %v8205_v6 = vpop.permute.xlu0 %8204 }
 0x571   :  { %v8207_v46 = vunpack.i.h.bf16 %v8205_v6  ;;  %v8206_v16 = vunpack.i.l.bf16 %v8205_v6 }
 0x572   :  { %v2869_v23 = vsel %vm272_vm2, %v2747_v11, %v8211_v8  ;;  %v2870_v55 = vsel %vm272_vm2, %v2748_v59, %v8212_v21 }
 0x573   :  { %v2868_v35 = vsel %vm272_vm2, %v2746_v36, %v8207_v46  ;;  %v2867_v49 = vsel %vm272_vm2, %v2745_v30, %v8206_v16  ;;  %v2884_v42 = vpack.c.bf16 %v2870_v55, %v2869_v23 }
 0x574   :  { %v2883_v0 = vpack.c.bf16 %v2868_v35, %v2867_v49 }
 0x576   :  { %7561 = vmatprep.mubr.msk.bf16.mxu0 %vm2914_vm6, %v2883_v0 }
 0x577   :  { %7562 = vmatmul.mubr.msk.bf16.gmra.mrb[112].mxu0 %vm2914_vm6, %v2884_v42  ;;  %v8220_v4 = vpop.permute.xlu1 %8219 }
 0x578   :  { %v8222_v11 = vunpack.i.h.bf16 %v8220_v4  ;;  %v8221_v20 = vunpack.i.l.bf16 %v8220_v4  ;;  %v8215_v24 = vpop.permute.xlu0 %8214 }
 0x579   :  { %v8217_v61 = vunpack.i.h.bf16 %v8215_v24  ;;  %v8216_v59 = vunpack.i.l.bf16 %v8215_v24 }
 0x57a   :  { %v2873_v56 = vsel %vm272_vm2, %v2751_v15, %v8221_v20  ;;  %v2874_v52 = vsel %vm272_vm2, %v2752_v12, %v8222_v11 }
 0x57b   :  { %v2872_v30 = vsel %vm272_vm2, %v2750_v54, %v8217_v61  ;;  %v2871_v36 = vsel %vm272_vm2, %v2749_v57, %v8216_v59  ;;  %v2886_v2 = vpack.c.bf16 %v2874_v52, %v2873_v56 }
 0x57c   :  { %v2885_v58 = vpack.c.bf16 %v2872_v30, %v2871_v36 }
 0x57e   :  { %7565 = vmatprep.mubr.msk.bf16.mxu0 %vm2914_vm6, %v2885_v58 }
 0x57f   :  { %7566 = vmatmul.mubr.msk.bf16.gmra.mrb[116].mxu0 %vm2914_vm6, %v2886_v2 }
 0x629   :  { %v7547_v33 = vpop.f32.mrb[96].mxu0 }
 0x62a   :  { %v10165_v18 = vadd.f32 %v7547_v33, %v10162_v44  ;;  %v2989_v54 = vpop.f32.mrb[97].mxu0 }
 0x62b   :  { %v7548_v15 = vpop.f32.mrb[98].mxu0  ;;  %v10174_v10 = vadd.f32 %v10162_v44, %v2989_v54 }
 0x62c   :  { %v6724_v5 = vmul.f32 -1.442695, %v10165_v18  ;;  %v10169_v57 = vadd.f32 %v7548_v15, %v10162_v44  ;;  %v2992_v12 = vpop.f32.mrb[99].mxu0  ;;  %3376 = vrot.lane.b32.xlu0 %v10165_v18, %s8716_s23 }
 0x62d   :  { %v10180_v25 = vadd.f32 %v10162_v44, %v2992_v12  ;;  %v6722_v60 = vmul.f32 -1.442695, %v10174_v10 }
 0x62e   :  { %8462 = vpow2.f32 %v6724_v5  ;;  %v6725_v38 = vmul.f32 -1.442695, %v10169_v57  ;;  %3378 = vrot.lane.b32.xlu1 %v10169_v57, %s8716_s23 }
 0x62f   :  { %v6723_v7 = vmul.f32 -1.442695, %v10180_v25 }
 0x630   :  { %8464 = vpow2.f32 %v6725_v38  ;;  %3372 = vrot.lane.b32.xlu0 %v10174_v10, %s8716_s23 }
 0x631   :  { %v7551_v3 = vpop.f32.mrb[100].mxu0  ;;  %8466 = vpow2.f32 %v6722_v60 }
 0x632   :  { %v10186_v31 = vadd.f32 %v7551_v3, %v10162_v44  ;;  %v3005_v32 = vpop.f32.mrb[101].mxu0  ;;  %3374 = vrot.lane.b32.xlu1 %v10180_v25, %s8716_s23  ;;  %8468 = vpow2.f32 %v6723_v7 }
 0x633   :  { %v7552_v53 = vpop.f32.mrb[102].mxu0  ;;  %v10197_v9 = vadd.f32 %v10162_v44, %v3005_v32 }
 0x634   :  { %v10192_v51 = vadd.f32 %v7552_v53, %v10162_v44  ;;  %v3008_v13 = vpop.f32.mrb[103].mxu0  ;;  %3384 = vrot.lane.b32.xlu0 %v10186_v31, %s8716_s23  ;;  %v6728_v39 = vmul.f32 -1.442695, %v10186_v31 }
 0x635   :  { %v10202_v34 = vadd.f32 %v10162_v44, %v3008_v13  ;;  %v6726_v63 = vmul.f32 -1.442695, %v10197_v9 }
 0x636   :  { %3386 = vrot.lane.b32.xlu1 %v10192_v51, %s8716_s23  ;;  %v6729_v48 = vmul.f32 -1.442695, %v10192_v51  ;;  %8470 = vpow2.f32 %v6728_v39 }
 0x637   :  { %v6727_v21 = vmul.f32 -1.442695, %v10202_v34 }
 0x638   :  { %v8463_v37 = vpop.eup %8462  ;;  %3380 = vrot.lane.b32.xlu0 %v10197_v9, %s8716_s23 }
 0x639   :  { %v7555_v1 = vpop.f32.mrb[104].mxu0  ;;  %v3158_v14 = vadd.f32 1.0, %v8463_v37 }
 0x63a   :  { %v8465_v17 = vpop.eup %8464  ;;  %v10208_v45 = vadd.f32 %v7555_v1, %v10162_v44  ;;  %v3021_v19 = vpop.f32.mrb[105].mxu0  ;;  %3382 = vrot.lane.b32.xlu1 %v10202_v34, %s8716_s23 }
 0x63b   :  { %v7556_v29 = vpop.f32.mrb[106].mxu0  ;;  %v3159_v62 = vadd.f32 1.0, %v8465_v17  ;;  %8472 = vrcp.f32 %v3158_v14  ;;  %v10219_v50 = vadd.f32 %v10162_v44, %v3021_v19  ;;  %v8467_v47 = vpop.eup %8466 }
 0x63c   :  { %v10214_v41 = vadd.f32 %v7556_v29, %v10162_v44  ;;  %v3024_v22 = vpop.f32.mrb[107].mxu0  ;;  %3392 = vrot.lane.b32.xlu0 %v10208_v45, %s8716_s23  ;;  %8474 = vpow2.f32 %v6729_v48  ;;  %v8469_v27 = vpop.eup %8468  ;;  %v3156_v26 = vadd.f32 1.0, %v8467_v47  ;;  %v6732_v23 = vmul.f32 -1.442695, %v10208_v45 }
 0x63d   :  { %8476 = vrcp.f32 %v3159_v62  ;;  %v10224_v40 = vadd.f32 %v10162_v44, %v3024_v22  ;;  %v3157_v46 = vadd.f32 1.0, %v8469_v27  ;;  %v6730_v30 = vmul.f32 -1.442695, %v10219_v50 }
 0x63e   :  { %3394 = vrot.lane.b32.xlu1 %v10214_v41, %s8716_s23  ;;  %8478 = vpow2.f32 %v6726_v63  ;;  %v6733_v0 = vmul.f32 -1.442695, %v10214_v41 }
 0x63f   :  { %8480 = vrcp.f32 %v3156_v26  ;;  %v6731_v33 = vmul.f32 -1.442695, %v10224_v40 }
 0x640   :  { %3388 = vrot.lane.b32.xlu0 %v10219_v50, %s8716_s23  ;;  %v8471_v49 = vpop.eup %8470  ;;  %8482 = vpow2.f32 %v6727_v21 }
 0x641   :  { %8484 = vrcp.f32 %v3157_v46  ;;  %v3162_v20 = vadd.f32 1.0, %v8471_v49 }
 0x642   :  { %v7559_v43 = vpop.f32.mrb[108].mxu0  ;;  %3390 = vrot.lane.b32.xlu1 %v10224_v40, %s8716_s23  ;;  %8486 = vpow2.f32 %v6732_v23 }
 0x643   :  { %v10233_v8 = vadd.f32 %v7559_v43, %v10162_v44  ;;  %v3037_v6 = vpop.f32.mrb[109].mxu0  ;;  %8488 = vpow2.f32 %v6733_v0 }
 0x644   :  { %v7560_v16 = vpop.f32.mrb[110].mxu0  ;;  %v10246_v61 = vadd.f32 %v10162_v44, %v3037_v6  ;;  %8490 = vrcp.f32 %v3162_v20 }
 0x645   :  { %v10237_v55 = vadd.f32 %v7560_v16, %v10162_v44  ;;  %v3040_v35 = vpop.f32.mrb[111].mxu0  ;;  %3400 = vrot.lane.b32.xlu0 %v10233_v8, %s8716_s23  ;;  %v8473_v42 = vpop.eup %8472  ;;  %v6736_v5 = vmul.f32 -1.442695, %v10233_v8 }
 0x646   :  { %v8475_v4 = vpop.eup %8474  ;;  %v10251_v36 = vadd.f32 %v10162_v44, %v3040_v35  ;;  %v6734_v1 = vmul.f32 -1.442695, %v10246_v61 }
 0x647   :  { %3402 = vrot.lane.b32.xlu1 %v10237_v55, %s8716_s23  ;;  %v8477_v11 = vpop.eup %8476  ;;  %v3163_v56 = vadd.f32 1.0, %v8475_v4  ;;  %v6737_v32 = vmul.f32 -1.442695, %v10237_v55 }
 0x648   :  { %v8479_v2 = vpop.eup %8478  ;;  %v6735_v48 = vmul.f32 -1.442695, %v10251_v36 }
 0x649   :  { %3256 = vrot.lane.b32.xlu0 %v8473_v42, %s8717_s7  ;;  %v8481_v54 = vpop.eup %8480  ;;  %8492 = vrcp.f32 %v3163_v56  ;;  %v3160_v38 = vadd.f32 1.0, %v8479_v2 }
 0x64a   :  { %v7563_v24 = vpop.f32.mrb[112].mxu0  ;;  %v8483_v15 = vpop.eup %8482  ;;  %8494 = vpow2.f32 %v6730_v30 }
 0x64b   :  { %v3053_v59 = vpop.f32.mrb[113].mxu0  ;;  %3258 = vrot.lane.b32.xlu1 %v8477_v11, %s8717_s7  ;;  %v8485_v12 = vpop.eup %8484  ;;  %8496 = vpow2.f32 %v6731_v33  ;;  %v10262_v7 = vadd.f32 %v7563_v24, %v10162_v44  ;;  %v3161_v13 = vadd.f32 1.0, %v8483_v15 }
 0x64c   :  { %v7564_v52 = vpop.f32.mrb[114].mxu0  ;;  %v8487_v3 = vpop.eup %8486  ;;  %8498 = vpow2.f32 %v6736_v5  ;;  %v10276_v47 = vadd.f32 %v10162_v44, %v3053_v59 }
 0x64d   :  { %v3056_v58 = vpop.f32.mrb[115].mxu0  ;;  %3396 = vrot.lane.b32.xlu0 %v10246_v61, %s8716_s23  ;;  %v8489_v39 = vpop.eup %8488  ;;  %v10267_v17 = vadd.f32 %v7564_v52, %v10162_v44  ;;  %8500 = vrcp.f32 %v3160_v38  ;;  %v3166_v19 = vadd.f32 1.0, %v8487_v3  ;;  %v6740_v22 = vmul.f32 -1.442695, %v10262_v7 }
 0x64e   :  { %8502 = vpow2.f32 %v6737_v32  ;;  %v8491_v29 = vpop.eup %8490  ;;  %v3167_v62 = vadd.f32 1.0, %v8489_v39  ;;  %v10281_v43 = vadd.f32 %v10162_v44, %v3056_v58  ;;  %v6738_v6 = vmul.f32 -1.442695, %v10276_v47 }
 0x64f   :  { %3398 = vrot.lane.b32.xlu1 %v10251_v36, %s8716_s23  ;;  %8504 = vrcp.f32 %v3161_v13  ;;  %v6741_v26 = vmul.f32 -1.442695, %v10267_v17 }
 0x650   :  { %8506 = vpow2.f32 %v6734_v1  ;;  %v6739_v35 = vmul.f32 -1.442695, %v10281_v43 }
 0x651   :  { %3252 = vrot.lane.b32.xlu0 %v8481_v54, %s8717_s7  ;;  %8508 = vrcp.f32 %v3166_v19 }
 0x652   :  { %v7567_v60 = vpop.f32.mrb[116].mxu0  ;;  %8510 = vpow2.f32 %v6735_v48 }
 0x653   :  { %3254 = vrot.lane.b32.xlu1 %v8485_v12, %s8717_s7  ;;  %v3069_v53 = vpop.f32.mrb[117].mxu0  ;;  %v8493_v27 = vpop.eup %8492  ;;  %8512 = vrcp.f32 %v3167_v62  ;;  %v10286_v46 = vadd.f32 %v7567_v60, %v10162_v44 }
 0x654   :  { %v7568_v37 = vpop.f32.mrb[118].mxu0  ;;  %v8495_v63 = vpop.eup %8494  ;;  %8514 = vpow2.f32 %v6740_v22  ;;  %v10298_v20 = vadd.f32 %v10162_v44, %v3069_v53 }
 0x655   :  { %3408 = vrot.lane.b32.xlu0 %v10262_v7, %s8716_s23  ;;  %v3072_v14 = vpop.f32.mrb[119].mxu0  ;;  %v8497_v21 = vpop.eup %8496  ;;  %v3164_v16 = vadd.f32 1.0, %v8495_v63  ;;  %8516 = vpow2.f32 %v6741_v26  ;;  %v10292_v49 = vadd.f32 %v7568_v37, %v10162_v44  ;;  %v6744_v11 = vmul.f32 -1.442695, %v10286_v46 }
 0x656   :  { %v8499_v23 = vpop.eup %8498  ;;  %v3165_v42 = vadd.f32 1.0, %v8497_v21  ;;  %8518 = vpow2.f32 %v6738_v6  ;;  %v10303_v30 = vadd.f32 %v10162_v44, %v3072_v14  ;;  %v6742_v54 = vmul.f32 -1.442695, %v10298_v20 }
 0x657   :  { %3410 = vrot.lane.b32.xlu1 %v10267_v17, %s8716_s23  ;;  %v8501_v0 = vpop.eup %8500  ;;  %8520 = vrcp.f32 %v3164_v16  ;;  %v3170_v59 = vadd.f32 1.0, %v8499_v23  ;;  %v6745_v52 = vmul.f32 -1.442695, %v10292_v49 }
 0x658   :  { %v8503_v4 = vpop.eup %8502  ;;  %8522 = vpow2.f32 %v6739_v35  ;;  %v6743_v38 = vmul.f32 -1.442695, %v10303_v30 }
 0x659   :  { %3264 = vrot.lane.b32.xlu0 %v8491_v29, %s8717_s7  ;;  %v8505_v24 = vpop.eup %8504  ;;  %8524 = vrcp.f32 %v3165_v42  ;;  %v3171_v2 = vadd.f32 1.0, %v8503_v4 }
 0x65a   :  { %v8507_v56 = vpop.eup %8506  ;;  %8526 = vpow2.f32 %v6744_v11 }
 0x65b   :  { %3266 = vrot.lane.b32.xlu1 %v8493_v27, %s8717_s7  ;;  %v8509_v58 = vpop.eup %8508  ;;  %8528 = vrcp.f32 %v3170_v59  ;;  %v3168_v5 = vadd.f32 1.0, %v8507_v56 }
 0x65c   :  { %v8511_v33 = vpop.eup %8510  ;;  %8530 = vpow2.f32 %v6745_v52 }
 0x65d   :  { %3404 = vrot.lane.b32.xlu0 %v10276_v47, %s8716_s23  ;;  %v8513_v15 = vpop.eup %8512  ;;  %8532 = vrcp.f32 %v3171_v2  ;;  %v3169_v44 = vadd.f32 1.0, %v8511_v33 }
 0x65e   :  { %v8515_v12 = vpop.eup %8514  ;;  %8534 = vpow2.f32 %v6742_v54 }
 0x65f   :  { %3406 = vrot.lane.b32.xlu1 %v10281_v43, %s8716_s23  ;;  %v8517_v60 = vpop.eup %8516  ;;  %8536 = vrcp.f32 %v3168_v5  ;;  %v3174_v3 = vadd.f32 1.0, %v8515_v12 }
 0x660   :  { %v8519_v32 = vpop.eup %8518  ;;  %8538 = vpow2.f32 %v6743_v38  ;;  %v3175_v13 = vadd.f32 1.0, %v8517_v60 }
 0x661   :  { %3260 = vrot.lane.b32.xlu0 %v8501_v0, %s8717_s7  ;;  %v8521_v53 = vpop.eup %8520  ;;  %8540 = vrcp.f32 %v3169_v44  ;;  %v3172_v1 = vadd.f32 1.0, %v8519_v32 }
 0x662   :  { %v8523_v37 = vpop.eup %8522  ;;  %8542 = vrcp.f32 %v3174_v3 }
 0x663   :  { %3262 = vrot.lane.b32.xlu1 %v8505_v24, %s8717_s7  ;;  %v8525_v39 = vpop.eup %8524  ;;  %8544 = vrcp.f32 %v3175_v13  ;;  %v3173_v48 = vadd.f32 1.0, %v8523_v37 }
 0x664   :  { %v8527_v14 = vpop.eup %8526  ;;  %8546 = vrcp.f32 %v3172_v1 }
 0x665   :  { %3272 = vrot.lane.b32.xlu0 %v8509_v58, %s8717_s7  ;;  %v8529_v19 = vpop.eup %8528  ;;  %v3178_v22 = vadd.f32 1.0, %v8527_v14  ;;  %8548 = vrcp.f32 %v3173_v48 }
 0x666   :  { %v8531_v29 = vpop.eup %8530 }
 0x667   :  { %3274 = vrot.lane.b32.xlu1 %v8513_v15, %s8717_s7  ;;  %v8533_v62 = vpop.eup %8532  ;;  %v3179_v26 = vadd.f32 1.0, %v8531_v29  ;;  %8550 = vrcp.f32 %v3178_v22 }
 0x668   :  { %v8535_v27 = vpop.eup %8534 }
 0x669   :  { %3412 = vrot.lane.b32.xlu0 %v10298_v20, %s8716_s23  ;;  %v8537_v63 = vpop.eup %8536  ;;  %v3176_v16 = vadd.f32 1.0, %v8535_v27  ;;  %8552 = vrcp.f32 %v3179_v26 }
 0x66a   :  { %v8539_v21 = vpop.eup %8538 }
 0x66b   :  { %3414 = vrot.lane.b32.xlu1 %v10303_v30, %s8716_s23  ;;  %v8541_v6 = vpop.eup %8540  ;;  %v3177_v35 = vadd.f32 1.0, %v8539_v21  ;;  %8554 = vrcp.f32 %v3176_v16 }
 0x66c   :  { %v8543_v23 = vpop.eup %8542 }
 0x66d   :  { %3268 = vrot.lane.b32.xlu0 %v8521_v53, %s8717_s7  ;;  %v8545_v0 = vpop.eup %8544  ;;  %8556 = vrcp.f32 %v3177_v35 }
 0x66e   :  { %v8547_v42 = vpop.eup %8546 }
 0x66f   :  { %3270 = vrot.lane.b32.xlu1 %v8525_v39, %s8717_s7  ;;  %v8549_v4 = vpop.eup %8548 }
 0x671   :  { %3280 = vrot.lane.b32.xlu0 %v8529_v19, %s8717_s7  ;;  %v8551_v11 = vpop.eup %8550 }
 0x673   :  { %3282 = vrot.lane.b32.xlu1 %v8533_v62, %s8717_s7  ;;  %v8553_v24 = vpop.eup %8552 }
 0x675   :  { %3276 = vrot.lane.b32.xlu0 %v8537_v63, %s8717_s7  ;;  %v8555_v59 = vpop.eup %8554 }
 0x677   :  { %3278 = vrot.lane.b32.xlu1 %v8541_v6, %s8717_s7  ;;  %v8557_v56 = vpop.eup %8556 }
 0x679   :  { %3288 = vrot.lane.b32.xlu0 %v8543_v23, %s8717_s7 }
 0x67b   :  { %3290 = vrot.lane.b32.xlu1 %v8545_v0, %s8717_s7 }
 0x67d   :  { %3284 = vrot.lane.b32.xlu0 %v8547_v42, %s8717_s7 }
 0x67f   :  { %3286 = vrot.lane.b32.xlu1 %v8549_v4, %s8717_s7 }
 0x681   :  { %3296 = vrot.lane.b32.xlu0 %v8551_v11, %s8717_s7 }
 0x683   :  { %3298 = vrot.lane.b32.xlu1 %v8553_v24, %s8717_s7 }
 0x685   :  { %3292 = vrot.lane.b32.xlu0 %v8555_v59, %s8717_s7 }
 0x687   :  { %3294 = vrot.lane.b32.xlu1 %v8557_v56, %s8717_s7 }
 0x689   :  { %3416 = vrot.lane.b32.xlu0 %v10286_v46, %s8716_s23 }
 0x68b   :  { %3418 = vrot.lane.b32.xlu1 %v10292_v49, %s8716_s23 }
 0x69e   :  { %v3377_v52 = vpop.permute.xlu0 %3376 }
 0x6a0   :  { %v3379_v58 = vpop.permute.xlu1 %3378 }
 0x6a2   :  { %v3373_v2 = vpop.permute.xlu0 %3372 }
 0x6a4   :  { %v3375_v33 = vpop.permute.xlu1 %3374 }
 0x6a6   :  { %v3385_v54 = vpop.permute.xlu0 %3384 }
 0x6a8   :  { %v3387_v15 = vpop.permute.xlu1 %3386 }
 0x6aa   :  { %v3381_v5 = vpop.permute.xlu0 %3380 }
 0x6ac   :  { %v3383_v12 = vpop.permute.xlu1 %3382 }
 0x6ae   :  { %v3393_v38 = vpop.permute.xlu0 %3392 }
 0x6b0   :  { %v10332_v44 = vpop.permute.xlu1 %3394 }
 0x6b2   :  { %v10334_v60 = vpop.permute.xlu0 %3388 }
 0x6b4   :  { %v10336_v3 = vpop.permute.xlu1 %3390 }
 0x6b7   :  { %v10338_v32 = vpop.permute.xlu0 %3400 }
 0x6b9   :  { %v10340_v53 = vpop.permute.xlu1 %3402 }
 0x6bb   :  { %v3257_v13 = vpop.permute.xlu0 %3256 }
 0x6bc   :  { %v3326_v63 = vmul.f32 %v3257_v13, %v10165_v18 }
 0x6bd   :  { %v3259_v37 = vpop.permute.xlu1 %3258 }
 0x6be   :  { %v3327_v26 = vmul.f32 %v3259_v37, %v10169_v57  ;;  %v3446_v35 = vadd.f32 %v3377_v52, %v3326_v63 }
 0x6bf   :  { %v10342_v39 = vpop.permute.xlu0 %3396 }
 0x6c0   :  { %v3447_v0 = vadd.f32 %v3379_v58, %v3327_v26  ;;  %v10362_v59 = vmax.f32 %v3446_v35, 0.0 }
 0x6c1   :  { %v10344_v1 = vpop.permute.xlu1 %3398 }
 0x6c3   :  { %v3253_v14 = vpop.permute.xlu0 %3252 }
 0x6c4   :  { %v3324_v22 = vmul.f32 %v3253_v14, %v10174_v10 }
 0x6c5   :  { %v3255_v19 = vpop.permute.xlu1 %3254 }
 0x6c6   :  { %v3444_v6 = vadd.f32 %v3373_v2, %v3324_v22  ;;  %v3325_v16 = vmul.f32 %v3255_v19, %v10180_v25  ;;  %v10365_v2 = vmax.f32 %v3447_v0, 0.0 }
 0x6c7   :  { %v10346_v48 = vpop.permute.xlu0 %3408 }
 0x6c8   :  { %v10358_v4 = vmax.f32 %v3444_v6, 0.0  ;;  %v3445_v11 = vadd.f32 %v3375_v33, %v3325_v16  ;;  %v3519_v16 = vsel %vm3492_vm7, %v10365_v2, 0.0 }
 0x6c9   :  { %v10348_v29 = vpop.permute.xlu1 %3410 }
 0x6ca   :  { %v3543_v58 = vmul.f32 %v10358_v4, %v10358_v4  ;;  %v10370_v13 = vmax.f32 %v3445_v11, 0.0 }
 0x6cb   :  { %v3265_v62 = vpop.permute.xlu0 %3264 }
 0x6cc   :  { %v3330_v10 = vmul.f32 %v3265_v62, %v10186_v31  ;;  %v3493_v62 = vsel %vm3492_vm7, %v10358_v4, 0.0  ;;  %v3518_v35 = vsel %vm3492_vm7, %v10370_v13, 0.0 }
 0x6cd   :  { %v3267_v27 = vpop.permute.xlu1 %3266 }
 0x6ce   :  { %v3331_v25 = vmul.f32 %v3267_v27, %v10192_v51  ;;  %v3450_v33 = vadd.f32 %v3385_v54, %v3330_v10  ;;  %v3546_v51 = vmul.f32 %v10365_v2, %v10365_v2  ;;  %v3567_v54 = vsel %vm3492_vm7, %v3543_v58, 0.0 }
 0x6cf   :  { %v10353_v21 = vpop.permute.xlu0 %3404  ;;  %v3494_v27 = vsel %vm3492_vm7, %v10362_v59, 0.0 }
 0x6d0   :  { %v3451_v14 = vadd.f32 %v3387_v15, %v3331_v25  ;;  %v10386_v22 = vmax.f32 %v3450_v33, 0.0  ;;  %v3495_v11 = vadd.f32 %v3494_v27, %v3493_v62 }
 0x6d1   :  { %v10356_v23 = vpop.permute.xlu1 %3406 }
 0x6d3   :  { %v3261_v42 = vpop.permute.xlu0 %3260 }
 0x6d4   :  { %v3328_v24 = vmul.f32 %v3261_v42, %v10197_v9  ;;  %v3593_v42 = vsel %vm3492_vm7, %v3546_v51, 0.0 }
 0x6d5   :  { %v3263_v18 = vpop.permute.xlu1 %3262 }
 0x6d6   :  { %v3448_v57 = vadd.f32 %v3381_v5, %v3328_v24  ;;  %v3329_v56 = vmul.f32 %v3263_v18, %v10202_v34  ;;  %v3545_v5 = vmul.f32 %v10362_v59, %v10362_v59  ;;  %v10403_v24 = vmax.f32 %v3451_v14, 0.0 }
 0x6d7   :  { %v3273_v52 = vpop.permute.xlu0 %3272 }
 0x6d8   :  { %v10372_v31 = vmax.f32 %v3448_v57, 0.0  ;;  %v3449_v9 = vadd.f32 %v3383_v12, %v3329_v56  ;;  %v3334_v34 = vmul.f32 %v3273_v52, %v10208_v45  ;;  %v3544_v12 = vmul.f32 %v10370_v13, %v10370_v13 }
 0x6d9   :  { %v3275_v37 = vpop.permute.xlu1 %3274  ;;  %v3568_v6 = vsel %vm3492_vm7, %v3545_v5, 0.0  ;;  %v3549_v57 = vmul.f32 %v10386_v22, %v10386_v22  ;;  %v3520_v52 = vadd.f32 %v3519_v16, %v3518_v35  ;;  %v3550_v62 = vmul.f32 %v10403_v24, %v10403_v24 }
 0x6da   :  { %v3547_v45 = vmul.f32 %v10372_v31, %v10372_v31  ;;  %v10392_v63 = vmax.f32 %v3449_v9, 0.0  ;;  %v3335_v15 = vmul.f32 %v3275_v37, %v10214_v41  ;;  %v3454_v0 = vadd.f32 %v3393_v38, %v3334_v34 }
 0x6db   :  { %v10379_v19 = vpop.permute.xlu0 %3412  ;;  %v3569_v10 = vadd.f32 %v3568_v6, %v3567_v54  ;;  %v3592_v41 = vsel %vm3492_vm7, %v3544_v12, 0.0  ;;  %v3496_v56 = vsel %vm3492_vm7, %v10372_v31, 0.0 }
 0x6dc   :  { %v3570_v38 = vsel %vm3492_vm7, %v3547_v45, 0.0  ;;  %v3521_v58 = vsel %vm3492_vm7, %v10392_v63, 0.0  ;;  %v3455_v33 = vadd.f32 %v10332_v44, %v3335_v15  ;;  %v3548_v37 = vmul.f32 %v10392_v63, %v10392_v63 }
 0x6dd   :  { %v10395_v26 = vpop.permute.xlu1 %3414  ;;  %v10417_v5 = vmax.f32 %v3454_v0, 0.0  ;;  %v3594_v14 = vadd.f32 %v3593_v42, %v3592_v41  ;;  %v3497_v54 = vadd.f32 %v3496_v56, %v3495_v11  ;;  %v3572_v44 = vsel %vm3492_vm7, %v3549_v57, 0.0 }
 0x6de   :  { %v3522_v6 = vadd.f32 %v3521_v58, %v3520_v52  ;;  %v10432_v16 = vmax.f32 %v3455_v33, 0.0  ;;  %v3595_v0 = vsel %vm3492_vm7, %v3548_v37, 0.0 }
 0x6df   :  { %v3269_v18 = vpop.permute.xlu0 %3268  ;;  %v3553_v42 = vmul.f32 %v10417_v5, %v10417_v5  ;;  %v3502_v56 = vsel %vm3492_vm7, %v10417_v5, 0.0  ;;  %v3596_v58 = vadd.f32 %v3595_v0, %v3594_v14 }
 0x6e0   :  { %v3332_v25 = vmul.f32 %v3269_v18, %v10219_v50  ;;  %v3498_v50 = vsel %vm3492_vm7, %v10386_v22, 0.0  ;;  %v3554_v33 = vmul.f32 %v10432_v16, %v10432_v16 }
 0x6e1   :  { %v3271_v9 = vpop.permute.xlu1 %3270  ;;  %v3576_v37 = vsel %vm3492_vm7, %v3553_v42, 0.0 }
 0x6e2   :  { %v3452_v34 = vadd.f32 %v10334_v60, %v3332_v25  ;;  %v3333_v51 = vmul.f32 %v3271_v9, %v10224_v40  ;;  %v3523_v40 = vsel %vm3492_vm7, %v10403_v24, 0.0  ;;  %v3571_v60 = vadd.f32 %v3570_v38, %v3569_v10 }
 0x6e3   :  { %v3281_v12 = vpop.permute.xlu0 %3280 }
 0x6e4   :  { %v10426_v27 = vmax.f32 %v3452_v34, 0.0  ;;  %v3453_v45 = vadd.f32 %v10336_v3, %v3333_v51  ;;  %v3338_v15 = vmul.f32 %v3281_v12, %v10233_v8  ;;  %v3597_v8 = vsel %vm3492_vm7, %v3550_v62, 0.0 }
 0x6e5   :  { %v3283_v35 = vpop.permute.xlu1 %3282  ;;  %v3499_v3 = vadd.f32 %v3498_v50, %v3497_v54  ;;  %v3573_v34 = vadd.f32 %v3572_v44, %v3571_v60  ;;  %v3527_v62 = vsel %vm3492_vm7, %v10432_v16, 0.0  ;;  %v3601_v60 = vsel %vm3492_vm7, %v3554_v33, 0.0 }
 0x6e6   :  { %v3551_v11 = vmul.f32 %v10426_v27, %v10426_v27  ;;  %v10439_v18 = vmax.f32 %v3453_v45, 0.0  ;;  %v3458_v41 = vadd.f32 %v10338_v32, %v3338_v15  ;;  %v3339_v10 = vmul.f32 %v3283_v35, %v10237_v55 }
 0x6e7   :  { %v3277_v57 = vpop.permute.xlu0 %3276  ;;  %v3500_v25 = vsel %vm3492_vm7, %v10426_v27, 0.0  ;;  %v3524_v32 = vadd.f32 %v3523_v40, %v3522_v6 }
 0x6e8   :  { %v3525_v52 = vsel %vm3492_vm7, %v10439_v18, 0.0  ;;  %v3552_v38 = vmul.f32 %v10439_v18, %v10439_v18  ;;  %v3459_v55 = vadd.f32 %v10340_v53, %v3339_v10  ;;  %v3574_v51 = vsel %vm3492_vm7, %v3551_v11, 0.0 }
 0x6e9   :  { %v3279_v9 = vpop.permute.xlu1 %3278  ;;  %v3336_v50 = vmul.f32 %v3277_v57, %v10246_v61  ;;  %v3501_v54 = vadd.f32 %v3500_v25, %v3499_v3  ;;  %v3526_v12 = vadd.f32 %v3525_v52, %v3524_v32  ;;  %v10460_v14 = vmax.f32 %v3458_v41, 0.0 }
 0x6ea   :  { %v3599_v15 = vsel %vm3492_vm7, %v3552_v38, 0.0  ;;  %v3337_v40 = vmul.f32 %v3279_v9, %v10251_v36  ;;  %v3575_v6 = vadd.f32 %v3574_v51, %v3573_v34  ;;  %v3598_v61 = vadd.f32 %v3597_v8, %v3596_v58 }
 0x6eb   :  { %v3289_v45 = vpop.permute.xlu0 %3288  ;;  %v3456_v53 = vadd.f32 %v10342_v39, %v3336_v50  ;;  %v10467_v35 = vmax.f32 %v3459_v55, 0.0  ;;  %v3506_v36 = vsel %vm3492_vm7, %v10460_v14, 0.0  ;;  %v3503_v10 = vadd.f32 %v3502_v56, %v3501_v54 }
 0x6ec   :  { %v3342_v44 = vmul.f32 %v3289_v45, %v10262_v7  ;;  %v3457_v11 = vadd.f32 %v10344_v1, %v3337_v40  ;;  %v3600_v39 = vadd.f32 %v3599_v15, %v3598_v61  ;;  %v3557_v7 = vmul.f32 %v10460_v14, %v10460_v14 }
 0x6ed   :  { %v3291_v0 = vpop.permute.xlu1 %3290  ;;  %v10469_v42 = vmax.f32 %v3456_v53, 0.0  ;;  %v3528_v1 = vadd.f32 %v3527_v62, %v3526_v12  ;;  %v3577_v51 = vadd.f32 %v3576_v37, %v3575_v6 }
 0x6ee   :  { %v3462_v3 = vadd.f32 %v10346_v48, %v3342_v44  ;;  %v3343_v41 = vmul.f32 %v3291_v0, %v10267_v17  ;;  %v10482_v52 = vmax.f32 %v3457_v11, 0.0  ;;  %v3558_v17 = vmul.f32 %v10467_v35, %v10467_v35 }
 0x6ef   :  { %v3285_v8 = vpop.permute.xlu0 %3284  ;;  %v3504_v57 = vsel %vm3492_vm7, %v10469_v42, 0.0  ;;  %v3555_v25 = vmul.f32 %v10469_v42, %v10469_v42  ;;  %v3580_v34 = vsel %vm3492_vm7, %v3557_v7, 0.0  ;;  %v3602_v40 = vadd.f32 %v3601_v60, %v3600_v39 }
 0x6f0   :  { %v10486_v48 = vmax.f32 %v3462_v3, 0.0  ;;  %v3463_v38 = vadd.f32 %v10348_v29, %v3343_v41  ;;  %v3340_v58 = vmul.f32 %v3285_v8, %v10276_v47  ;;  %v3505_v33 = vadd.f32 %v3504_v57, %v3503_v10 }
 0x6f1   :  { %v3287_v56 = vpop.permute.xlu1 %3286  ;;  %v3578_v32 = vsel %vm3492_vm7, %v3555_v25, 0.0  ;;  %v3529_v55 = vsel %vm3492_vm7, %v10482_v52, 0.0  ;;  %v3556_v9 = vmul.f32 %v10482_v52, %v10482_v52  ;;  %v3531_v47 = vsel %vm3492_vm7, %v10467_v35, 0.0 }
 0x6f2   :  { %v3530_v50 = vadd.f32 %v3529_v55, %v3528_v1  ;;  %v10496_v62 = vmax.f32 %v3463_v38, 0.0  ;;  %v3460_v12 = vadd.f32 %v10353_v21, %v3340_v58  ;;  %v3341_v45 = vmul.f32 %v3287_v56, %v10281_v43 }
 0x6f3   :  { %v3297_v54 = vpop.permute.xlu0 %3296  ;;  %v3603_v29 = vsel %vm3492_vm7, %v3556_v9, 0.0  ;;  %v3605_v15 = vsel %vm3492_vm7, %v3558_v17, 0.0  ;;  %v3579_v53 = vadd.f32 %v3578_v32, %v3577_v51  ;;  %v3510_v37 = vsel %vm3492_vm7, %v10486_v48, 0.0 }
 0x6f4   :  { %v3561_v6 = vmul.f32 %v10486_v48, %v10486_v48  ;;  %v3507_v61 = vadd.f32 %v3506_v36, %v3505_v33  ;;  %v10508_v0 = vmax.f32 %v3460_v12, 0.0  ;;  %v3461_v11 = vadd.f32 %v10356_v23, %v3341_v45 }
 0x6f5   :  { %v3299_v44 = vpop.permute.xlu1 %3298  ;;  %v3604_v3 = vadd.f32 %v3603_v29, %v3602_v40  ;;  %v3535_v43 = vsel %vm3492_vm7, %v10496_v62, 0.0  ;;  %v3562_v21 = vmul.f32 %v10496_v62, %v10496_v62  ;;  %v3532_v60 = vadd.f32 %v3531_v47, %v3530_v50 }
 0x6f6   :  { %v3508_v39 = vsel %vm3492_vm7, %v10508_v0, 0.0  ;;  %v3559_v7 = vmul.f32 %v10508_v0, %v10508_v0  ;;  %v10519_v36 = vmax.f32 %v3461_v11, 0.0  ;;  %v3346_v8 = vmul.f32 %v3297_v54, %v10286_v46 }
 0x6f7   :  { %v3293_v41 = vpop.permute.xlu0 %3292  ;;  %v3509_v23 = vadd.f32 %v3508_v39, %v3507_v61  ;;  %v3347_v57 = vmul.f32 %v3299_v44, %v10292_v49  ;;  %v3581_v1 = vadd.f32 %v3580_v34, %v3579_v53  ;;  %v3584_v46 = vsel %vm3492_vm7, %v3561_v6, 0.0 }
 0x6f8   :  { %v3344_v10 = vmul.f32 %v3293_v41, %v10298_v20  ;;  %v3582_v17 = vsel %vm3492_vm7, %v3559_v7, 0.0  ;;  %v3533_v38 = vsel %vm3492_vm7, %v10519_v36, 0.0  ;;  %v3560_v58 = vmul.f32 %v10519_v36, %v10519_v36 }
 0x6f9   :  { %v3295_v25 = vpop.permute.xlu1 %3294  ;;  %v3534_v33 = vadd.f32 %v3533_v38, %v3532_v60  ;;  %v3583_v55 = vadd.f32 %v3582_v17, %v3581_v1  ;;  %v3606_v51 = vadd.f32 %v3605_v15, %v3604_v3  ;;  %v3511_v47 = vadd.f32 %v3510_v37, %v3509_v23 }
 0x6fa   :  { %v3464_v56 = vadd.f32 %v10379_v19, %v3344_v10  ;;  %v3345_v20 = vmul.f32 %v3295_v25, %v10303_v30  ;;  %v3607_v49 = vsel %vm3492_vm7, %v3560_v58, 0.0  ;;  %v3609_v19 = vsel %vm3492_vm7, %v3562_v21, 0.0 }
 0x6fb   :  { %v3417_v32 = vpop.permute.xlu0 %3416  ;;  %v3536_v29 = vadd.f32 %v3535_v43, %v3534_v33  ;;  %v3585_v15 = vadd.f32 %v3584_v46, %v3583_v55  ;;  %v3608_v6 = vadd.f32 %v3607_v49, %v3606_v51  ;;  %v8718_v58 = vmov 0  }
 0x6fc   :  { %v10533_v9 = vmax.f32 %v3464_v56, 0.0  ;;  %v3466_v34 = vadd.f32 %v3417_v32, %v3346_v8  ;;  %v3465_v50 = vadd.f32 %v10395_v26, %v3345_v20  ;;  %8223 = vset.pattern.permute.xlu1 %v8718_v58  ;;  %8224 = vset.pattern.permute.xlu0 %v8718_v58 }
 0x6fd   :  { %v3419_v54 = vpop.permute.xlu1 %3418  ;;  %v3610_v23 = vadd.f32 %v3609_v19, %v3608_v6 }
 0x6fe   :  { %v3563_v30 = vmul.f32 %v10533_v9, %v10533_v9  ;;  %v10539_v12 = vmax.f32 %v3466_v34, 0.0  ;;  %v3467_v45 = vadd.f32 %v3419_v54, %v3347_v57  ;;  %v3512_v53 = vsel %vm3492_vm7, %v10533_v9, 0.0 }
 0x6ff   :  { %v10543_v40 = vmax.f32 %v3465_v50, 0.0  ;;  %v3513_v44 = vadd.f32 %v3512_v53, %v3511_v47 }
 0x700   :  { %v3565_v26 = vmul.f32 %v10539_v12, %v10539_v12  ;;  %v10547_v37 = vmax.f32 %v3467_v45, 0.0  ;;  %v3514_v61 = vsel %vm3492_vm7, %v10539_v12, 0.0  ;;  %v3586_v11 = vsel %vm3492_vm7, %v3563_v30, 0.0  ;;  %v3629_v30 = vld [vmem:[%s11867_s8] sm:$0xff] }
 0x701   :  { %v3564_v3 = vmul.f32 %v10543_v40, %v10543_v40  ;;  %v3515_v43 = vadd.f32 %v3514_v61, %v3513_v44  ;;  %v3537_v21 = vsel %vm3492_vm7, %v10543_v40, 0.0  ;;  %v3587_v60 = vadd.f32 %v3586_v11, %v3585_v15  ;;  %v3633_v44 = vld [vmem:[%s11868_s9] sm:$0xff]  ;;  %v3630_v15 = vld [vmem:[%s11867_s8 + $0x8] sm:$0xff] }
 0x702   :  { %v3566_v41 = vmul.f32 %v10547_v37, %v10547_v37  ;;  %v3538_v39 = vadd.f32 %v3537_v21, %v3536_v29  ;;  %v3539_v7 = vsel %vm3492_vm7, %v10547_v37, 0.0  ;;  %v3588_v10 = vsel %vm3492_vm7, %v3565_v26, 0.0 }
 0x703   :  { %3516 = vadd.xlane.f32.xlu0 %v3515_v43  ;;  %v3611_v8 = vsel %vm3492_vm7, %v3564_v3, 0.0  ;;  %v3589_v25 = vadd.f32 %v3588_v10, %v3587_v60  ;;  %v3634_v3 = vld [vmem:[%s11868_s9 + $0x8] sm:$0xff]  ;;  %v8331_v60 = vld [vmem:[%s11869_s10] sm:$0xff]  }
 0x704   :  { %v3540_v57 = vadd.f32 %v3539_v7, %v3538_v39  ;;  %v3612_v1 = vadd.f32 %v3611_v8, %v3610_v23  ;;  %v3613_v17 = vsel %vm3492_vm7, %v3566_v41, 0.0  ;;  %v8332_v41 = vld [vmem:[%s11869_s10 + $0x8] sm:$0xff]   ;;  %7569 = vmatprep.subr.bf16.mxu0 %v8331_v60  ;;  %v8333_v39 = vld [vmem:[%s11869_s10 + $0x10] sm:$0xff]   ;;  %v8334_v7 = vld [vmem:[%s11869_s10 + $0x18] sm:$0xff]   ;;  %s8719_s10 = smov 32  }
 0x705   :  { %7570 = vmatpush3.bf16.msra.mxu0 %v8331_v60 }
 0x706   :  { %3541 = vadd.xlane.f32.xlu1 %v3540_v57  ;;  %v3614_v38 = vadd.f32 %v3613_v17, %v3612_v1  ;;  %7571 = vmatprep.subr.bf16.mxu0 %v8332_v41 }
 0x707   :  { %3590 = vadd.xlane.f32.xlu0 %v3589_v25 }
 0x709   :  { %7572 = vmatpush3.bf16.msra.mxu0 %v8332_v41 }
 0x70a   :  { %7573 = vmatprep.subr.bf16.mxu0 %v8333_v39 }
 0x70b   :  { %3615 = vadd.xlane.f32.xlu0 %v3614_v38 }
 0x70d   :  { %7574 = vmatpush3.bf16.msra.mxu0 %v8333_v39 }
 0x70e   :  { %7575 = vmatprep.subr.bf16.mxu0 %v8334_v7 }
 0x711   :  { %7576 = vmatpush3.bf16.msra.mxu0 %v8334_v7 }
 0x790   :  { %v3517_v56 = vpop.xlane.xlu0 %3516 }
 0x791   :  { %v3617_v33 = vmul.f32 0.0026041667, %v3517_v56 }
 0x793   :  { %v3542_v20 = vpop.xlane.xlu1 %3541  ;;  %v3621_v55 = vmul.f32 %v3617_v33, %v3617_v33 }
 0x794   :  { %v3591_v32 = vpop.xlane.xlu0 %3590  ;;  %v3618_v46 = vmul.f32 0.0026041667, %v3542_v20 }
 0x795   :  { %v3619_v49 = vmul.f32 0.0026041667, %v3591_v32 }
 0x796   :  { %v3622_v50 = vmul.f32 %v3618_v46, %v3618_v46 }
 0x797   :  { %v3623_v34 = vsub.f32 %v3619_v49, %v3621_v55 }
 0x798   :  { %v3616_v51 = vpop.xlane.xlu0 %3615 }
 0x799   :  { %v3625_v54 = vadd.f32 1e-05, %v3623_v34  ;;  %v3620_v47 = vmul.f32 0.0026041667, %v3616_v51 }
 0x79b   :  { %8558 = vrsqrt.f32 %v3625_v54  ;;  %v3624_v29 = vsub.f32 %v3620_v47, %v3622_v50 }
 0x79d   :  { %v3626_v19 = vadd.f32 1e-05, %v3624_v29 }
 0x79f   :  { %8560 = vrsqrt.f32 %v3626_v19 }
 0x7a5   :  { %v8559_v45 = vpop.eup %8558 }
 0x7a6   :  { %v3631_v53 = vmul.f32 %v8559_v45, %v3629_v30 }
 0x7a8   :  { %3641 = vperm.xlu1 %8223, %v3631_v53   ;;  %v3635_v6 = vmul.f32 %v3631_v53, %v3617_v33 }
 0x7a9   :  { %v8561_v26 = vpop.eup %8560 }
 0x7aa   :  { %v3637_v61 = vsub.f32 %v3633_v44, %v3635_v6  ;;  %v3632_v11 = vmul.f32 %v8561_v26, %v3630_v15 }
 0x7ac   :  { %3675 = vperm.xlu1 %8223, %v3637_v61   ;;  %3646 = vperm.xlu0 %8224, %v3632_v11   ;;  %v3636_v43 = vmul.f32 %v3632_v11, %v3618_v46 }
 0x7ae   :  { %v3638_v21 = vsub.f32 %v3634_v3, %v3636_v43 }
 0x7b0   :  { %3680 = vperm.xlu1 %8223, %v3638_v21  }
 0x827   :  { %v10587_v10 = vpop.permute.xlu1 %3641 }
 0x828   :  { %v3665_v57 = vmul.f32 %v10587_v10, %v10508_v0  ;;  %v3651_v25 = vmul.f32 %v10587_v10, %v10362_v59  ;;  %v3653_v20 = vmul.f32 %v10587_v10, %v10372_v31  ;;  %v3655_v51 = vmul.f32 %v10587_v10, %v10386_v22 }
 0x829   :  { %v3657_v29 = vmul.f32 %v10587_v10, %v10426_v27  ;;  %v3659_v45 = vmul.f32 %v10587_v10, %v10417_v5  ;;  %v3663_v6 = vmul.f32 %v10587_v10, %v10460_v14  ;;  %v3671_v43 = vmul.f32 %v10587_v10, %v10539_v12 }
 0x82a   :  { %v3649_v41 = vmul.f32 %v10587_v10, %v10358_v4 }
 0x82b   :  { %v10589_v23 = vpop.permute.xlu1 %3675  ;;  %v10591_v8 = vpop.permute.xlu0 %3646 }
 0x82c   :  { %v3666_v1 = vmul.f32 %v10591_v8, %v10519_v36  ;;  %v3652_v17 = vmul.f32 %v10591_v8, %v10365_v2  ;;  %v10604_v58 = vadd.f32 %v10589_v23, %v3665_v57  ;;  %v10607_v56 = vadd.f32 %v10589_v23, %v3651_v25 }
 0x82d   :  { %v3670_v59 = vmul.f32 %v10591_v8, %v10543_v40  ;;  %v3654_v2 = vmul.f32 %v10591_v8, %v10392_v63  ;;  %v3669_v36 = vmul.f32 %v10587_v10, %v10533_v9  ;;  %v10639_v31 = vadd.f32 %v10589_v23, %v3653_v20 }
 0x82e   :  { %v3656_v9 = vmul.f32 %v10591_v8, %v10403_v24  ;;  %v10655_v54 = vadd.f32 %v10589_v23, %v3655_v51  ;;  %v3658_v24 = vmul.f32 %v10591_v8, %v10439_v18  ;;  %v10668_v19 = vadd.f32 %v10589_v23, %v3657_v29 }
 0x82f   :  { %v10601_v38 = vpop.permute.xlu1 %3680  ;;  %v10636_v63 = vadd.f32 %v10589_v23, %v3669_v36  ;;  %v3660_v30 = vmul.f32 %v10591_v8, %v10432_v16  ;;  %v3693_v27 = vadd.f32 %v10589_v23, %v3659_v45  ;;  %v3664_v44 = vmul.f32 %v10591_v8, %v10467_v35 }
 0x830   :  { %v10610_v33 = vadd.f32 %v10601_v38, %v3666_v1  ;;  %v10613_v0 = vadd.f32 %v10601_v38, %v3652_v17  ;;  %v10628_v46 = vadd.f32 %v10601_v38, %v3670_v59  ;;  %v10631_v40 = vadd.f32 %v10601_v38, %v3654_v2 }
 0x831   :  { %v10650_v50 = vadd.f32 %v10601_v38, %v3656_v9  ;;  %v10664_v22 = vadd.f32 %v10601_v38, %v3658_v24  ;;  %v3694_v53 = vadd.f32 %v10601_v38, %v3660_v30  ;;  %v10684_v16 = vadd.f32 %v10601_v38, %v3664_v44 }
 0x832   :  { %v8255_v32 = vpack.i.bf16 %v10610_v33, %v10604_v58  ;;  %v8225_v55 = vpack.i.bf16 %v10613_v0, %v10607_v56  ;;  %v8265_v49 = vpack.i.bf16 %v10628_v46, %v10636_v63  ;;  %v8230_v34 = vpack.i.bf16 %v10631_v40, %v10639_v31 }
 0x833   :  { %v8235_v47 = vpack.i.bf16 %v10650_v50, %v10655_v54  ;;  %v8240_v18 = vpack.i.bf16 %v10664_v22, %v10668_v19  ;;  %v8245_v15 = vpack.i.bf16 %v3694_v53, %v3693_v27  ;;  %v10688_v5 = vadd.f32 %v10589_v23, %v3663_v6 }
 0x834   :  { %8256 = vrot.lane.b32.xlu0 %v8255_v32, %s8719_s10  ;;  %8226 = vrot.lane.b32.xlu1 %v8225_v55, %s8719_s10  ;;  %v3668_v26 = vmul.f32 %v10591_v8, %v10496_v62  ;;  %v3667_v35 = vmul.f32 %v10587_v10, %v10486_v48  ;;  %v3672_v3 = vmul.f32 %v10591_v8, %v10547_v37 }
 0x835   :  { %v8250_v61 = vpack.i.bf16 %v10684_v16, %v10688_v5  ;;  %v3705_v48 = vadd.f32 %v10589_v23, %v3671_v43  ;;  %v3650_v37 = vmul.f32 %v10591_v8, %v10370_v13  ;;  %v3683_v7 = vadd.f32 %v10589_v23, %v3649_v41 }
 0x836   :  { %v10697_v11 = vadd.f32 %v10601_v38, %v3668_v26  ;;  %v10701_v14 = vadd.f32 %v10589_v23, %v3667_v35  ;;  %v3706_v21 = vadd.f32 %v10601_v38, %v3672_v3 }
 0x837   :  { %v3684_v25 = vadd.f32 %v10601_v38, %v3650_v37 }
 0x838   :  { %8266 = vrot.lane.b32.xlu0 %v8265_v49, %s8719_s10  ;;  %8231 = vrot.lane.b32.xlu1 %v8230_v34, %s8719_s10  ;;  %v8260_v62 = vpack.i.bf16 %v10697_v11, %v10701_v14  ;;  %v8270_v60 = vpack.i.bf16 %v3706_v21, %v3705_v48 }
 0x83c   :  { %8236 = vrot.lane.b32.xlu1 %v8235_v47, %s8719_s10 }
 0x840   :  { %8241 = vrot.lane.b32.xlu1 %v8240_v18, %s8719_s10 }
 0x844   :  { %8246 = vrot.lane.b32.xlu1 %v8245_v15, %s8719_s10 }
 0x848   :  { %8251 = vrot.lane.b32.xlu1 %v8250_v61, %s8719_s10 }
 0x84c   :  { %8261 = vrot.lane.b32.xlu1 %v8260_v62, %s8719_s10 }
 0x850   :  { %8271 = vrot.lane.b32.xlu1 %v8270_v60, %s8719_s10 }
 0x8a6   :  { %v8227_v39 = vpop.permute.xlu1 %8226 }
 0x8a7   :  { %v8229_v57 = vunpack.i.h.bf16 %v8227_v39  ;;  %v8228_v12 = vunpack.i.l.bf16 %v8227_v39 }
 0x8a9   :  { %v3787_v1 = vsel %vm3492_vm7, %v3683_v7, %v8228_v12  ;;  %v3788_v17 = vsel %vm3492_vm7, %v3684_v25, %v8229_v57 }
 0x8aa   :  { %v8232_v59 = vpop.permute.xlu1 %8231  ;;  %v3807_v2 = vpack.c.bf16 %v3788_v17, %v3787_v1 }
 0x8ab   :  { %v8234_v36 = vunpack.i.h.bf16 %v8232_v59  ;;  %v8233_v20 = vunpack.i.l.bf16 %v8232_v59  ;;  %v8335_v59 = vld [vmem:[%s11871_s12] sm:$0xff]  }
 0x8ac   :  { %7577 = vmatprep.mubr.msk.bf16.mxu0 %vm3856_vm8, %v3807_v2  ;;  %7597 = vmatprep.subr.bf16.mxu0 %v8335_v59 }
 0x8ad   :  { %v3790_v4 = vsel %vm3492_vm7, %v10613_v0, %v8234_v36  ;;  %v3789_v13 = vsel %vm3492_vm7, %v10607_v56, %v8233_v20  ;;  %v8257_v0 = vpop.permute.xlu0 %8256 }
 0x8ae   :  { %v3808_v32 = vpack.c.bf16 %v3790_v4, %v3789_v13  ;;  %v8237_v55 = vpop.permute.xlu1 %8236  ;;  %v8259_v44 = vunpack.i.h.bf16 %v8257_v0  ;;  %v8258_v15 = vunpack.i.l.bf16 %v8257_v0 }
 0x8af   :  { %v8239_v9 = vunpack.i.h.bf16 %v8237_v55  ;;  %v8238_v49 = vunpack.i.l.bf16 %v8237_v55 }
 0x8b0   :  { %7578 = vmatmul.mubr.msk.bf16.vlgmr.msra.gmra.mrb[120].mxu0 %vm3856_vm8, %v3808_v32 }
 0x8b1   :  { %v3792_v34 = vsel %vm3492_vm7, %v10631_v40, %v8239_v9  ;;  %v3791_v51 = vsel %vm3492_vm7, %v10639_v31, %v8238_v49  ;;  %7598 = vmatpush3.bf16.msra.mxu0 %v8335_v59 }
 0x8b2   :  { %v8242_v24 = vpop.permute.xlu1 %8241  ;;  %v3809_v47 = vpack.c.bf16 %v3792_v34, %v3791_v51 }
 0x8b3   :  { %v8244_v29 = vunpack.i.h.bf16 %v8242_v24  ;;  %v8243_v30 = vunpack.i.l.bf16 %v8242_v24 }
 0x8b4   :  { %7581 = vmatprep.mubr.msk.bf16.mxu0 %vm3856_vm8, %v3809_v47 }
 0x8b5   :  { %v3794_v56 = vsel %vm3492_vm7, %v10650_v50, %v8244_v29  ;;  %v3793_v18 = vsel %vm3492_vm7, %v10655_v54, %v8243_v30  ;;  %v3661_v50 = vmul.f32 %v10587_v10, %v10469_v42  ;;  %v3662_v54 = vmul.f32 %v10591_v8, %v10482_v52  ;;  %v8267_v42 = vpop.permute.xlu0 %8266 }
 0x8b6   :  { %v3810_v45 = vpack.c.bf16 %v3794_v56, %v3793_v18  ;;  %v8247_v53 = vpop.permute.xlu1 %8246  ;;  %v8269_v60 = vunpack.i.h.bf16 %v8267_v42  ;;  %v8268_v41 = vunpack.i.l.bf16 %v8267_v42 }
 0x8b7   :  { %v8249_v27 = vunpack.i.h.bf16 %v8247_v53  ;;  %v8248_v40 = vunpack.i.l.bf16 %v8247_v53  ;;  %v3695_v35 = vadd.f32 %v10589_v23, %v3661_v50  ;;  %v3696_v3 = vadd.f32 %v10601_v38, %v3662_v54 }
 0x8b8   :  { %7582 = vmatmul.mubr.msk.bf16.gmra.mrb[124].mxu0 %vm3856_vm8, %v3810_v45  ;;  %v3804_v37 = vsel %vm3492_vm7, %v10697_v11, %v8269_v60  ;;  %v3803_v39 = vsel %vm3492_vm7, %v10701_v14, %v8268_v41  ;;  %v10774_v11 = vld [vmem:[%s11870_s11] ss:$0 sm:$0xff] }
 0x8b9   :  { %v3796_v31 = vsel %vm3492_vm7, %v10664_v22, %v8249_v27  ;;  %v3795_v6 = vsel %vm3492_vm7, %v10668_v19, %v8248_v40  ;;  %v3799_v22 = vsel %vm3492_vm7, %v10688_v5, %v8258_v15  ;;  %v3800_v19 = vsel %vm3492_vm7, %v10684_v16, %v8259_v44 }
 0x8ba   :  { %v3811_v26 = vpack.c.bf16 %v3796_v31, %v3795_v6  ;;  %v8252_v61 = vpop.permute.xlu1 %8251  ;;  %v3813_v23 = vpack.c.bf16 %v3800_v19, %v3799_v22  ;;  %v3815_v12 = vpack.c.bf16 %v3804_v37, %v3803_v39 }
 0x8bb   :  { %v8254_v62 = vunpack.i.h.bf16 %v8252_v61  ;;  %v8253_v43 = vunpack.i.l.bf16 %v8252_v61  ;;  %v8336_v61 = vld [vmem:[%s11871_s12 + $0x8] ss:$0 sps:$4 sm:$0x11]  }
 0x8bc   :  { %7585 = vmatprep.mubr.msk.bf16.mxu0 %vm3856_vm8, %v3811_v26  ;;  %8076 = vmatprep.subr.msk.bf16.mxu0 %vm315_vm0, %v8336_v61  ;;  %v4400_v60 = vsel %vm315_vm0, %v8336_v61, 0 }
 0x8bd   :  { %v3798_v10 = vsel %vm3492_vm7, %v3696_v3, %v8254_v62  ;;  %v3797_v52 = vsel %vm3492_vm7, %v3695_v35, %v8253_v43  ;;  %7600 = vmatpush3.bf16.msra.mxu0 %v4400_v60 }
 0x8be   :  { %v3812_v8 = vpack.c.bf16 %v3798_v10, %v3797_v52  ;;  %v8262_v21 = vpop.permute.xlu1 %8261  ;;  %7621 = vmatprep.subr.bf16.mxu0 %v11905_v28 }
 0x8bf   :  { %v8264_v48 = vunpack.i.h.bf16 %v8262_v21  ;;  %v8263_v38 = vunpack.i.l.bf16 %v8262_v21 }
 0x8c0   :  { %7586 = vmatmul.mubr.msk.bf16.gmra.mrb[128].mxu0 %vm3856_vm8, %v3812_v8 }
 0x8c1   :  { %7589 = vmatprep.mubr.msk.bf16.mxu0 %vm3856_vm8, %v3813_v23  ;;  %v3802_v16 = vsel %vm3492_vm7, %v10610_v33, %v8264_v48  ;;  %v3801_v5 = vsel %vm3492_vm7, %v10604_v58, %v8263_v38 }
 0x8c2   :  { %v8272_v7 = vpop.permute.xlu1 %8271  ;;  %v3814_v57 = vpack.c.bf16 %v3802_v16, %v3801_v5 }
 0x8c3   :  { %v8274_v25 = vunpack.i.h.bf16 %v8272_v7  ;;  %v8273_v1 = vunpack.i.l.bf16 %v8272_v7 }
 0x8c5   :  { %v3806_v33 = vsel %vm3492_vm7, %v10628_v46, %v8274_v25  ;;  %v3805_v58 = vsel %vm3492_vm7, %v10636_v63, %v8273_v1 }
 0x8c6   :  { %v3816_v17 = vpack.c.bf16 %v3806_v33, %v3805_v58 }
 0x8c8   :  { %7590 = vmatmul.mubr.msk.bf16.gmra.mrb[132].mxu0 %vm3856_vm8, %v3814_v57 }
 0x8c9   :  { %7593 = vmatprep.mubr.msk.bf16.mxu0 %vm3856_vm8, %v3815_v12 }
 0x8d0   :  { %7594 = vmatmul.mubr.msk.bf16.gmra.mrb[136].mxu0 %vm3856_vm8, %v3816_v17 }
 0x983   :  { %v7579_v14 = vpop.f32.mrb[120].mxu0 }
 0x984   :  { %v10780_v2 = vadd.f32 %v7579_v14, %v10774_v11  ;;  %v3921_v46 = vpop.f32.mrb[121].mxu0 }
 0x985   :  { %v7580_v36 = vpop.f32.mrb[122].mxu0  ;;  %v10784_v20 = vadd.f32 %v10774_v11, %v3921_v46 }
 0x986   :  { %v6763_v63 = vmul.f32 -1.442695, %v10780_v2  ;;  %v10787_v4 = vadd.f32 %v7580_v36, %v10774_v11  ;;  %4244 = vrot.lane.b32.xlu0 %v10780_v2, %s8711_s4  ;;  %v3924_v13 = vpop.f32.mrb[123].mxu0 }
 0x987   :  { %v10793_v55 = vadd.f32 %v10774_v11, %v3924_v13  ;;  %v6761_v9 = vmul.f32 -1.442695, %v10784_v20 }
 0x988   :  { %v6764_v32 = vmul.f32 -1.442695, %v10787_v4  ;;  %4246 = vrot.lane.b32.xlu1 %v10787_v4, %s8711_s4  ;;  %8562 = vpow2.f32 %v6763_v63 }
 0x989   :  { %v6762_v34 = vmul.f32 -1.442695, %v10793_v55 }
 0x98a   :  { %4240 = vrot.lane.b32.xlu0 %v10784_v20, %s8711_s4  ;;  %8564 = vpow2.f32 %v6764_v32 }
 0x98b   :  { %v7583_v49 = vpop.f32.mrb[124].mxu0  ;;  %8566 = vpow2.f32 %v6761_v9 }
 0x98c   :  { %v10802_v51 = vadd.f32 %v7583_v49, %v10774_v11  ;;  %v3937_v24 = vpop.f32.mrb[125].mxu0  ;;  %4242 = vrot.lane.b32.xlu1 %v10793_v55, %s8711_s4  ;;  %8568 = vpow2.f32 %v6762_v34 }
 0x98d   :  { %v7584_v47 = vpop.f32.mrb[126].mxu0  ;;  %v10812_v0 = vadd.f32 %v10774_v11, %v3937_v24 }
 0x98e   :  { %v10807_v29 = vadd.f32 %v7584_v47, %v10774_v11  ;;  %v3940_v30 = vpop.f32.mrb[127].mxu0  ;;  %4252 = vrot.lane.b32.xlu0 %v10802_v51, %s8711_s4  ;;  %v6767_v56 = vmul.f32 -1.442695, %v10802_v51 }
 0x98f   :  { %v10818_v18 = vadd.f32 %v10774_v11, %v3940_v30  ;;  %v6765_v6 = vmul.f32 -1.442695, %v10812_v0 }
 0x990   :  { %4254 = vrot.lane.b32.xlu1 %v10807_v29, %s8711_s4  ;;  %v6768_v27 = vmul.f32 -1.442695, %v10807_v29  ;;  %8570 = vpow2.f32 %v6767_v56 }
 0x991   :  { %v6766_v3 = vmul.f32 -1.442695, %v10818_v18 }
 0x992   :  { %4248 = vrot.lane.b32.xlu0 %v10812_v0, %s8711_s4  ;;  %v8563_v53 = vpop.eup %8562  ;;  %8572 = vpow2.f32 %v6768_v27 }
 0x993   :  { %v7587_v45 = vpop.f32.mrb[128].mxu0  ;;  %v4062_v26 = vadd.f32 1.0, %v8563_v53  ;;  %8574 = vpow2.f32 %v6765_v6 }
 0x994   :  { %v10824_v40 = vadd.f32 %v7587_v45, %v10774_v11  ;;  %v3953_v44 = vpop.f32.mrb[129].mxu0  ;;  %4250 = vrot.lane.b32.xlu1 %v10818_v18, %s8711_s4  ;;  %v8565_v31 = vpop.eup %8564 }
 0x995   :  { %v7588_v15 = vpop.f32.mrb[130].mxu0  ;;  %v8567_v35 = vpop.eup %8566  ;;  %v10839_v62 = vadd.f32 %v10774_v11, %v3953_v44  ;;  %v4063_v43 = vadd.f32 1.0, %v8565_v31  ;;  %8576 = vrcp.f32 %v4062_v26 }
 0x996   :  { %v10830_v50 = vadd.f32 %v7588_v15, %v10774_v11  ;;  %v3956_v54 = vpop.f32.mrb[131].mxu0  ;;  %4260 = vrot.lane.b32.xlu0 %v10824_v40, %s8711_s4  ;;  %v8569_v22 = vpop.eup %8568  ;;  %v6771_v19 = vmul.f32 -1.442695, %v10824_v40  ;;  %v4060_v10 = vadd.f32 1.0, %v8567_v35  ;;  %8578 = vpow2.f32 %v6766_v3 }
 0x997   :  { %v10846_v42 = vadd.f32 %v10774_v11, %v3956_v54  ;;  %8580 = vrcp.f32 %v4063_v43  ;;  %v4061_v48 = vadd.f32 1.0, %v8569_v22  ;;  %v6769_v41 = vmul.f32 -1.442695, %v10839_v62 }
 0x998   :  { %4262 = vrot.lane.b32.xlu1 %v10830_v50, %s8711_s4  ;;  %v6772_v8 = vmul.f32 -1.442695, %v10830_v50  ;;  %8582 = vpow2.f32 %v6771_v19 }
 0x999   :  { %8584 = vrcp.f32 %v4060_v10  ;;  %v6770_v39 = vmul.f32 -1.442695, %v10846_v42 }
 0x99a   :  { %4256 = vrot.lane.b32.xlu0 %v10839_v62, %s8711_s4  ;;  %v8571_v37 = vpop.eup %8570  ;;  %8586 = vpow2.f32 %v6772_v8 }
 0x99b   :  { %v7591_v52 = vpop.f32.mrb[132].mxu0  ;;  %8588 = vrcp.f32 %v4061_v48  ;;  %v4066_v1 = vadd.f32 1.0, %v8571_v37 }
 0x99c   :  { %v10852_v21 = vadd.f32 %v7591_v52, %v10774_v11  ;;  %v3969_v23 = vpop.f32.mrb[133].mxu0  ;;  %4258 = vrot.lane.b32.xlu1 %v10846_v42, %s8711_s4  ;;  %v8573_v57 = vpop.eup %8572  ;;  %8590 = vpow2.f32 %v6769_v41 }
 0x99d   :  { %v7592_v38 = vpop.f32.mrb[134].mxu0  ;;  %v10866_v7 = vadd.f32 %v10774_v11, %v3969_v23  ;;  %v8575_v58 = vpop.eup %8574  ;;  %8592 = vpow2.f32 %v6770_v39  ;;  %v4067_v46 = vadd.f32 1.0, %v8573_v57 }
 0x99e   :  { %v10859_v16 = vadd.f32 %v7592_v38, %v10774_v11  ;;  %v3972_v5 = vpop.f32.mrb[135].mxu0  ;;  %4268 = vrot.lane.b32.xlu0 %v10852_v21, %s8711_s4  ;;  %v6775_v12 = vmul.f32 -1.442695, %v10852_v21  ;;  %v4064_v34 = vadd.f32 1.0, %v8575_v58 }
 0x99f   :  { %v10872_v25 = vadd.f32 %v10774_v11, %v3972_v5  ;;  %v8577_v59 = vpop.eup %8576  ;;  %v6773_v13 = vmul.f32 -1.442695, %v10866_v7 }
 0x9a0   :  { %4270 = vrot.lane.b32.xlu1 %v10859_v16, %s8711_s4  ;;  %v6776_v17 = vmul.f32 -1.442695, %v10859_v16  ;;  %v8579_v63 = vpop.eup %8578  ;;  %8594 = vpow2.f32 %v6775_v12 }
 0x9a1   :  { %v8581_v49 = vpop.eup %8580  ;;  %8596 = vrcp.f32 %v4066_v1  ;;  %v6774_v47 = vmul.f32 -1.442695, %v10872_v25  ;;  %v4065_v45 = vadd.f32 1.0, %v8579_v63 }
 0x9a2   :  { %4264 = vrot.lane.b32.xlu0 %v10866_v7, %s8711_s4  ;;  %v8583_v24 = vpop.eup %8582  ;;  %8598 = vpow2.f32 %v6776_v17 }
 0x9a3   :  { %v7595_v33 = vpop.f32.mrb[136].mxu0  ;;  %v8585_v56 = vpop.eup %8584  ;;  %8600 = vrcp.f32 %v4067_v46  ;;  %v4070_v31 = vadd.f32 1.0, %v8583_v24 }
 0x9a4   :  { %v3985_v14 = vpop.f32.mrb[137].mxu0  ;;  %4266 = vrot.lane.b32.xlu1 %v10872_v25, %s8711_s4  ;;  %v10881_v32 = vadd.f32 %v7595_v33, %v10774_v11  ;;  %v8587_v53 = vpop.eup %8586  ;;  %8602 = vpow2.f32 %v6773_v13 }
 0x9a5   :  { %v7596_v36 = vpop.f32.mrb[138].mxu0  ;;  %v10891_v44 = vadd.f32 %v10774_v11, %v3985_v14  ;;  %v8589_v15 = vpop.eup %8588  ;;  %8604 = vrcp.f32 %v4064_v34  ;;  %v4071_v61 = vadd.f32 1.0, %v8587_v53 }
 0x9a6   :  { %v3988_v9 = vpop.f32.mrb[139].mxu0  ;;  %4144 = vrot.lane.b32.xlu0 %v8577_v59, %s8712_s1  ;;  %v10886_v30 = vadd.f32 %v7596_v36, %v10774_v11  ;;  %v6779_v27 = vmul.f32 -1.442695, %v10881_v32  ;;  %v8591_v6 = vpop.eup %8590  ;;  %8606 = vpow2.f32 %v6774_v47 }
 0x9a7   :  { %v10896_v26 = vadd.f32 %v10774_v11, %v3988_v9  ;;  %8608 = vrcp.f32 %v4065_v45  ;;  %v8593_v35 = vpop.eup %8592  ;;  %v6777_v3 = vmul.f32 -1.442695, %v10891_v44  ;;  %v4068_v43 = vadd.f32 1.0, %v8591_v6 }
 0x9a8   :  { %4146 = vrot.lane.b32.xlu1 %v8581_v49, %s8712_s1  ;;  %v6780_v54 = vmul.f32 -1.442695, %v10886_v30  ;;  %8610 = vpow2.f32 %v6779_v27  ;;  %v4069_v10 = vadd.f32 1.0, %v8593_v35 }
 0x9a9   :  { %8612 = vrcp.f32 %v4070_v31  ;;  %v6778_v19 = vmul.f32 -1.442695, %v10896_v26 }
 0x9aa   :  { %4140 = vrot.lane.b32.xlu0 %v8585_v56, %s8712_s1  ;;  %v8595_v22 = vpop.eup %8594  ;;  %8614 = vpow2.f32 %v6780_v54 }
 0x9ab   :  { %v8597_v11 = vpop.eup %8596  ;;  %8616 = vrcp.f32 %v4071_v61  ;;  %v4074_v23 = vadd.f32 1.0, %v8595_v22 }
 0x9ac   :  { %4142 = vrot.lane.b32.xlu1 %v8589_v15, %s8712_s1  ;;  %v8599_v52 = vpop.eup %8598  ;;  %8618 = vpow2.f32 %v6777_v3 }
 0x9ad   :  { %v8601_v8 = vpop.eup %8600  ;;  %8620 = vrcp.f32 %v4068_v43  ;;  %v4075_v60 = vadd.f32 1.0, %v8599_v52 }
 0x9ae   :  { %4272 = vrot.lane.b32.xlu0 %v10891_v44, %s8711_s4  ;;  %v8603_v48 = vpop.eup %8602  ;;  %8622 = vpow2.f32 %v6778_v19 }
 0x9af   :  { %v8605_v38 = vpop.eup %8604  ;;  %8624 = vrcp.f32 %v4069_v10  ;;  %v4072_v37 = vadd.f32 1.0, %v8603_v48 }
 0x9b0   :  { %4274 = vrot.lane.b32.xlu1 %v10896_v26, %s8711_s4  ;;  %v8607_v41 = vpop.eup %8606  ;;  %8626 = vrcp.f32 %v4074_v23 }
 0x9b1   :  { %v8609_v5 = vpop.eup %8608  ;;  %8628 = vrcp.f32 %v4075_v60  ;;  %v4073_v12 = vadd.f32 1.0, %v8607_v41 }
 0x9b2   :  { %4152 = vrot.lane.b32.xlu0 %v8597_v11, %s8712_s1  ;;  %v8611_v39 = vpop.eup %8610  ;;  %8630 = vrcp.f32 %v4072_v37 }
 0x9b3   :  { %v8613_v57 = vpop.eup %8612  ;;  %v4078_v58 = vadd.f32 1.0, %v8611_v39  ;;  %8632 = vrcp.f32 %v4073_v12 }
 0x9b4   :  { %4154 = vrot.lane.b32.xlu1 %v8601_v8, %s8712_s1  ;;  %v8615_v1 = vpop.eup %8614 }
 0x9b5   :  { %v8617_v33 = vpop.eup %8616  ;;  %v4079_v59 = vadd.f32 1.0, %v8615_v1  ;;  %8634 = vrcp.f32 %v4078_v58 }
 0x9b6   :  { %4148 = vrot.lane.b32.xlu0 %v8605_v38, %s8712_s1  ;;  %v8619_v17 = vpop.eup %8618 }
 0x9b7   :  { %v8621_v14 = vpop.eup %8620  ;;  %v4076_v63 = vadd.f32 1.0, %v8619_v17  ;;  %8636 = vrcp.f32 %v4079_v59 }
 0x9b8   :  { %4150 = vrot.lane.b32.xlu1 %v8609_v5, %s8712_s1  ;;  %v8623_v46 = vpop.eup %8622 }
 0x9b9   :  { %v8625_v36 = vpop.eup %8624  ;;  %v4077_v9 = vadd.f32 1.0, %v8623_v46  ;;  %8638 = vrcp.f32 %v4076_v63 }
 0x9ba   :  { %4160 = vrot.lane.b32.xlu0 %v8613_v57, %s8712_s1  ;;  %v8627_v13 = vpop.eup %8626 }
 0x9bb   :  { %v8629_v49 = vpop.eup %8628  ;;  %8640 = vrcp.f32 %v4077_v9 }
 0x9bc   :  { %4162 = vrot.lane.b32.xlu1 %v8617_v33, %s8712_s1  ;;  %v8631_v34 = vpop.eup %8630 }
 0x9bd   :  { %v8633_v24 = vpop.eup %8632 }
 0x9be   :  { %4156 = vrot.lane.b32.xlu0 %v8621_v14, %s8712_s1 }
 0x9bf   :  { %v8635_v47 = vpop.eup %8634 }
 0x9c0   :  { %4158 = vrot.lane.b32.xlu1 %v8625_v36, %s8712_s1 }
 0x9c1   :  { %v8637_v56 = vpop.eup %8636 }
 0x9c2   :  { %4168 = vrot.lane.b32.xlu0 %v8627_v13, %s8712_s1 }
 0x9c3   :  { %v8639_v45 = vpop.eup %8638 }
 0x9c4   :  { %4170 = vrot.lane.b32.xlu1 %v8629_v49, %s8712_s1 }
 0x9c5   :  { %v8641_v53 = vpop.eup %8640 }
 0x9c6   :  { %4164 = vrot.lane.b32.xlu0 %v8631_v34, %s8712_s1 }
 0x9c8   :  { %4166 = vrot.lane.b32.xlu1 %v8633_v24, %s8712_s1 }
 0x9ca   :  { %4176 = vrot.lane.b32.xlu0 %v8635_v47, %s8712_s1 }
 0x9cc   :  { %4178 = vrot.lane.b32.xlu1 %v8637_v56, %s8712_s1 }
 0x9ce   :  { %4172 = vrot.lane.b32.xlu0 %v8639_v45, %s8712_s1 }
 0x9d0   :  { %4174 = vrot.lane.b32.xlu1 %v8641_v53, %s8712_s1 }
 0x9d2   :  { %4276 = vrot.lane.b32.xlu0 %v10881_v32, %s8711_s4 }
 0x9d4   :  { %4278 = vrot.lane.b32.xlu1 %v10886_v30, %s8711_s4 }
 0x9f8   :  { %v4245_v27 = vpop.permute.xlu0 %4244 }
 0x9fa   :  { %v4247_v15 = vpop.permute.xlu1 %4246 }
 0x9fc   :  { %v4241_v31 = vpop.permute.xlu0 %4240 }
 0x9fe   :  { %v4243_v6 = vpop.permute.xlu1 %4242 }
 0xa00   :  { %v4253_v54 = vpop.permute.xlu0 %4252 }
 0xa02   :  { %v4255_v61 = vpop.permute.xlu1 %4254 }
 0xa04   :  { %v4249_v35 = vpop.permute.xlu0 %4248 }
 0xa06   :  { %v4251_v3 = vpop.permute.xlu1 %4250 }
 0xa08   :  { %v10925_v43 = vpop.permute.xlu0 %4260 }
 0xa0a   :  { %v4263_v22 = vpop.permute.xlu1 %4262 }
 0xa0c   :  { %v4257_v19 = vpop.permute.xlu0 %4256 }
 0xa0e   :  { %v10927_v11 = vpop.permute.xlu1 %4258 }
 0xa10   :  { %v10929_v10 = vpop.permute.xlu0 %4268 }
 0xa12   :  { %v10931_v52 = vpop.permute.xlu1 %4270 }
 0xa14   :  { %v10933_v8 = vpop.permute.xlu0 %4264 }
 0xa16   :  { %v10935_v23 = vpop.permute.xlu1 %4266 }
 0xa18   :  { %v4145_v48 = vpop.permute.xlu0 %4144 }
 0xa19   :  { %v4202_v41 = vmul.f32 %v4145_v48, %v10780_v2 }
 0xa1a   :  { %v4147_v38 = vpop.permute.xlu1 %4146 }
 0xa1b   :  { %v4203_v60 = vmul.f32 %v4147_v38, %v10787_v4  ;;  %v4302_v33 = vadd.f32 %v4245_v27, %v4202_v41 }
 0xa1c   :  { %v4141_v5 = vpop.permute.xlu0 %4140 }
 0xa1d   :  { %v4200_v37 = vmul.f32 %v4141_v5, %v10784_v20  ;;  %v4303_v39 = vadd.f32 %v4247_v15, %v4203_v60  ;;  %v4322_v4 = vmax.f32 %v4302_v33, 0.0 }
 0xa1e   :  { %v4143_v57 = vpop.permute.xlu1 %4142 }
 0xa1f   :  { %v4300_v12 = vadd.f32 %v4241_v31, %v4200_v37  ;;  %v4201_v1 = vmul.f32 %v4143_v57, %v10793_v55  ;;  %v4323_v14 = vmax.f32 %v4303_v39, 0.0 }
 0xa20   :  { %v10941_v58 = vpop.permute.xlu0 %4272 }
 0xa21   :  { %v4301_v17 = vadd.f32 %v4243_v6, %v4201_v1  ;;  %v4320_v46 = vmax.f32 %v4300_v12, 0.0  ;;  %v10945_v13 = vpack.c.bf16 %v4323_v14, %v4322_v4 }
 0xa22   :  { %v10943_v59 = vpop.permute.xlu1 %4274 }
 0xa23   :  { %v4321_v36 = vmax.f32 %v4301_v17, 0.0 }
 0xa24   :  { %v4153_v63 = vpop.permute.xlu0 %4152 }
 0xa25   :  { %v4340_v2 = vpack.c.bf16 %v4321_v36, %v4320_v46  ;;  %v4206_v55 = vmul.f32 %v4153_v63, %v10802_v51  ;;  %v10985_v36 = vld [vmem:[%s11904_s21 + $0x8] sm:$0xff]  }
 0xa26   :  { %v4155_v20 = vpop.permute.xlu1 %4154 }
 0xa27   :  { %v4207_v9 = vmul.f32 %v4155_v20, %v10807_v29  ;;  %7601 = vmatprep.mubr.msk.bf16.mxu0 %vm272_vm2, %v4340_v2  ;;  %v4306_v53 = vadd.f32 %v4253_v54, %v4206_v55  ;;  %v10963_v54 = vld [vmem:[%s11904_s21] sm:$0xff]  }
 0xa28   :  { %7602 = vmatmul.mubr.msk.bf16.vlgmr.msra.gmra.mrb[140].mxu0 %vm272_vm2, %v10945_v13  ;;  %v4149_v49 = vpop.permute.xlu0 %4148 }
 0xa29   :  { %7622 = vmatpush3.bf16.msra.mxu0 %v4340_v2  ;;  %v4204_v34 = vmul.f32 %v4149_v49, %v10812_v0  ;;  %v4307_v24 = vadd.f32 %v4255_v61, %v4207_v9  ;;  %v4326_v38 = vmax.f32 %v4306_v53, 0.0 }
 0xa2a   :  { %v4151_v47 = vpop.permute.xlu1 %4150  ;;  %7635 = vmatprep.subr.bf16.mxu0 %v11905_v28 }
 0xa2b   :  { %v4304_v56 = vadd.f32 %v4249_v35, %v4204_v34  ;;  %v4205_v45 = vmul.f32 %v4151_v47, %v10818_v18  ;;  %v4327_v15 = vmax.f32 %v4307_v24, 0.0 }
 0xa2c   :  { %v4161_v29 = vpop.permute.xlu0 %4160 }
 0xa2d   :  { %v4305_v27 = vadd.f32 %v4251_v3, %v4205_v45  ;;  %v4324_v51 = vmax.f32 %v4304_v56, 0.0  ;;  %v4210_v60 = vmul.f32 %v4161_v29, %v10824_v40  ;;  %v10958_v5 = vpack.c.bf16 %v4327_v15, %v4326_v38 }
 0xa2e   :  { %v4163_v31 = vpop.permute.xlu1 %4162 }
 0xa2f   :  { %v4325_v6 = vmax.f32 %v4305_v27, 0.0  ;;  %v4211_v48 = vmul.f32 %v4163_v31, %v10830_v50  ;;  %v4310_v40 = vadd.f32 %v10925_v43, %v4210_v60 }
 0xa30   :  { %v4157_v0 = vpop.permute.xlu0 %4156 }
 0xa31   :  { %v4342_v61 = vpack.c.bf16 %v4325_v6, %v4324_v51  ;;  %v4208_v41 = vmul.f32 %v4157_v0, %v10839_v62  ;;  %v4311_v35 = vadd.f32 %v4263_v22, %v4211_v48  ;;  %v4330_v43 = vmax.f32 %v4310_v40, 0.0  ;;  %v11147_v48 = vld [vmem:[%s11871_s12 + $0x18] sm:$0xff]  }
 0xa32   :  { %v4159_v18 = vpop.permute.xlu1 %4158 }
 0xa33   :  { %v4308_v3 = vadd.f32 %v4257_v19, %v4208_v41  ;;  %v4209_v37 = vmul.f32 %v4159_v18, %v10846_v42  ;;  %7605 = vmatprep.mubr.msk.bf16.mxu0 %vm272_vm2, %v4342_v61  ;;  %7650 = vmatpush3.bf16.msra.mxu1 %v4342_v61  ;;  %v4331_v22 = vmax.f32 %v4311_v35, 0.0 }
 0xa34   :  { %7606 = vmatmul.mubr.msk.bf16.gmra.mrb[144].mxu0 %vm272_vm2, %v10958_v5  ;;  %v4169_v50 = vpop.permute.xlu0 %4168  ;;  %7677 = vmatprep.subr.bf16.mxu1 %v11905_v28 }
 0xa35   :  { %v4309_v62 = vadd.f32 %v10927_v11, %v4209_v37  ;;  %v4328_v19 = vmax.f32 %v4308_v3, 0.0  ;;  %v4214_v12 = vmul.f32 %v4169_v50, %v10852_v21  ;;  %v10979_v11 = vpack.c.bf16 %v4331_v22, %v4330_v43 }
 0xa36   :  { %v4171_v39 = vpop.permute.xlu1 %4170  ;;  %7652 = vmatmul.mubr.msk.bf16.vlgmr.msra.gmra.mrb[128].mxu1 %vm1184_vm4, %v10963_v54 }
 0xa37   :  { %v4329_v42 = vmax.f32 %v4309_v62, 0.0  ;;  %v4215_v57 = vmul.f32 %v4171_v39, %v10859_v16  ;;  %7655 = vmatprep.mubr.msk.bf16.mxu1 %vm8714_vm3, %v11905_v28  ;;  %v4314_v21 = vadd.f32 %v10929_v10, %v4214_v12 }
 0xa38   :  { %v4165_v1 = vpop.permute.xlu0 %4164 }
 0xa39   :  { %v4344_v33 = vpack.c.bf16 %v4329_v42, %v4328_v19  ;;  %v4212_v17 = vmul.f32 %v4165_v1, %v10866_v7  ;;  %v4315_v14 = vadd.f32 %v10931_v52, %v4215_v57  ;;  %v4334_v20 = vmax.f32 %v4314_v21, 0.0 }
 0xa3a   :  { %v4167_v46 = vpop.permute.xlu1 %4166 }
 0xa3b   :  { %v4312_v16 = vadd.f32 %v10933_v8, %v4212_v17  ;;  %v4213_v4 = vmul.f32 %v4167_v46, %v10872_v25  ;;  %7609 = vmatprep.mubr.msk.bf16.mxu0 %vm272_vm2, %v4344_v33  ;;  %7678 = vmatpush3.bf16.msra.mxu1 %v4344_v33  ;;  %v4335_v63 = vmax.f32 %v4315_v14, 0.0 }
 0xa3c   :  { %7610 = vmatmul.mubr.msk.bf16.gmra.mrb[148].mxu0 %vm272_vm2, %v10979_v11  ;;  %v4177_v7 = vpop.permute.xlu0 %4176  ;;  %7705 = vmatprep.subr.bf16.mxu1 %v11905_v28 }
 0xa3d   :  { %v4313_v52 = vadd.f32 %v10935_v23, %v4213_v4  ;;  %v4332_v8 = vmax.f32 %v4312_v16, 0.0  ;;  %v11000_v49 = vpack.c.bf16 %v4335_v63, %v4334_v20  ;;  %v11005_v23 = vld [vmem:[%s11904_s21 + $0x10] sm:$0xff]   ;;  %v4218_v24 = vmul.f32 %v4177_v7, %v10881_v32 }
 0xa3e   :  { %v4179_v2 = vpop.permute.xlu1 %4178  ;;  %7656 = vmatmul.mubr.msk.bf16.gmra.mrb[132].mxu1 %vm1184_vm4, %v10985_v36 }
 0xa3f   :  { %v4333_v25 = vmax.f32 %v4313_v52, 0.0  ;;  %7659 = vmatprep.mubr.msk.bf16.mxu1 %vm8714_vm3, %v11905_v28  ;;  %v4219_v45 = vmul.f32 %v4179_v2, %v10886_v30  ;;  %v8340_v30 = vld [vmem:[%s11871_s12 + $0xc] sm:$0xff]  }
 0xa40   :  { %v4173_v10 = vpop.permute.xlu0 %4172 }
 0xa41   :  { %v4346_v9 = vpack.c.bf16 %v4333_v25, %v4332_v8  ;;  %v4216_v55 = vmul.f32 %v4173_v10, %v10891_v44 }
 0xa42   :  { %v4175_v34 = vpop.permute.xlu1 %4174 }
 0xa43   :  { %v4316_v47 = vadd.f32 %v10941_v58, %v4216_v55  ;;  %v4217_v56 = vmul.f32 %v4175_v34, %v10896_v26  ;;  %7613 = vmatprep.mubr.msk.bf16.mxu0 %vm272_vm2, %v4346_v9 }
 0xa44   :  { %7614 = vmatmul.mubr.msk.bf16.gmra.mrb[152].mxu0 %vm272_vm2, %v11000_v49  ;;  %v4277_v44 = vpop.permute.xlu0 %4276 }
 0xa45   :  { %v4317_v53 = vadd.f32 %v10943_v59, %v4217_v56  ;;  %v4318_v29 = vadd.f32 %v4277_v44, %v4218_v24  ;;  %v4336_v32 = vmax.f32 %v4316_v47, 0.0  ;;  %v8341_v59 = vld [vmem:[%s11871_s12 + $0x14] ss:$0 sps:$4 sm:$0x11]  }
 0xa46   :  { %v4279_v27 = vpop.permute.xlu1 %4278  ;;  %7660 = vmatmul.mubr.msk.bf16.gmra.mrb[136].mxu1 %vm1184_vm4, %v11005_v23 }
 0xa47   :  { %v4337_v15 = vmax.f32 %v4317_v53, 0.0  ;;  %v4319_v58 = vadd.f32 %v4279_v27, %v4219_v45  ;;  %7679 = vmatprep.mubr.msk.bf16.mxu1 %vm8714_vm3, %v11905_v28  ;;  %v4338_v31 = vmax.f32 %v4318_v29, 0.0 }
 0xa49   :  { %v4348_v26 = vpack.c.bf16 %v4337_v15, %v4336_v32  ;;  %v4339_v51 = vmax.f32 %v4319_v58, 0.0 }
 0xa4b   :  { %v4349_v6 = vpack.c.bf16 %v4339_v51, %v4338_v31  ;;  %7617 = vmatprep.mubr.msk.bf16.mxu0 %vm272_vm2, %v4348_v26  ;;  %v8343_v31 = vld [vmem:[%s11871_s12 + $0x20] ss:$0 sps:$4 sm:$0x11]  }
 0xa4d   :  { %7618 = vmatmul.mubr.msk.bf16.gmra.mrb[156].mxu0 %vm272_vm2, %v4349_v6 }
 0xa4e   :  { %7680 = vmatmul.mubr.msk.bf16.vlgmr.msra.gmra.mrb[140].mxu1 %vm1184_vm4, %v10963_v54  ;;  %7623 = vmatprep.mubr.msk.bf16.mxu0 %vm8714_vm3, %v11905_v28 }
 0xa4f   :  { %7706 = vmatpush3.bf16.msra.mxu1 %v4346_v9  ;;  %7683 = vmatprep.mubr.msk.bf16.mxu1 %vm8714_vm3, %v11905_v28 }
 0xa50   :  { %7733 = vmatprep.subr.bf16.mxu1 %v11905_v28 }
 0xa55   :  { %7624 = vmatmul.mubr.msk.bf16.vlgmr.msra.gmra.mrb[160].mxu0 %vm1184_vm4, %v10963_v54 }
 0xa56   :  { %7636 = vmatpush3.bf16.msra.mxu0 %v10945_v13  ;;  %7684 = vmatmul.mubr.msk.bf16.gmra.mrb[144].mxu1 %vm1184_vm4, %v10985_v36  ;;  %v5169_v13 = vsel %vm315_vm0, %v8341_v59, 0 }
 0xa57   :  { %7627 = vmatprep.mubr.msk.bf16.mxu0 %vm8714_vm3, %v11905_v28  ;;  %7687 = vmatprep.mubr.msk.bf16.mxu1 %vm8714_vm3, %v11905_v28 }
 0xa58   :  { %7663 = vmatprep.subr.bf16.mxu0 %v11905_v28 }
 0xa5d   :  { %7628 = vmatmul.mubr.msk.bf16.gmra.mrb[164].mxu0 %vm1184_vm4, %v10985_v36 }
 0xa5e   :  { %7688 = vmatmul.mubr.msk.bf16.gmra.mrb[148].mxu1 %vm1184_vm4, %v11005_v23  ;;  %7631 = vmatprep.mubr.msk.bf16.mxu0 %vm8714_vm3, %v11905_v28 }
 0xa5f   :  { %7707 = vmatprep.mubr.msk.bf16.mxu1 %vm8714_vm3, %v11905_v28 }
 0xa65   :  { %7632 = vmatmul.mubr.msk.bf16.gmra.mrb[168].mxu0 %vm1184_vm4, %v11005_v23 }
 0xa66   :  { %7708 = vmatmul.mubr.msk.bf16.vlgmr.msra.gmra.mrb[152].mxu1 %vm1184_vm4, %v10963_v54  ;;  %7637 = vmatprep.mubr.msk.bf16.mxu0 %vm8714_vm3, %v11905_v28 }
 0xa67   :  { %7734 = vmatpush3.bf16.msra.mxu1 %v4348_v26  ;;  %7711 = vmatprep.mubr.msk.bf16.mxu1 %vm8714_vm3, %v11905_v28 }
 0xa6d   :  { %7638 = vmatmul.mubr.msk.bf16.vlgmr.msra.gmra.mrb[172].mxu0 %vm1184_vm4, %v10963_v54 }
 0xa6e   :  { %7664 = vmatpush3.bf16.msra.mxu0 %v10958_v5  ;;  %7641 = vmatprep.mubr.msk.bf16.mxu0 %vm8714_vm3, %v11905_v28 }
 0xa6f   :  { %7691 = vmatprep.subr.bf16.mxu0 %v11905_v28  ;;  %7712 = vmatmul.mubr.msk.bf16.gmra.mrb[156].mxu1 %vm1184_vm4, %v10985_v36 }
 0xa70   :  { %7715 = vmatprep.mubr.msk.bf16.mxu1 %vm8714_vm3, %v11905_v28 }
 0xa75   :  { %7642 = vmatmul.mubr.msk.bf16.gmra.mrb[176].mxu0 %vm1184_vm4, %v10985_v36 }
 0xa76   :  { %7645 = vmatprep.mubr.msk.bf16.mxu0 %vm8714_vm3, %v11905_v28 }
 0xa77   :  { %7716 = vmatmul.mubr.msk.bf16.gmra.mrb[160].mxu1 %vm1184_vm4, %v11005_v23 }
 0xa78   :  { %7735 = vmatprep.mubr.msk.bf16.mxu1 %vm8714_vm3, %v11905_v28 }
 0xa7d   :  { %7646 = vmatmul.mubr.msk.bf16.gmra.mrb[180].mxu0 %vm1184_vm4, %v11005_v23 }
 0xa7e   :  { %7665 = vmatprep.mubr.msk.bf16.mxu0 %vm8714_vm3, %v11905_v28 }
 0xa7f   :  { %7736 = vmatmul.mubr.msk.bf16.vlgmr.msra.gmra.mrb[164].mxu1 %vm1184_vm4, %v10963_v54 }
 0xa80   :  { %7739 = vmatprep.mubr.msk.bf16.mxu1 %vm8714_vm3, %v11905_v28 }
 0xa85   :  { %7666 = vmatmul.mubr.msk.bf16.vlgmr.msra.gmra.mrb[184].mxu0 %vm1184_vm4, %v10963_v54 }
 0xa86   :  { %7692 = vmatpush3.bf16.msra.mxu0 %v10979_v11  ;;  %7669 = vmatprep.mubr.msk.bf16.mxu0 %vm8714_vm3, %v11905_v28 }
 0xa87   :  { %7719 = vmatprep.subr.bf16.mxu0 %v11905_v28  ;;  %7740 = vmatmul.mubr.msk.bf16.gmra.mrb[168].mxu1 %vm1184_vm4, %v10985_v36 }
 0xa88   :  { %7743 = vmatprep.mubr.msk.bf16.mxu1 %vm8714_vm3, %v11905_v28 }
 0xa8d   :  { %7670 = vmatmul.mubr.msk.bf16.gmra.mrb[188].mxu0 %vm1184_vm4, %v10985_v36 }
 0xa8e   :  { %7673 = vmatprep.mubr.msk.bf16.mxu0 %vm8714_vm3, %v11905_v28 }
 0xa8f   :  { %7744 = vmatmul.mubr.msk.bf16.gmra.mrb[172].mxu1 %vm1184_vm4, %v11005_v23 }
 0xa95   :  { %7674 = vmatmul.mubr.msk.bf16.gmra.mrb[192].mxu0 %vm1184_vm4, %v11005_v23 }
 0xa96   :  { %7693 = vmatprep.mubr.msk.bf16.mxu0 %vm8714_vm3, %v11905_v28 }
 0xa9d   :  { %7694 = vmatmul.mubr.msk.bf16.vlgmr.msra.gmra.mrb[196].mxu0 %vm1184_vm4, %v10963_v54 }
 0xa9e   :  { %7720 = vmatpush3.bf16.msra.mxu0 %v11000_v49  ;;  %7697 = vmatprep.mubr.msk.bf16.mxu0 %vm8714_vm3, %v11905_v28 }
 0xa9f   :  { %7747 = vmatprep.subr.bf16.mxu0 %v11905_v28 }
 0xaa5   :  { %7698 = vmatmul.mubr.msk.bf16.gmra.mrb[200].mxu0 %vm1184_vm4, %v10985_v36 }
 0xaa6   :  { %7701 = vmatprep.mubr.msk.bf16.mxu0 %vm8714_vm3, %v11905_v28 }
 0xaad   :  { %7702 = vmatmul.mubr.msk.bf16.gmra.mrb[204].mxu0 %vm1184_vm4, %v11005_v23 }
 0xaae   :  { %7721 = vmatprep.mubr.msk.bf16.mxu0 %vm8714_vm3, %v11905_v28 }
 0xab5   :  { %7722 = vmatmul.mubr.msk.bf16.vlgmr.msra.gmra.mrb[208].mxu0 %vm1184_vm4, %v10963_v54 }
 0xab6   :  { %7748 = vmatpush3.bf16.msra.mxu0 %v4349_v6  ;;  %7725 = vmatprep.mubr.msk.bf16.mxu0 %vm8714_vm3, %v11905_v28 }
 0xab7   :  { %7761 = vmatprep.subr.bf16.mxu0 %v8340_v30 }
 0xabd   :  { %7726 = vmatmul.mubr.msk.bf16.gmra.mrb[212].mxu0 %vm1184_vm4, %v10985_v36 }
 0xabe   :  { %7729 = vmatprep.mubr.msk.bf16.mxu0 %vm8714_vm3, %v11905_v28 }
 0xac5   :  { %7730 = vmatmul.mubr.msk.bf16.gmra.mrb[216].mxu0 %vm1184_vm4, %v11005_v23 }
 0xac6   :  { %7749 = vmatprep.mubr.msk.bf16.mxu0 %vm8714_vm3, %v11905_v28 }
 0xacd   :  { %7750 = vmatmul.mubr.msk.bf16.vlgmr.msra.gmra.mrb[220].mxu0 %vm1184_vm4, %v10963_v54 }
 0xace   :  { %7753 = vmatprep.mubr.msk.bf16.mxu0 %vm8714_vm3, %v11905_v28  ;;  %7762 = vmatpush3.bf16.msra.mxu0 %v8340_v30 }
 0xacf   :  { %8077 = vmatprep.subr.msk.bf16.mxu0 %vm315_vm0, %v8341_v59  ;;  %v5358_v59 = vsel %vm315_vm0, %v8343_v31, 0 }
 0xad2   :  { %7764 = vmatpush3.bf16.msra.mxu0 %v5169_v13  ;;  %v11219_v13 = vld [vmem:[%s11871_s12 + $0x24] sm:$0xff]  }
 0xad3   :  { %7785 = vmatprep.subr.bf16.mxu0 %v11147_v48 }
 0xad5   :  { %7754 = vmatmul.mubr.msk.bf16.gmra.mrb[224].mxu0 %vm1184_vm4, %v10985_v36 }
 0xad6   :  { %7757 = vmatprep.mubr.msk.bf16.mxu0 %vm8714_vm3, %v11905_v28 }
 0xadd   :  { %7758 = vmatmul.mubr.msk.bf16.gmra.mrb[228].mxu0 %vm1184_vm4, %v11005_v23 }
 0xb09   :  { %v11150_v38 = vpop.f32.mrb[128].mxu1 }
 0xb0a   :  { %v7653_v60 = vpop.f32.mrb[129].mxu1 }
 0xb0b   :  { %v4696_v0 = vpop.f32.mrb[130].mxu1 }
 0xb0c   :  { %v5117_v61 = vpack.c.bf16 %v4696_v0, %v11150_v38  ;;  %v7654_v41 = vpop.f32.mrb[131].mxu1 }
 0xb11   :  { %v11153_v5 = vpop.f32.mrb[132].mxu1 }
 0xb12   :  { %v7657_v28 = vpop.f32.mrb[133].mxu1 }
 0xb13   :  { %v11155_v35 = vpop.f32.mrb[134].mxu1 }
 0xb14   :  { %v5306_v18 = vpack.c.bf16 %v11155_v35, %v11153_v5  ;;  %v7658_v54 = vpop.f32.mrb[135].mxu1  ;;  %v8346_v5 = vld [vmem:[%s11872_s14] sm:$0xff]   ;;  %v8347_v35 = vld [vmem:[%s11872_s14 + $0x8] sm:$0xff]  }
 0xb15   :  { %7833 = vmatprep.subr.bf16.mxu1 %v8346_v5 }
 0xb16   :  { %7834 = vmatpush3.bf16.msra.mxu1 %v8346_v5 }
 0xb17   :  { %7835 = vmatprep.subr.bf16.mxu1 %v8347_v35 }
 0xb19   :  { %v11159_v3 = vpop.f32.mrb[136].mxu1 }
 0xb1a   :  { %v7661_v37 = vpop.f32.mrb[137].mxu1  ;;  %7836 = vmatpush3.bf16.msra.mxu1 %v8347_v35 }
 0xb1b   :  { %v11161_v40 = vpop.f32.mrb[138].mxu1 }
 0xb1c   :  { %v5495_v50 = vpack.c.bf16 %v11161_v40, %v11159_v3  ;;  %v7662_v62 = vpop.f32.mrb[139].mxu1  ;;  %v8348_v3 = vld [vmem:[%s11872_s14 + $0x10] ss:$0 sps:$4 sm:$0x33]  }
 0xb1d   :  { %8080 = vmatprep.subr.msk.bf16.mxu1 %vm2951_vm5, %v8348_v3 }
 0xb21   :  { %v11165_v22 = vpop.f32.mrb[140].mxu1 }
 0xb22   :  { %v7681_v39 = vpop.f32.mrb[141].mxu1 }
 0xb23   :  { %v11167_v19 = vpop.f32.mrb[142].mxu1 }
 0xb24   :  { %v5119_v42 = vpack.c.bf16 %v11167_v19, %v11165_v22  ;;  %v7682_v57 = vpop.f32.mrb[143].mxu1 }
 0xb28   :  { %v4579_v43 = vpop.f32.mrb[160].mxu0 }
 0xb29   :  { %v7625_v12 = vpop.f32.mrb[161].mxu0  ;;  %v11171_v1 = vpop.f32.mrb[144].mxu1 }
 0xb2a   :  { %v4582_v33 = vpop.f32.mrb[162].mxu0  ;;  %v7685_v17 = vpop.f32.mrb[145].mxu1 }
 0xb2b   :  { %v5115_v11 = vpack.c.bf16 %v4582_v33, %v4579_v43  ;;  %v7626_v14 = vpop.f32.mrb[163].mxu0  ;;  %v11173_v46 = vpop.f32.mrb[146].mxu1 }
 0xb2c   :  { %v5308_v36 = vpack.c.bf16 %v11173_v46, %v11171_v1  ;;  %v7686_v16 = vpop.f32.mrb[147].mxu1  ;;  %v5842_v46 = vsel %vm2951_vm5, %v8348_v3, 0 }
 0xb2d   :  { %7765 = vmatprep.mubr.msk.bf16.mxu0 %vm272_vm2, %v5115_v11  ;;  %7838 = vmatpush3.bf16.msra.mxu1 %v5842_v46 }
 0xb30   :  { %v11178_v4 = vpop.f32.mrb[164].mxu0 }
 0xb31   :  { %v7629_v21 = vpop.f32.mrb[165].mxu0  ;;  %v11180_v7 = vpop.f32.mrb[148].mxu1 }
 0xb32   :  { %v11182_v52 = vpop.f32.mrb[166].mxu0  ;;  %v7689_v63 = vpop.f32.mrb[149].mxu1 }
 0xb33   :  { %v5304_v2 = vpack.c.bf16 %v11182_v52, %v11178_v4  ;;  %v7630_v8 = vpop.f32.mrb[167].mxu0  ;;  %v11186_v25 = vpop.f32.mrb[150].mxu1 }
 0xb34   :  { %v5497_v20 = vpack.c.bf16 %v11186_v25, %v11180_v7  ;;  %v7690_v10 = vpop.f32.mrb[151].mxu1 }
 0xb38   :  { %v11190_v9 = vpop.f32.mrb[168].mxu0 }
 0xb39   :  { %v7633_v55 = vpop.f32.mrb[169].mxu0  ;;  %v11192_v49 = vpop.f32.mrb[152].mxu1 }
 0xb3a   :  { %v11194_v34 = vpop.f32.mrb[170].mxu0  ;;  %v7709_v23 = vpop.f32.mrb[153].mxu1 }
 0xb3b   :  { %v5493_v24 = vpack.c.bf16 %v11194_v34, %v11190_v9  ;;  %v7634_v47 = vpop.f32.mrb[171].mxu0  ;;  %v11198_v56 = vpop.f32.mrb[154].mxu1 }
 0xb3c   :  { %v5121_v44 = vpack.c.bf16 %v11198_v56, %v11192_v49  ;;  %v7710_v45 = vpop.f32.mrb[155].mxu1 }
 0xb40   :  { %v4636_v53 = vpop.f32.mrb[172].mxu0 }
 0xb41   :  { %v7639_v29 = vpop.f32.mrb[173].mxu0 }
 0xb42   :  { %v4639_v27 = vpop.f32.mrb[174].mxu0  ;;  %v11202_v32 = vpop.f32.mrb[156].mxu1 }
 0xb43   :  { %v5116_v15 = vpack.c.bf16 %v4639_v27, %v4636_v53  ;;  %v7640_v58 = vpop.f32.mrb[175].mxu0  ;;  %v7713_v26 = vpop.f32.mrb[157].mxu1 }
 0xb44   :  { %v11207_v51 = vpop.f32.mrb[158].mxu1 }
 0xb45   :  { %7766 = vmatmul.mubr.msk.bf16.vlgmr.msra.gmra.mrb[140].mxu0 %vm272_vm2, %v5116_v15  ;;  %v5310_v6 = vpack.c.bf16 %v11207_v51, %v11202_v32  ;;  %v7714_v30 = vpop.f32.mrb[159].mxu1 }
 0xb46   :  { %7769 = vmatprep.mubr.msk.bf16.mxu0 %vm272_vm2, %v5117_v61  ;;  %7786 = vmatpush3.bf16.msra.mxu0 %v11147_v48 }
 0xb47   :  { %8078 = vmatprep.subr.msk.bf16.mxu0 %vm315_vm0, %v8343_v31 }
 0xb48   :  { %v11221_v38 = vpop.f32.mrb[176].mxu0 }
 0xb49   :  { %v7643_v60 = vpop.f32.mrb[177].mxu0 }
 0xb4a   :  { %v11223_v0 = vpop.f32.mrb[178].mxu0  ;;  %v11225_v41 = vpop.f32.mrb[160].mxu1  ;;  %7788 = vmatpush3.bf16.msra.mxu0 %v5358_v59 }
 0xb4b   :  { %v5305_v48 = vpack.c.bf16 %v11223_v0, %v11221_v38  ;;  %v7644_v61 = vpop.f32.mrb[179].mxu0  ;;  %v7717_v28 = vpop.f32.mrb[161].mxu1  ;;  %7809 = vmatprep.subr.bf16.mxu0 %v11219_v13 }
 0xb4c   :  { %v11230_v54 = vpop.f32.mrb[162].mxu1 }
 0xb4d   :  { %v5499_v37 = vpack.c.bf16 %v11230_v54, %v11225_v41  ;;  %v7718_v62 = vpop.f32.mrb[163].mxu1 }
 0xb50   :  { %v11234_v39 = vpop.f32.mrb[180].mxu0 }
 0xb51   :  { %v7647_v57 = vpop.f32.mrb[181].mxu0 }
 0xb52   :  { %v11236_v43 = vpop.f32.mrb[182].mxu0  ;;  %v5035_v12 = vpop.f32.mrb[164].mxu1 }
 0xb53   :  { %v5494_v33 = vpack.c.bf16 %v11236_v43, %v11234_v39  ;;  %v7648_v17 = vpop.f32.mrb[183].mxu0  ;;  %v7737_v11 = vpop.f32.mrb[165].mxu1 }
 0xb54   :  { %v5038_v14 = vpop.f32.mrb[166].mxu1 }
 0xb55   :  { %v5123_v16 = vpack.c.bf16 %v5038_v14, %v5035_v12  ;;  %v7738_v21 = vpop.f32.mrb[167].mxu1 }
 0xb58   :  { %v4750_v63 = vpop.f32.mrb[184].mxu0 }
 0xb59   :  { %v7667_v8 = vpop.f32.mrb[185].mxu0 }
 0xb5a   :  { %v4753_v10 = vpop.f32.mrb[186].mxu0  ;;  %v11240_v55 = vpop.f32.mrb[168].mxu1 }
 0xb5b   :  { %v5118_v23 = vpack.c.bf16 %v4753_v10, %v4750_v63  ;;  %v7668_v47 = vpop.f32.mrb[187].mxu0  ;;  %v7741_v45 = vpop.f32.mrb[169].mxu1 }
 0xb5c   :  { %v11242_v53 = vpop.f32.mrb[170].mxu1 }
 0xb5d   :  { %7770 = vmatmul.mubr.msk.bf16.gmra.mrb[144].mxu0 %vm272_vm2, %v5118_v23  ;;  %v5312_v29 = vpack.c.bf16 %v11242_v53, %v11240_v55  ;;  %v7742_v27 = vpop.f32.mrb[171].mxu1 }
 0xb5e   :  { %7773 = vmatprep.mubr.msk.bf16.mxu0 %vm272_vm2, %v5119_v42 }
 0xb60   :  { %v11251_v15 = vpop.f32.mrb[188].mxu0 }
 0xb61   :  { %v7671_v58 = vpop.f32.mrb[189].mxu0 }
 0xb62   :  { %v11253_v26 = vpop.f32.mrb[190].mxu0  ;;  %v11263_v19 = vpop.f32.mrb[172].mxu1 }
 0xb63   :  { %v5307_v31 = vpack.c.bf16 %v11253_v26, %v11251_v15  ;;  %v7672_v30 = vpop.f32.mrb[191].mxu0  ;;  %v7745_v42 = vpop.f32.mrb[173].mxu1 }
 0xb64   :  { %v11265_v62 = vpop.f32.mrb[174].mxu1 }
 0xb65   :  { %v5501_v12 = vpack.c.bf16 %v11265_v62, %v11263_v19  ;;  %v7746_v17 = vpop.f32.mrb[175].mxu1 }
 0xb68   :  { %v11257_v59 = vpop.f32.mrb[192].mxu0 }
 0xb69   :  { %v7675_v60 = vpop.f32.mrb[193].mxu0 }
 0xb6a   :  { %v11259_v61 = vpop.f32.mrb[194].mxu0 }
 0xb6b   :  { %v5496_v28 = vpack.c.bf16 %v11259_v61, %v11257_v59  ;;  %v7676_v22 = vpop.f32.mrb[195].mxu0 }
 0xb70   :  { %v4864_v57 = vpop.f32.mrb[196].mxu0 }
 0xb71   :  { %v7695_v11 = vpop.f32.mrb[197].mxu0 }
 0xb72   :  { %v4867_v14 = vpop.f32.mrb[198].mxu0 }
 0xb73   :  { %v5120_v21 = vpack.c.bf16 %v4867_v14, %v4864_v57  ;;  %v7696_v63 = vpop.f32.mrb[199].mxu0 }
 0xb75   :  { %7774 = vmatmul.mubr.msk.bf16.gmra.mrb[148].mxu0 %vm272_vm2, %v5120_v21 }
 0xb76   :  { %7777 = vmatprep.mubr.msk.bf16.mxu0 %vm272_vm2, %v5121_v44 }
 0xb78   :  { %v4872_v8 = vpop.f32.mrb[200].mxu0 }
 0xb79   :  { %v7699_v10 = vpop.f32.mrb[201].mxu0 }
 0xb7a   :  { %v4875_v23 = vpop.f32.mrb[202].mxu0 }
 0xb7b   :  { %v5309_v47 = vpack.c.bf16 %v4875_v23, %v4872_v8  ;;  %v7700_v45 = vpop.f32.mrb[203].mxu0 }
 0xb80   :  { %v4880_v27 = vpop.f32.mrb[204].mxu0 }
 0xb81   :  { %v7703_v58 = vpop.f32.mrb[205].mxu0 }
 0xb82   :  { %v4883_v30 = vpop.f32.mrb[206].mxu0 }
 0xb83   :  { %v5498_v60 = vpack.c.bf16 %v4883_v30, %v4880_v27  ;;  %v7704_v22 = vpop.f32.mrb[207].mxu0 }
 0xb88   :  { %v4978_v42 = vpop.f32.mrb[208].mxu0 }
 0xb89   :  { %v7723_v57 = vpop.f32.mrb[209].mxu0 }
 0xb8a   :  { %v4981_v17 = vpop.f32.mrb[210].mxu0 }
 0xb8b   :  { %v5122_v11 = vpack.c.bf16 %v4981_v17, %v4978_v42  ;;  %v7724_v14 = vpop.f32.mrb[211].mxu0 }
 0xb8c   :  { %v8345_v14 = vld [vmem:[%s11871_s12 + $0x2c] ss:$0 sps:$4 sm:$0x11]  }
 0xb8d   :  { %7778 = vmatmul.mubr.msk.bf16.gmra.mrb[152].mxu0 %vm272_vm2, %v5122_v11  ;;  %v5547_v4 = vsel %vm315_vm0, %v8345_v14, 0 }
 0xb8e   :  { %7781 = vmatprep.mubr.msk.bf16.mxu0 %vm272_vm2, %v5123_v16 }
 0xb90   :  { %v4986_v49 = vpop.f32.mrb[212].mxu0 }
 0xb91   :  { %v7727_v56 = vpop.f32.mrb[213].mxu0 }
 0xb92   :  { %v4989_v44 = vpop.f32.mrb[214].mxu0 }
 0xb93   :  { %v5311_v21 = vpack.c.bf16 %v4989_v44, %v4986_v49  ;;  %v7728_v63 = vpop.f32.mrb[215].mxu0 }
 0xb98   :  { %v4994_v8 = vpop.f32.mrb[216].mxu0 }
 0xb99   :  { %v7731_v10 = vpop.f32.mrb[217].mxu0 }
 0xb9a   :  { %v4997_v23 = vpop.f32.mrb[218].mxu0 }
 0xb9b   :  { %v5500_v45 = vpack.c.bf16 %v4997_v23, %v4994_v8  ;;  %v7732_v27 = vpop.f32.mrb[219].mxu0 }
 0xba0   :  { %v5092_v58 = vpop.f32.mrb[220].mxu0 }
 0xba1   :  { %v7751_v30 = vpop.f32.mrb[221].mxu0 }
 0xba2   :  { %v5095_v22 = vpop.f32.mrb[222].mxu0 }
 0xba3   :  { %v5124_v57 = vpack.c.bf16 %v5095_v22, %v5092_v58  ;;  %v7752_v42 = vpop.f32.mrb[223].mxu0 }
 0xba5   :  { %7782 = vmatmul.mubr.msk.bf16.gmra.mrb[156].mxu0 %vm272_vm2, %v5124_v57 }
 0xba6   :  { %7789 = vmatprep.mubr.msk.bf16.mxu0 %vm272_vm2, %v5304_v2 }
 0xba8   :  { %v5100_v16 = vpop.f32.mrb[224].mxu0 }
 0xba9   :  { %v7755_v17 = vpop.f32.mrb[225].mxu0 }
 0xbaa   :  { %v5103_v11 = vpop.f32.mrb[226].mxu0 }
 0xbab   :  { %v5313_v49 = vpack.c.bf16 %v5103_v11, %v5100_v16  ;;  %v7756_v56 = vpop.f32.mrb[227].mxu0 }
 0xbad   :  { %7790 = vmatmul.mubr.msk.bf16.vlgmr.msra.gmra.mrb[140].mxu0 %vm272_vm2, %v5305_v48 }
 0xbae   :  { %7810 = vmatpush3.bf16.msra.mxu0 %v11219_v13  ;;  %7793 = vmatprep.mubr.msk.bf16.mxu0 %vm272_vm2, %v5306_v18  ;;  %v11354_v18 = vld [vmem:[%s11873_s13] ss:$0 sm:$0xff] }
 0xbaf   :  { %8079 = vmatprep.subr.msk.bf16.mxu0 %vm315_vm0, %v8345_v14 }
 0xbb0   :  { %v5108_v52 = vpop.f32.mrb[228].mxu0 }
 0xbb1   :  { %v7759_v2 = vpop.f32.mrb[229].mxu0 }
 0xbb2   :  { %7812 = vmatpush3.bf16.msra.mxu0 %v5547_v4  ;;  %v5111_v44 = vpop.f32.mrb[230].mxu0 }
 0xbb3   :  { %v5502_v63 = vpack.c.bf16 %v5111_v44, %v5108_v52  ;;  %v7760_v8 = vpop.f32.mrb[231].mxu0 }
 0xbb5   :  { %7794 = vmatmul.mubr.msk.bf16.gmra.mrb[144].mxu0 %vm272_vm2, %v5307_v31 }
 0xbb6   :  { %7797 = vmatprep.mubr.msk.bf16.mxu0 %vm272_vm2, %v5308_v36 }
 0xbbd   :  { %7798 = vmatmul.mubr.msk.bf16.gmra.mrb[148].mxu0 %vm272_vm2, %v5309_v47 }
 0xbbe   :  { %7801 = vmatprep.mubr.msk.bf16.mxu0 %vm272_vm2, %v5310_v6 }
 0xbc5   :  { %7802 = vmatmul.mubr.msk.bf16.gmra.mrb[152].mxu0 %vm272_vm2, %v5311_v21 }
 0xbc6   :  { %7805 = vmatprep.mubr.msk.bf16.mxu0 %vm272_vm2, %v5312_v29 }
 0xbcd   :  { %7806 = vmatmul.mubr.msk.bf16.gmra.mrb[156].mxu0 %vm272_vm2, %v5313_v49 }
 0xbce   :  { %7813 = vmatprep.mubr.msk.bf16.mxu0 %vm272_vm2, %v5493_v24 }
 0xbd5   :  { %7814 = vmatmul.mubr.msk.bf16.vlgmr.msra.gmra.mrb[140].mxu0 %vm272_vm2, %v5494_v33 }
 0xbd6   :  { %7817 = vmatprep.mubr.msk.bf16.mxu0 %vm272_vm2, %v5495_v50 }
 0xbdd   :  { %7818 = vmatmul.mubr.msk.bf16.gmra.mrb[144].mxu0 %vm272_vm2, %v5496_v28 }
 0xbde   :  { %7821 = vmatprep.mubr.msk.bf16.mxu0 %vm272_vm2, %v5497_v20 }
 0xbe5   :  { %7822 = vmatmul.mubr.msk.bf16.gmra.mrb[148].mxu0 %vm272_vm2, %v5498_v60 }
 0xbe6   :  { %7825 = vmatprep.mubr.msk.bf16.mxu0 %vm272_vm2, %v5499_v37 }
 0xbed   :  { %7826 = vmatmul.mubr.msk.bf16.gmra.mrb[152].mxu0 %vm272_vm2, %v5500_v45 }
 0xbee   :  { %7829 = vmatprep.mubr.msk.bf16.mxu0 %vm272_vm2, %v5501_v12 }
 0xbf5   :  { %7830 = vmatmul.mubr.msk.bf16.gmra.mrb[156].mxu0 %vm272_vm2, %v5502_v63 }
 0xca8   :  { %v7815_v40 = vpop.f32.mrb[140].mxu0 }
 0xca9   :  { %v11360_v50 = vadd.f32 %v7815_v40, %v11354_v18  ;;  %v5583_v1 = vpop.f32.mrb[141].mxu0 }
 0xcaa   :  { %v11365_v36 = vadd.f32 %v11354_v18, %v5583_v1  ;;  %v7816_v7 = vpop.f32.mrb[142].mxu0 }
 0xcab   :  { %v11368_v25 = vadd.f32 %v7816_v7, %v11354_v18  ;;  %v5586_v20 = vpop.f32.mrb[143].mxu0  ;;  %v5684_v34 = vmax.f32 %v11360_v50, 0.0 }
 0xcac   :  { %v11371_v9 = vadd.f32 %v11354_v18, %v5586_v20  ;;  %v5682_v7 = vmax.f32 %v11365_v36, 0.0 }
 0xcad   :  { %v5685_v24 = vmax.f32 %v11368_v25, 0.0 }
 0xcae   :  { %v5683_v20 = vmax.f32 %v11371_v9, 0.0 }
 0xcaf   :  { %v8275_v32 = vpack.i.bf16 %v5685_v24, %v5684_v34 }
 0xcb0   :  { %v7819_v51 = vpop.f32.mrb[144].mxu0 }
 0xcb1   :  { %v11380_v6 = vadd.f32 %v7819_v51, %v11354_v18  ;;  %8276 = vrot.lane.b32.xlu0 %v8275_v32, %s8715_s5  ;;  %v5599_v13 = vpop.f32.mrb[145].mxu0 }
 0xcb2   :  { %v11384_v38 = vadd.f32 %v11354_v18, %v5599_v13  ;;  %v7820_v0 = vpop.f32.mrb[146].mxu0 }
 0xcb3   :  { %v11387_v41 = vadd.f32 %v7820_v0, %v11354_v18  ;;  %v5602_v48 = vpop.f32.mrb[147].mxu0  ;;  %v5688_v37 = vmax.f32 %v11380_v6, 0.0 }
 0xcb4   :  { %v11390_v54 = vadd.f32 %v11354_v18, %v5602_v48  ;;  %v5686_v43 = vmax.f32 %v11384_v38, 0.0 }
 0xcb5   :  { %v5689_v39 = vmax.f32 %v11387_v41, 0.0 }
 0xcb6   :  { %v5687_v33 = vmax.f32 %v11390_v54, 0.0 }
 0xcb7   :  { %v8285_v55 = vpack.i.bf16 %v5689_v39, %v5688_v37 }
 0xcb8   :  { %v8280_v53 = vpack.i.bf16 %v5687_v33, %v5686_v43  ;;  %v7823_v29 = vpop.f32.mrb[148].mxu0 }
 0xcb9   :  { %v11405_v15 = vadd.f32 %v7823_v29, %v11354_v18  ;;  %8286 = vrot.lane.b32.xlu0 %v8285_v55, %s8715_s5  ;;  %v5615_v26 = vpop.f32.mrb[149].mxu0 }
 0xcba   :  { %v7914_v31 = vadd.f32 %v11354_v18, %v5615_v26  ;;  %8281 = vrot.lane.b32.xlu1 %v8280_v53, %s8715_s5  ;;  %v7824_v59 = vpop.f32.mrb[150].mxu0 }
 0xcbb   :  { %v11411_v61 = vadd.f32 %v7824_v59, %v11354_v18  ;;  %v5618_v28 = vpop.f32.mrb[151].mxu0 }
 0xcbc   :  { %v7916_v19 = vadd.f32 %v11354_v18, %v5618_v28  ;;  %v5690_v62 = vmax.f32 %v7914_v31, 0.0 }
 0xcbe   :  { %v5691_v12 = vmax.f32 %v7916_v19, 0.0 }
 0xcc0   :  { %v8290_v47 = vpack.i.bf16 %v5691_v12, %v5690_v62  ;;  %v7827_v60 = vpop.f32.mrb[152].mxu0 }
 0xcc1   :  { %v11415_v21 = vadd.f32 %v7827_v60, %v11354_v18  ;;  %v5631_v10 = vpop.f32.mrb[153].mxu0  ;;  %v5692_v60 = vmax.f32 %v11405_v15, 0.0 }
 0xcc2   :  { %v11418_v23 = vadd.f32 %v11354_v18, %v5631_v10  ;;  %8291 = vrot.lane.b32.xlu1 %v8290_v47, %s8715_s5  ;;  %v7828_v45 = vpop.f32.mrb[154].mxu0  ;;  %v5693_v10 = vmax.f32 %v11411_v61, 0.0 }
 0xcc3   :  { %v11422_v27 = vadd.f32 %v7828_v45, %v11354_v18  ;;  %v5634_v58 = vpop.f32.mrb[155].mxu0  ;;  %v5696_v22 = vmax.f32 %v11415_v21, 0.0 }
 0xcc4   :  { %v11425_v30 = vadd.f32 %v11354_v18, %v5634_v58  ;;  %v5694_v42 = vmax.f32 %v11418_v23, 0.0 }
 0xcc5   :  { %v5697_v57 = vmax.f32 %v11422_v27, 0.0 }
 0xcc6   :  { %v5695_v16 = vmax.f32 %v11425_v30, 0.0 }
 0xcc7   :  { %v8300_v17 = vpack.i.bf16 %v5697_v57, %v5696_v22 }
 0xcc8   :  { %v8295_v11 = vpack.i.bf16 %v5695_v16, %v5694_v42  ;;  %v7831_v14 = vpop.f32.mrb[156].mxu0 }
 0xcc9   :  { %v7921_v49 = vadd.f32 %v7831_v14, %v11354_v18  ;;  %8301 = vrot.lane.b32.xlu1 %v8300_v17, %s8715_s5  ;;  %v5647_v56 = vpop.f32.mrb[157].mxu0 }
 0xcca   :  { %v11438_v4 = vadd.f32 %v11354_v18, %v5647_v56  ;;  %8296 = vrot.lane.b32.xlu0 %v8295_v11, %s8715_s5  ;;  %v7832_v52 = vpop.f32.mrb[158].mxu0 }
 0xccb   :  { %v7923_v2 = vadd.f32 %v7832_v52, %v11354_v18  ;;  %v5650_v44 = vpop.f32.mrb[159].mxu0  ;;  %v5700_v8 = vmax.f32 %v7921_v49, 0.0 }
 0xccc   :  { %v11443_v63 = vadd.f32 %v11354_v18, %v5650_v44  ;;  %v5698_v35 = vmax.f32 %v11438_v4, 0.0  ;;  %v11496_v44 = vld [vmem:[%s11874_s15] ss:$0 sm:$0xff]  ;;  %s8720_s15 = smov 119  }
 0xccd   :  { %v5701_v5 = vmax.f32 %v7923_v2, 0.0 }
 0xcce   :  { %v5699_v3 = vmax.f32 %v11443_v63, 0.0 }
 0xccf   :  { %v8310_v40 = vpack.i.bf16 %v5701_v5, %v5700_v8 }
 0xcd0   :  { %v8305_v1 = vpack.i.bf16 %v5699_v3, %v5698_v35 }
 0xcd1   :  { %8311 = vrot.lane.b32.xlu1 %v8310_v40, %s8715_s5 }
 0xcd2   :  { %8306 = vrot.lane.b32.xlu0 %v8305_v1, %s8715_s5 }
 0xd23   :  { %v8277_v46 = vpop.permute.xlu0 %8276 }
 0xd24   :  { %v8279_v32 = vunpack.i.h.bf16 %v8277_v46  ;;  %v8278_v18 = vunpack.i.l.bf16 %v8277_v46 }
 0xd26   :  { %v5766_v51 = vsel %vm272_vm2, %v5682_v7, %v8278_v18  ;;  %v5767_v13 = vsel %vm272_vm2, %v5683_v20, %v8279_v32 }
 0xd27   :  { %v5782_v0 = vpack.c.bf16 %v5767_v13, %v5766_v51 }
 0xd29   :  { %7839 = vmatprep.mubr.msk.bf16.mxu1 %vm2914_vm6, %v5782_v0 }
 0xd2b   :  { %v8287_v48 = vpop.permute.xlu0 %8286 }
 0xd2c   :  { %v8289_v55 = vunpack.i.h.bf16 %v8287_v48  ;;  %v8288_v53 = vunpack.i.l.bf16 %v8287_v48  ;;  %v8282_v29 = vpop.permute.xlu1 %8281 }
 0xd2d   :  { %v8284_v26 = vunpack.i.h.bf16 %v8282_v29  ;;  %v8283_v31 = vunpack.i.l.bf16 %v8282_v29 }
 0xd2e   :  { %v5770_v36 = vsel %vm272_vm2, %v5686_v43, %v8288_v53  ;;  %v5771_v9 = vsel %vm272_vm2, %v5687_v33, %v8289_v55 }
 0xd2f   :  { %v5769_v59 = vsel %vm272_vm2, %v5685_v24, %v8284_v26  ;;  %v5768_v28 = vsel %vm272_vm2, %v5684_v34, %v8283_v31  ;;  %v5784_v62 = vpack.c.bf16 %v5771_v9, %v5770_v36 }
 0xd30   :  { %v5783_v19 = vpack.c.bf16 %v5769_v59, %v5768_v28 }
 0xd32   :  { %7840 = vmatmul.mubr.msk.bf16.vlgmr.msra.gmra.mrb[176].mxu1 %vm2914_vm6, %v5783_v19 }
 0xd33   :  { %7843 = vmatprep.mubr.msk.bf16.mxu1 %vm2914_vm6, %v5784_v62 }
 0xd34   :  { %v8292_v38 = vpop.permute.xlu1 %8291 }
 0xd35   :  { %v8294_v43 = vunpack.i.h.bf16 %v8292_v38  ;;  %v8293_v12 = vunpack.i.l.bf16 %v8292_v38 }
 0xd37   :  { %v5773_v54 = vsel %vm272_vm2, %v5689_v39, %v8294_v43  ;;  %v5772_v25 = vsel %vm272_vm2, %v5688_v37, %v8293_v12 }
 0xd38   :  { %v5785_v50 = vpack.c.bf16 %v5773_v54, %v5772_v25 }
 0xd3a   :  { %7844 = vmatmul.mubr.msk.bf16.gmra.mrb[180].mxu1 %vm2914_vm6, %v5785_v50 }
 0xd3b   :  { %v8302_v34 = vpop.permute.xlu1 %8301 }
 0xd3c   :  { %v8304_v24 = vunpack.i.h.bf16 %v8302_v34  ;;  %v8303_v33 = vunpack.i.l.bf16 %v8302_v34  ;;  %v8297_v47 = vpop.permute.xlu0 %8296 }
 0xd3d   :  { %v8299_v23 = vunpack.i.h.bf16 %v8297_v47  ;;  %v8298_v45 = vunpack.i.l.bf16 %v8297_v47 }
 0xd3e   :  { %v5776_v41 = vsel %vm272_vm2, %v5694_v42, %v8303_v33  ;;  %v5777_v39 = vsel %vm272_vm2, %v5695_v16, %v8304_v24 }
 0xd3f   :  { %v5775_v6 = vsel %vm272_vm2, %v5693_v10, %v8299_v23  ;;  %v5774_v37 = vsel %vm272_vm2, %v5692_v60, %v8298_v45  ;;  %v5787_v30 = vpack.c.bf16 %v5777_v39, %v5776_v41 }
 0xd40   :  { %v5786_v58 = vpack.c.bf16 %v5775_v6, %v5774_v37 }
 0xd42   :  { %7847 = vmatprep.mubr.msk.bf16.mxu1 %vm2914_vm6, %v5786_v58 }
 0xd43   :  { %7848 = vmatmul.mubr.msk.bf16.gmra.mrb[184].mxu1 %vm2914_vm6, %v5787_v30  ;;  %v8312_v17 = vpop.permute.xlu1 %8311 }
 0xd44   :  { %v8314_v15 = vunpack.i.h.bf16 %v8312_v17  ;;  %v8313_v11 = vunpack.i.l.bf16 %v8312_v17  ;;  %v8307_v61 = vpop.permute.xlu0 %8306 }
 0xd45   :  { %v8309_v14 = vunpack.i.h.bf16 %v8307_v61  ;;  %v8308_v49 = vunpack.i.l.bf16 %v8307_v61 }
 0xd46   :  { %v5780_v42 = vsel %vm272_vm2, %v5698_v35, %v8313_v11  ;;  %v5781_v16 = vsel %vm272_vm2, %v5699_v3, %v8314_v15 }
 0xd47   :  { %v5779_v56 = vsel %vm272_vm2, %v5697_v57, %v8309_v14  ;;  %v5778_v4 = vsel %vm272_vm2, %v5696_v22, %v8308_v49  ;;  %v5789_v2 = vpack.c.bf16 %v5781_v16, %v5780_v42 }
 0xd48   :  { %v5788_v52 = vpack.c.bf16 %v5779_v56, %v5778_v4 }
 0xd4a   :  { %7851 = vmatprep.mubr.msk.bf16.mxu1 %vm2914_vm6, %v5788_v52 }
 0xd4b   :  { %7852 = vmatmul.mubr.msk.bf16.gmra.mrb[188].mxu1 %vm2914_vm6, %v5789_v2 }
 0xe05   :  { %v7841_v63 = vpop.f32.mrb[176].mxu1 }
 0xe06   :  { %v11499_v27 = vadd.f32 %v7841_v63, %v11496_v44  ;;  %v5878_v57 = vpop.f32.mrb[177].mxu1 }
 0xe07   :  { %v11502_v21 = vadd.f32 %v11496_v44, %v5878_v57  ;;  %v7842_v22 = vpop.f32.mrb[178].mxu1 }
 0xe08   :  { %v6886_v8 = vmul.f32 -1.442695, %v11499_v27  ;;  %v11506_v5 = vadd.f32 %v7842_v22, %v11496_v44  ;;  %v5881_v35 = vpop.f32.mrb[179].mxu1  ;;  %6137 = vrot.lane.b32.xlu0 %v11499_v27, %s8712_s1 }
 0xe09   :  { %v11511_v3 = vadd.f32 %v11496_v44, %v5881_v35  ;;  %v6884_v40 = vmul.f32 -1.442695, %v11502_v21 }
 0xe0a   :  { %8642 = vpow2.f32 %v6886_v8  ;;  %v6887_v1 = vmul.f32 -1.442695, %v11506_v5  ;;  %6139 = vrot.lane.b32.xlu1 %v11506_v5, %s8712_s1 }
 0xe0b   :  { %v6885_v46 = vmul.f32 -1.442695, %v11511_v3 }
 0xe0c   :  { %8644 = vpow2.f32 %v6887_v1  ;;  %6133 = vrot.lane.b32.xlu0 %v11502_v21, %s8712_s1 }
 0xe0d   :  { %v7845_v7 = vpop.f32.mrb[180].mxu1  ;;  %8646 = vpow2.f32 %v6884_v40 }
 0xe0e   :  { %v11521_v20 = vadd.f32 %v7845_v7, %v11496_v44  ;;  %v5894_v32 = vpop.f32.mrb[181].mxu1  ;;  %6135 = vrot.lane.b32.xlu1 %v11511_v3, %s8712_s1  ;;  %8648 = vpow2.f32 %v6885_v46 }
 0xe0f   :  { %v11526_v18 = vadd.f32 %v11496_v44, %v5894_v32  ;;  %v7846_v51 = vpop.f32.mrb[182].mxu1 }
 0xe10   :  { %v6890_v13 = vmul.f32 -1.442695, %v11521_v20  ;;  %v11530_v0 = vadd.f32 %v7846_v51, %v11496_v44  ;;  %v5897_v48 = vpop.f32.mrb[183].mxu1  ;;  %6145 = vrot.lane.b32.xlu0 %v11521_v20, %s8712_s1 }
 0xe11   :  { %v11535_v55 = vadd.f32 %v11496_v44, %v5897_v48  ;;  %v6888_v53 = vmul.f32 -1.442695, %v11526_v18 }
 0xe12   :  { %8650 = vpow2.f32 %v6890_v13  ;;  %v6891_v29 = vmul.f32 -1.442695, %v11530_v0  ;;  %6147 = vrot.lane.b32.xlu1 %v11530_v0, %s8712_s1 }
 0xe13   :  { %v6889_v31 = vmul.f32 -1.442695, %v11535_v55 }
 0xe14   :  { %v8643_v26 = vpop.eup %8642  ;;  %8652 = vpow2.f32 %v6891_v29  ;;  %6141 = vrot.lane.b32.xlu0 %v11526_v18, %s8712_s1 }
 0xe15   :  { %v5991_v36 = vadd.f32 1.0, %v8643_v26  ;;  %8654 = vpow2.f32 %v6888_v53 }
 0xe16   :  { %v8645_v9 = vpop.eup %8644  ;;  %v7849_v59 = vpop.f32.mrb[184].mxu1  ;;  %6143 = vrot.lane.b32.xlu1 %v11535_v55, %s8712_s1 }
 0xe17   :  { %8656 = vrcp.f32 %v5991_v36  ;;  %v5992_v28 = vadd.f32 1.0, %v8645_v9  ;;  %v11547_v19 = vadd.f32 %v7849_v59, %v11496_v44  ;;  %v5910_v62 = vpop.f32.mrb[185].mxu1  ;;  %v8647_v38 = vpop.eup %8646 }
 0xe18   :  { %8658 = vpow2.f32 %v6889_v31  ;;  %v11550_v43 = vadd.f32 %v11496_v44, %v5910_v62  ;;  %v7850_v12 = vpop.f32.mrb[186].mxu1  ;;  %v8649_v34 = vpop.eup %8648  ;;  %v5989_v47 = vadd.f32 1.0, %v8647_v38 }
 0xe19   :  { %8660 = vrcp.f32 %v5992_v28  ;;  %v6894_v54 = vmul.f32 -1.442695, %v11547_v19  ;;  %v11554_v25 = vadd.f32 %v7850_v12, %v11496_v44  ;;  %v5913_v50 = vpop.f32.mrb[187].mxu1  ;;  %6153 = vrot.lane.b32.xlu0 %v11547_v19, %s8712_s1  ;;  %v5990_v45 = vadd.f32 1.0, %v8649_v34 }
 0xe1a   :  { %v6892_v24 = vmul.f32 -1.442695, %v11550_v43  ;;  %v11560_v33 = vadd.f32 %v11496_v44, %v5913_v50 }
 0xe1b   :  { %8662 = vpow2.f32 %v6894_v54  ;;  %v6895_v60 = vmul.f32 -1.442695, %v11554_v25  ;;  %6155 = vrot.lane.b32.xlu1 %v11554_v25, %s8712_s1 }
 0xe1c   :  { %v8651_v10 = vpop.eup %8650  ;;  %v6893_v23 = vmul.f32 -1.442695, %v11560_v33 }
 0xe1d   :  { %8664 = vpow2.f32 %v6895_v60  ;;  %6149 = vrot.lane.b32.xlu0 %v11550_v43, %s8712_s1  ;;  %v5995_v39 = vadd.f32 1.0, %v8651_v10 }
 0xe1e   :  { %v8653_v41 = vpop.eup %8652  ;;  %8666 = vpow2.f32 %v6892_v24  ;;  %v7853_v6 = vpop.f32.mrb[188].mxu1 }
 0xe1f   :  { %8668 = vrcp.f32 %v5989_v47  ;;  %v11569_v37 = vadd.f32 %v7853_v6, %v11496_v44  ;;  %6151 = vrot.lane.b32.xlu1 %v11560_v33, %s8712_s1  ;;  %v5926_v58 = vpop.f32.mrb[189].mxu1  ;;  %v8655_v30 = vpop.eup %8654  ;;  %v5996_v17 = vadd.f32 1.0, %v8653_v41 }
 0xe20   :  { %8670 = vpow2.f32 %v6893_v23  ;;  %v11574_v15 = vadd.f32 %v11496_v44, %v5926_v58  ;;  %v7854_v11 = vpop.f32.mrb[190].mxu1  ;;  %v5993_v2 = vadd.f32 1.0, %v8655_v30 }
 0xe21   :  { %v8657_v61 = vpop.eup %8656  ;;  %8672 = vrcp.f32 %v5990_v45  ;;  %v6898_v14 = vmul.f32 -1.442695, %v11569_v37  ;;  %v11578_v49 = vadd.f32 %v7854_v11, %v11496_v44  ;;  %v5929_v42 = vpop.f32.mrb[191].mxu1 }
 0xe22   :  { %v8659_v16 = vpop.eup %8658  ;;  %8674 = vrcp.f32 %v5995_v39  ;;  %v6896_v56 = vmul.f32 -1.442695, %v11574_v15  ;;  %v11582_v4 = vadd.f32 %v11496_v44, %v5929_v42  ;;  %6057 = vrot.lane.b32.xlu0 %v8657_v61, %s8720_s15 }
 0xe23   :  { %v8661_v52 = vpop.eup %8660  ;;  %8676 = vpow2.f32 %v6898_v14  ;;  %v6899_v63 = vmul.f32 -1.442695, %v11578_v49  ;;  %v5994_v8 = vadd.f32 1.0, %v8659_v16 }
 0xe24   :  { %8678 = vrcp.f32 %v5996_v17  ;;  %v6897_v57 = vmul.f32 -1.442695, %v11582_v4  ;;  %6059 = vrot.lane.b32.xlu1 %v8661_v52, %s8720_s15 }
 0xe25   :  { %v8663_v22 = vpop.eup %8662  ;;  %8680 = vpow2.f32 %v6899_v63 }
 0xe26   :  { %8682 = vpow2.f32 %v6896_v56  ;;  %6157 = vrot.lane.b32.xlu0 %v11574_v15, %s8712_s1  ;;  %v5999_v35 = vadd.f32 1.0, %v8663_v22 }
 0xe27   :  { %v8665_v44 = vpop.eup %8664  ;;  %8684 = vrcp.f32 %v5993_v2 }
 0xe28   :  { %v8667_v40 = vpop.eup %8666  ;;  %8686 = vpow2.f32 %v6897_v57  ;;  %6159 = vrot.lane.b32.xlu1 %v11582_v4, %s8712_s1  ;;  %v6000_v46 = vadd.f32 1.0, %v8665_v44 }
 0xe29   :  { %v8669_v1 = vpop.eup %8668  ;;  %8688 = vrcp.f32 %v5994_v8  ;;  %v5997_v51 = vadd.f32 1.0, %v8667_v40 }
 0xe2a   :  { %v8671_v7 = vpop.eup %8670  ;;  %6053 = vrot.lane.b32.xlu0 %v8669_v1, %s8720_s15  ;;  %8690 = vrcp.f32 %v5999_v35 }
 0xe2b   :  { %v8673_v32 = vpop.eup %8672  ;;  %8692 = vrcp.f32 %v6000_v46  ;;  %v5998_v53 = vadd.f32 1.0, %v8671_v7 }
 0xe2c   :  { %v8675_v13 = vpop.eup %8674  ;;  %6055 = vrot.lane.b32.xlu1 %v8673_v32, %s8720_s15  ;;  %8694 = vrcp.f32 %v5997_v51 }
 0xe2d   :  { %v8677_v48 = vpop.eup %8676  ;;  %8696 = vrcp.f32 %v5998_v53 }
 0xe2e   :  { %v8679_v29 = vpop.eup %8678  ;;  %6065 = vrot.lane.b32.xlu0 %v8675_v13, %s8720_s15  ;;  %v6003_v31 = vadd.f32 1.0, %v8677_v48 }
 0xe2f   :  { %v8681_v26 = vpop.eup %8680 }
 0xe30   :  { %v8683_v36 = vpop.eup %8682  ;;  %6067 = vrot.lane.b32.xlu1 %v8679_v29, %s8720_s15  ;;  %v6004_v59 = vadd.f32 1.0, %v8681_v26  ;;  %8698 = vrcp.f32 %v6003_v31 }
 0xe31   :  { %v8685_v9 = vpop.eup %8684  ;;  %v6001_v38 = vadd.f32 1.0, %v8683_v36 }
 0xe32   :  { %v8687_v28 = vpop.eup %8686  ;;  %6061 = vrot.lane.b32.xlu0 %v8685_v9, %s8720_s15  ;;  %8700 = vrcp.f32 %v6004_v59 }
 0xe33   :  { %v8689_v62 = vpop.eup %8688  ;;  %v6002_v54 = vadd.f32 1.0, %v8687_v28  ;;  %8702 = vrcp.f32 %v6001_v38 }
 0xe34   :  { %6063 = vrot.lane.b32.xlu1 %v8689_v62, %s8720_s15  ;;  %v8691_v12 = vpop.eup %8690 }
 0xe35   :  { %v8693_v50 = vpop.eup %8692  ;;  %8704 = vrcp.f32 %v6002_v54 }
 0xe36   :  { %6073 = vrot.lane.b32.xlu0 %v8691_v12, %s8720_s15  ;;  %v8695_v34 = vpop.eup %8694 }
 0xe37   :  { %v8697_v24 = vpop.eup %8696 }
 0xe38   :  { %6075 = vrot.lane.b32.xlu1 %v8693_v50, %s8720_s15 }
 0xe3a   :  { %6069 = vrot.lane.b32.xlu0 %v8695_v34, %s8720_s15  ;;  %v8699_v47 = vpop.eup %8698 }
 0xe3c   :  { %6071 = vrot.lane.b32.xlu1 %v8697_v24, %s8720_s15  ;;  %v8701_v60 = vpop.eup %8700 }
 0xe3d   :  { %v8703_v10 = vpop.eup %8702 }
 0xe3e   :  { %6081 = vrot.lane.b32.xlu0 %v8699_v47, %s8720_s15 }
 0xe3f   :  { %v8705_v23 = vpop.eup %8704 }
 0xe40   :  { %6083 = vrot.lane.b32.xlu1 %v8701_v60, %s8720_s15 }
 0xe42   :  { %6077 = vrot.lane.b32.xlu0 %v8703_v10, %s8720_s15 }
 0xe44   :  { %6079 = vrot.lane.b32.xlu1 %v8705_v23, %s8720_s15 }
 0xe46   :  { %6161 = vrot.lane.b32.xlu0 %v11569_v37, %s8712_s1 }
 0xe48   :  { %6163 = vrot.lane.b32.xlu1 %v11578_v49, %s8712_s1 }
 0xe7a   :  { %v6138_v45 = vpop.permute.xlu0 %6137 }
 0xe7c   :  { %v6140_v41 = vpop.permute.xlu1 %6139 }
 0xe7e   :  { %v6134_v39 = vpop.permute.xlu0 %6133 }
 0xe80   :  { %v6136_v6 = vpop.permute.xlu1 %6135 }
 0xe82   :  { %v6146_v58 = vpop.permute.xlu0 %6145 }
 0xe84   :  { %v6148_v30 = vpop.permute.xlu1 %6147 }
 0xe86   :  { %v6142_v17 = vpop.permute.xlu0 %6141 }
 0xe88   :  { %v6144_v11 = vpop.permute.xlu1 %6143 }
 0xe8b   :  { %v6154_v61 = vpop.permute.xlu0 %6153 }
 0xe8d   :  { %v11610_v14 = vpop.permute.xlu1 %6155 }
 0xe8f   :  { %v11612_v42 = vpop.permute.xlu0 %6149 }
 0xe91   :  { %v11614_v16 = vpop.permute.xlu1 %6151 }
 0xe94   :  { %v6058_v56 = vpop.permute.xlu0 %6057 }
 0xe95   :  { %v6103_v63 = vmul.f32 %v6058_v56, %v11499_v27 }
 0xe96   :  { %v6060_v52 = vpop.permute.xlu1 %6059 }
 0xe97   :  { %v6104_v8 = vmul.f32 %v6060_v52, %v11506_v5  ;;  %v6183_v35 = vadd.f32 %v6138_v45, %v6103_v63 }
 0xe98   :  { %v11616_v2 = vpop.permute.xlu0 %6157 }
 0xe99   :  { %v6184_v32 = vadd.f32 %v6140_v41, %v6104_v8  ;;  %v11625_v13 = vmax.f32 %v6183_v35, 0.0 }
 0xe9a   :  { %v11619_v57 = vpop.permute.xlu1 %6159 }
 0xe9b   :  { %v11630_v26 = vmax.f32 %v6184_v32, 0.0  ;;  %v6249_v31 = vmul.f32 %v11625_v13, %v11625_v13 }
 0xe9c   :  { %v6054_v22 = vpop.permute.xlu0 %6053 }
 0xe9d   :  { %v6101_v44 = vmul.f32 %v6054_v22, %v11502_v21  ;;  %v6250_v12 = vmul.f32 %v11630_v26, %v11630_v26  ;;  %v6264_v34 = vsel %vm210_vm1, %v6249_v31, 0.0 }
 0xe9e   :  { %v6056_v40 = vpop.permute.xlu1 %6055 }
 0xe9f   :  { %v6181_v1 = vadd.f32 %v6134_v39, %v6101_v44  ;;  %v6102_v46 = vmul.f32 %v6056_v40, %v11511_v3 }
 0xea0   :  { %v6066_v7 = vpop.permute.xlu0 %6065 }
 0xea1   :  { %v6107_v51 = vmul.f32 %v6066_v7, %v11521_v20  ;;  %v6182_v48 = vadd.f32 %v6136_v6, %v6102_v46  ;;  %v11627_v53 = vmax.f32 %v6181_v1, 0.0 }
 0xea2   :  { %v6068_v27 = vpop.permute.xlu1 %6067 }
 0xea3   :  { %v6108_v29 = vmul.f32 %v6068_v27, %v11530_v0  ;;  %v6187_v21 = vadd.f32 %v6146_v58, %v6107_v51  ;;  %v11634_v3 = vmax.f32 %v6182_v48, 0.0  ;;  %v6247_v9 = vmul.f32 %v11627_v53, %v11627_v53 }
 0xea4   :  { %v6062_v5 = vpop.permute.xlu0 %6061  ;;  %v6214_v0 = vsel %vm210_vm1, %v11625_v13, 0.0  ;;  %v6213_v24 = vsel %vm210_vm1, %v11627_v53, 0.0 }
 0xea5   :  { %v6105_v36 = vmul.f32 %v6062_v5, %v11526_v18  ;;  %v6188_v59 = vadd.f32 %v6148_v30, %v6108_v29  ;;  %v11644_v54 = vmax.f32 %v6187_v21, 0.0  ;;  %v6263_v10 = vsel %vm210_vm1, %v6247_v9, 0.0 }
 0xea6   :  { %v6064_v20 = vpop.permute.xlu1 %6063  ;;  %v6230_v39 = vsel %vm210_vm1, %v11634_v3, 0.0  ;;  %v6265_v52 = vadd.f32 %v6264_v34, %v6263_v10 }
 0xea7   :  { %v6106_v28 = vmul.f32 %v6064_v20, %v11535_v55  ;;  %v6185_v62 = vadd.f32 %v6142_v17, %v6105_v36  ;;  %v6248_v55 = vmul.f32 %v11634_v3, %v11634_v3  ;;  %v11655_v23 = vmax.f32 %v6188_v59, 0.0 }
 0xea8   :  { %v6074_v38 = vpop.permute.xlu0 %6073  ;;  %v6281_v17 = vsel %vm210_vm1, %v6250_v12, 0.0  ;;  %v6253_v56 = vmul.f32 %v11644_v54, %v11644_v54 }
 0xea9   :  { %v6186_v50 = vadd.f32 %v6144_v11, %v6106_v28  ;;  %v6111_v18 = vmul.f32 %v6074_v38, %v11547_v19  ;;  %v11652_v47 = vmax.f32 %v6185_v62, 0.0  ;;  %v6231_v19 = vsel %vm210_vm1, %v11630_v26, 0.0 }
 0xeaa   :  { %v6076_v60 = vpop.permute.xlu1 %6075  ;;  %v6215_v11 = vadd.f32 %v6214_v0, %v6213_v24  ;;  %v6280_v63 = vsel %vm210_vm1, %v6248_v55, 0.0  ;;  %v6254_v35 = vmul.f32 %v11655_v23, %v11655_v23  ;;  %v6268_v29 = vsel %vm210_vm1, %v6253_v56, 0.0 }
 0xeab   :  { %v11657_v45 = vmax.f32 %v6186_v50, 0.0  ;;  %v6191_v41 = vadd.f32 %v6154_v61, %v6111_v18  ;;  %v6251_v6 = vmul.f32 %v11652_v47, %v11652_v47  ;;  %v6112_v58 = vmul.f32 %v6076_v60, %v11554_v25 }
 0xeac   :  { %v6070_v30 = vpop.permute.xlu0 %6069  ;;  %v6216_v61 = vsel %vm210_vm1, %v11652_v47, 0.0  ;;  %v6232_v25 = vadd.f32 %v6231_v19, %v6230_v39  ;;  %v6282_v27 = vadd.f32 %v6281_v17, %v6280_v63  ;;  %v6235_v21 = vsel %vm210_vm1, %v11655_v23, 0.0 }
 0xead   :  { %v6252_v22 = vmul.f32 %v11657_v45, %v11657_v45  ;;  %v6109_v8 = vmul.f32 %v6070_v30, %v11550_v43  ;;  %v6233_v40 = vsel %vm210_vm1, %v11657_v45, 0.0  ;;  %v11679_v1 = vmax.f32 %v6191_v41, 0.0 }
 0xeae   :  { %v6072_v44 = vpop.permute.xlu1 %6071  ;;  %v6217_v46 = vadd.f32 %v6216_v61, %v6215_v11  ;;  %v6266_v7 = vsel %vm210_vm1, %v6251_v6, 0.0  ;;  %v6192_v32 = vadd.f32 %v11610_v14, %v6112_v58  ;;  %v6218_v43 = vsel %vm210_vm1, %v11644_v54, 0.0 }
 0xeaf   :  { %v6189_v51 = vadd.f32 %v11612_v42, %v6109_v8  ;;  %v6110_v5 = vmul.f32 %v6072_v44, %v11560_v33  ;;  %v6234_v31 = vadd.f32 %v6233_v40, %v6232_v25  ;;  %v6283_v36 = vsel %vm210_vm1, %v6252_v22, 0.0 }
 0xeb0   :  { %v6082_v48 = vpop.permute.xlu0 %6081  ;;  %v6285_v42 = vsel %vm210_vm1, %v6254_v35, 0.0  ;;  %v6267_v9 = vadd.f32 %v6266_v7, %v6265_v52  ;;  %v6222_v59 = vsel %vm210_vm1, %v11679_v1, 0.0  ;;  %v11697_v0 = vmax.f32 %v6192_v32, 0.0 }
 0xeb1   :  { %v11691_v20 = vmax.f32 %v6189_v51, 0.0  ;;  %v6190_v28 = vadd.f32 %v11614_v16, %v6110_v5  ;;  %v6219_v33 = vadd.f32 %v6218_v43, %v6217_v46  ;;  %v6284_v50 = vadd.f32 %v6283_v36, %v6282_v27 }
 0xeb2   :  { %v6084_v14 = vpop.permute.xlu1 %6083  ;;  %v6257_v18 = vmul.f32 %v11679_v1, %v11679_v1  ;;  %v6236_v60 = vadd.f32 %v6235_v21, %v6234_v31  ;;  %v6115_v10 = vmul.f32 %v6082_v48, %v11569_v37  ;;  %v6269_v56 = vadd.f32 %v6268_v29, %v6267_v9 }
 0xeb3   :  { %v6220_v62 = vsel %vm210_vm1, %v11691_v20, 0.0  ;;  %v6255_v38 = vmul.f32 %v11691_v20, %v11691_v20  ;;  %v11705_v34 = vmax.f32 %v6190_v28, 0.0  ;;  %v6116_v17 = vmul.f32 %v6084_v14, %v11578_v49 }
 0xeb4   :  { %v6078_v12 = vpop.permute.xlu0 %6077  ;;  %v6221_v55 = vadd.f32 %v6220_v62, %v6219_v33  ;;  %v6286_v44 = vadd.f32 %v6285_v42, %v6284_v50  ;;  %v6272_v7 = vsel %vm210_vm1, %v6257_v18, 0.0 }
 0xeb5   :  { %v6113_v24 = vmul.f32 %v6078_v12, %v11574_v15  ;;  %v6270_v16 = vsel %vm210_vm1, %v6255_v38, 0.0  ;;  %v6237_v19 = vsel %vm210_vm1, %v11705_v34, 0.0  ;;  %v6256_v39 = vmul.f32 %v11705_v34, %v11705_v34 }
 0xeb6   :  { %v6080_v41 = vpop.permute.xlu1 %6079  ;;  %v6239_v15 = vsel %vm210_vm1, %v11697_v0, 0.0  ;;  %v6238_v30 = vadd.f32 %v6237_v19, %v6236_v60  ;;  %v6271_v8 = vadd.f32 %v6270_v16, %v6269_v56  ;;  %v8349_v16 = vld [vmem:[%s11875_s18] sm:$0x1f]   ;;  %v8721_v60 = vmov 65535  }
 0xeb7   :  { %v6193_v6 = vadd.f32 %v11616_v2, %v6113_v24  ;;  %v6114_v58 = vmul.f32 %v6080_v41, %v11582_v4  ;;  %v6287_v37 = vsel %vm210_vm1, %v6256_v39, 0.0  ;;  %v6258_v2 = vmul.f32 %v11697_v0, %v11697_v0 }
 0xeb8   :  { %v6162_v11 = vpop.permute.xlu0 %6161  ;;  %v6223_v4 = vadd.f32 %v6222_v59, %v6221_v55  ;;  %v6288_v32 = vadd.f32 %v6287_v37, %v6286_v44  ;;  %v6273_v21 = vadd.f32 %v6272_v7, %v6271_v8  ;;  %v6309_v8 = vld [vmem:[%s11876_s16] sm:$0xff] }
 0xeb9   :  { %v11720_v61 = vmax.f32 %v6193_v6, 0.0  ;;  %v6194_v52 = vadd.f32 %v11619_v57, %v6114_v58  ;;  %v6195_v63 = vadd.f32 %v6162_v11, %v6115_v10  ;;  %v6240_v57 = vadd.f32 %v6239_v15, %v6238_v30 }
 0xeba   :  { %v6164_v22 = vpop.permute.xlu1 %6163  ;;  %v6289_v9 = vsel %vm210_vm1, %v6258_v2, 0.0  ;;  %v6419_v10 = vsel %vm6417_vm9, 4294967295, %v8721_v60 }
 0xebb   :  { %v6259_v25 = vmul.f32 %v11720_v61, %v11720_v61  ;;  %v11727_v49 = vmax.f32 %v6194_v52, 0.0  ;;  %v11729_v35 = vmax.f32 %v6195_v63, 0.0  ;;  %v6196_v40 = vadd.f32 %v6164_v22, %v6116_v17 }
 0xebc   :  { %v6224_v46 = vsel %vm210_vm1, %v11720_v61, 0.0  ;;  %v6290_v12 = vadd.f32 %v6289_v9, %v6288_v32  ;;  %v6420_v41 = vsel %vm6418_vm10, %v6419_v10, 0 }
 0xebd   :  { %v6260_v51 = vmul.f32 %v11727_v49, %v11727_v49  ;;  %v6261_v48 = vmul.f32 %v11729_v35, %v11729_v35  ;;  %v11738_v27 = vmax.f32 %v6196_v40, 0.0  ;;  %v6225_v43 = vadd.f32 %v6224_v46, %v6223_v4  ;;  %v6313_v40 = vld [vmem:[%s11877_s17] sm:$0xff]  ;;  %v6310_v46 = vld [vmem:[%s11876_s16 + $0x8] sm:$0xff] }
 0xebe   :  { %v6226_v29 = vsel %vm210_vm1, %v11729_v35, 0.0  ;;  %v6241_v5 = vsel %vm210_vm1, %v11727_v49, 0.0  ;;  %v6274_v31 = vsel %vm210_vm1, %v6259_v25, 0.0  ;;  %v6422_v19 = vand.u32 %v8349_v16, %v6420_v41 }
 0xebf   :  { %v6227_v36 = vadd.f32 %v6226_v29, %v6225_v43  ;;  %v6242_v14 = vadd.f32 %v6241_v5, %v6240_v57  ;;  %v6243_v42 = vsel %vm210_vm1, %v11738_v27, 0.0  ;;  %v6262_v59 = vmul.f32 %v11738_v27, %v11738_v27 }
 0xec0   :  { %v6275_v28 = vadd.f32 %v6274_v31, %v6273_v21  ;;  %v6276_v33 = vsel %vm210_vm1, %v6261_v48, 0.0  ;;  %v6291_v62 = vsel %vm210_vm1, %v6260_v51, 0.0  ;;  %7855 = vmatprep.subr.bf16.mxu1 %v6422_v19  ;;  %v6314_v48 = vld [vmem:[%s11877_s17 + $0x8] sm:$0xff] }
 0xec1   :  { %6228 = vadd.xlane.f32.xlu0 %v6227_v36  ;;  %v6244_v38 = vadd.f32 %v6243_v42, %v6242_v14  ;;  %v6292_v18 = vadd.f32 %v6291_v62, %v6290_v12  ;;  %v6293_v24 = vsel %vm210_vm1, %v6262_v59, 0.0  ;;  %7856 = vmatpush3.bf16.msra.mxu1 %v6422_v19 }
 0xec2   :  { %v6277_v50 = vadd.f32 %v6276_v33, %v6275_v28 }
 0xec3   :  { %6245 = vadd.xlane.f32.xlu1 %v6244_v38  ;;  %v6294_v55 = vadd.f32 %v6293_v24, %v6292_v18 }
 0xec5   :  { %6278 = vadd.xlane.f32.xlu0 %v6277_v50 }
 0xec9   :  { %6295 = vadd.xlane.f32.xlu0 %v6294_v55 }
 0xf4e   :  { %v6229_v39 = vpop.xlane.xlu0 %6228 }
 0xf4f   :  { %v6297_v6 = vmul.f32 0.013888889, %v6229_v39 }
 0xf50   :  { %v6246_v58 = vpop.xlane.xlu1 %6245 }
 0xf51   :  { %v6301_v30 = vmul.f32 %v6297_v6, %v6297_v6  ;;  %v6298_v17 = vmul.f32 0.013888889, %v6246_v58 }
 0xf52   :  { %v6279_v15 = vpop.xlane.xlu0 %6278 }
 0xf53   :  { %v6299_v11 = vmul.f32 0.013888889, %v6279_v15  ;;  %v6302_v52 = vmul.f32 %v6298_v17, %v6298_v17 }
 0xf55   :  { %v6303_v56 = vsub.f32 %v6299_v11, %v6301_v30 }
 0xf56   :  { %v6296_v37 = vpop.xlane.xlu0 %6295 }
 0xf57   :  { %v6305_v63 = vadd.f32 1e-05, %v6303_v56  ;;  %v6300_v2 = vmul.f32 0.013888889, %v6296_v37 }
 0xf59   :  { %8706 = vrsqrt.f32 %v6305_v63  ;;  %v6304_v22 = vsub.f32 %v6300_v2, %v6302_v52 }
 0xf5b   :  { %v6306_v4 = vadd.f32 1e-05, %v6304_v22 }
 0xf5d   :  { %8708 = vrsqrt.f32 %v6306_v4 }
 0xf63   :  { %v8707_v44 = vpop.eup %8706 }
 0xf64   :  { %v6311_v25 = vmul.f32 %v8707_v44, %v6309_v8 }
 0xf66   :  { %6321 = vperm.xlu1 %8223, %v6311_v25   ;;  %v6315_v57 = vmul.f32 %v6311_v25, %v6297_v6 }
 0xf67   :  { %v8709_v7 = vpop.eup %8708 }
 0xf68   :  { %v6317_v32 = vsub.f32 %v6313_v40, %v6315_v57  ;;  %v6312_v51 = vmul.f32 %v8709_v7, %v6310_v46 }
 0xf6a   :  { %6347 = vperm.xlu1 %8223, %v6317_v32   ;;  %6326 = vperm.xlu0 %8224, %v6312_v51   ;;  %v6316_v43 = vmul.f32 %v6312_v51, %v6298_v17 }
 0xf6c   :  { %v6318_v29 = vsub.f32 %v6314_v48, %v6316_v43 }
 0xf6e   :  { %6352 = vperm.xlu1 %8223, %v6318_v29  }
 0xfe5   :  { %v6322_v5 = vpop.permute.xlu1 %6321 }
 0xfe6   :  { %v6329_v36 = vmul.f32 %v6322_v5, %v11627_v53  ;;  %v6331_v14 = vmul.f32 %v6322_v5, %v11625_v13  ;;  %v6333_v62 = vmul.f32 %v6322_v5, %v11652_v47 }
 0xfe9   :  { %v6348_v21 = vpop.permute.xlu1 %6347  ;;  %v6327_v31 = vpop.permute.xlu0 %6326 }
 0xfea   :  { %v6332_v42 = vmul.f32 %v6327_v31, %v11630_v26  ;;  %v6330_v9 = vmul.f32 %v6327_v31, %v11634_v3  ;;  %v6334_v59 = vmul.f32 %v6327_v31, %v11657_v45  ;;  %v6355_v33 = vadd.f32 %v6348_v21, %v6329_v36 }
 0xfeb   :  { %v6357_v50 = vadd.f32 %v6348_v21, %v6331_v14  ;;  %v6359_v16 = vadd.f32 %v6348_v21, %v6333_v62  ;;  %v6336_v53 = vmul.f32 %v6327_v31, %v11655_v23  ;;  %v6338_v26 = vmul.f32 %v6327_v31, %v11705_v34 }
 0xfec   :  { %v6335_v3 = vmul.f32 %v6322_v5, %v11644_v54  ;;  %v6337_v45 = vmul.f32 %v6322_v5, %v11691_v20  ;;  %v6340_v6 = vmul.f32 %v6327_v31, %v11697_v0  ;;  %v6342_v23 = vmul.f32 %v6327_v31, %v11727_v49 }
 0xfed   :  { %v6353_v28 = vpop.permute.xlu1 %6352  ;;  %v6339_v34 = vmul.f32 %v6322_v5, %v11679_v1  ;;  %v6341_v54 = vmul.f32 %v6322_v5, %v11720_v61  ;;  %v6344_v56 = vmul.f32 %v6327_v31, %v11738_v27  ;;  %v6343_v0 = vmul.f32 %v6322_v5, %v11729_v35  ;;  %v6900_v1 = vld [vmem:[%s11878_s19] ss:$0 sm:$0xff] }
 0xfee   :  { %v6358_v38 = vadd.f32 %v6353_v28, %v6332_v42  ;;  %v6356_v12 = vadd.f32 %v6353_v28, %v6330_v9  ;;  %v6360_v18 = vadd.f32 %v6353_v28, %v6334_v59  ;;  %v6362_v47 = vadd.f32 %v6353_v28, %v6336_v53 }
 0xfef   :  { %v6364_v60 = vadd.f32 %v6353_v28, %v6338_v26  ;;  %v6361_v10 = vadd.f32 %v6348_v21, %v6335_v3  ;;  %v6363_v41 = vadd.f32 %v6348_v21, %v6337_v45  ;;  %v6366_v58 = vadd.f32 %v6353_v28, %v6340_v6 }
 0xff0   :  { %v6371_v24 = vpack.c.bf16 %v6356_v12, %v6355_v33  ;;  %v6372_v55 = vpack.c.bf16 %v6358_v38, %v6357_v50  ;;  %v6373_v13 = vpack.c.bf16 %v6360_v18, %v6359_v16  ;;  %v6368_v15 = vadd.f32 %v6353_v28, %v6342_v23 }
 0xff1   :  { %v6374_v19 = vpack.c.bf16 %v6362_v47, %v6361_v10  ;;  %v6375_v39 = vpack.c.bf16 %v6364_v60, %v6363_v41  ;;  %v6365_v20 = vadd.f32 %v6348_v21, %v6339_v34  ;;  %v6367_v30 = vadd.f32 %v6348_v21, %v6341_v54 }
 0xff2   :  { %7857 = vmatprep.mubr.msk.bf16.mxu1 %vm210_vm1, %v6371_v24  ;;  %v6370_v37 = vadd.f32 %v6353_v28, %v6344_v56  ;;  %v6369_v49 = vadd.f32 %v6348_v21, %v6343_v0 }
 0xff3   :  { %7858 = vmatmul.mubr.msk.bf16.vlgmr.msra.gmra.mrb[192].mxu1 %vm210_vm1, %v6372_v55  ;;  %v6376_v17 = vpack.c.bf16 %v6366_v58, %v6365_v20  ;;  %v6377_v11 = vpack.c.bf16 %v6368_v15, %v6367_v30 }
 0xff4   :  { %7861 = vmatprep.mubr.msk.bf16.mxu1 %vm210_vm1, %v6373_v13  ;;  %v6378_v52 = vpack.c.bf16 %v6370_v37, %v6369_v49 }
 0xffb   :  { %7862 = vmatmul.mubr.msk.bf16.gmra.mrb[196].mxu1 %vm210_vm1, %v6374_v19 }
 0xffc   :  { %7865 = vmatprep.mubr.msk.bf16.mxu1 %vm210_vm1, %v6375_v39 }
0x1003   :  { %7866 = vmatmul.mubr.msk.bf16.gmra.mrb[200].mxu1 %vm210_vm1, %v6376_v17 }
0x1004   :  { %7869 = vmatprep.mubr.msk.bf16.mxu1 %vm210_vm1, %v6377_v11 }
0x100b   :  { %7870 = vmatmul.mubr.msk.bf16.gmra.mrb[204].mxu1 %vm210_vm1, %v6378_v52 }
0x10c6   :  { %v7859_v61 = vpop.f32.mrb[192].mxu1 }
0x10c7   :  { %v6467_v63 = vadd.f32 %v7859_v61, %v6900_v1  ;;  %v6458_v2 = vpop.f32.mrb[193].mxu1 }
0x10c8   :  { %v6459_v22 = vadd.f32 %v6900_v1, %v6458_v2  ;;  %v7860_v4 = vpop.f32.mrb[194].mxu1 }
0x10c9   :  { %6524 = vst.msk [vmem:[%s11879_s20 + $0x10] sm:$0xff] %vm6521_vm11, %v6467_v63  ;;  %v6470_v35 = vadd.f32 %v7860_v4, %v6900_v1  ;;  %v6461_v27 = vpop.f32.mrb[195].mxu1 }
0x10ca   :  { %6522 = vst.msk [vmem:[%s11879_s20] sm:$0xff] %vm6521_vm11, %v6459_v22  ;;  %v6462_v8 = vadd.f32 %v6900_v1, %v6461_v27 }
0x10cb   :  { %6525 = vst.msk [vmem:[%s11879_s20 + $0x18] sm:$0xff] %vm6521_vm11, %v6470_v35 }
0x10cc   :  { %6523 = vst.msk [vmem:[%s11879_s20 + $0x8] sm:$0xff] %vm6521_vm11, %v6462_v8 }
0x10ce   :  { %v7863_v44 = vpop.f32.mrb[196].mxu1 }
0x10cf   :  { %v6483_v25 = vadd.f32 %v7863_v44, %v6900_v1  ;;  %v6474_v40 = vpop.f32.mrb[197].mxu1 }
0x10d0   :  { %v6475_v46 = vadd.f32 %v6900_v1, %v6474_v40  ;;  %v7864_v57 = vpop.f32.mrb[198].mxu1 }
0x10d1   :  { %6528 = vst.msk [vmem:[%s11879_s20 + $0x30] sm:$0xff] %vm6521_vm11, %v6483_v25  ;;  %v6486_v7 = vadd.f32 %v7864_v57, %v6900_v1  ;;  %v6477_v32 = vpop.f32.mrb[199].mxu1 }
0x10d2   :  { %6526 = vst.msk [vmem:[%s11879_s20 + $0x20] sm:$0xff] %vm6521_vm11, %v6475_v46  ;;  %v6478_v51 = vadd.f32 %v6900_v1, %v6477_v32 }
0x10d3   :  { %6529 = vst.msk [vmem:[%s11879_s20 + $0x38] sm:$0xff] %vm6521_vm11, %v6486_v7 }
0x10d4   :  { %6527 = vst.msk [vmem:[%s11879_s20 + $0x28] sm:$0xff] %vm6521_vm11, %v6478_v51 }
0x10d6   :  { %v7867_v48 = vpop.f32.mrb[200].mxu1 }
0x10d7   :  { %v6499_v43 = vadd.f32 %v7867_v48, %v6900_v1  ;;  %v6490_v29 = vpop.f32.mrb[201].mxu1 }
0x10d8   :  { %v6491_v5 = vadd.f32 %v6900_v1, %v6490_v29  ;;  %v7868_v21 = vpop.f32.mrb[202].mxu1 }
0x10d9   :  { %6532 = vst.msk [vmem:[%s11879_s20 + $0x50] sm:$0xff] %vm6521_vm11, %v6499_v43  ;;  %v6502_v31 = vadd.f32 %v7868_v21, %v6900_v1  ;;  %v6493_v36 = vpop.f32.mrb[203].mxu1 }
0x10da   :  { %6530 = vst.msk [vmem:[%s11879_s20 + $0x40] sm:$0xff] %vm6521_vm11, %v6491_v5  ;;  %v6494_v14 = vadd.f32 %v6900_v1, %v6493_v36 }
0x10db   :  { %6533 = vst.msk [vmem:[%s11879_s20 + $0x58] sm:$0xff] %vm6521_vm11, %v6502_v31 }
0x10dc   :  { %6531 = vst.msk [vmem:[%s11879_s20 + $0x48] sm:$0xff] %vm6521_vm11, %v6494_v14 }
0x10de   :  { %v7871_v42 = vpop.f32.mrb[204].mxu1 }
0x10df   :  { %v6515_v9 = vadd.f32 %v7871_v42, %v6900_v1  ;;  %v6506_v59 = vpop.f32.mrb[205].mxu1 }
0x10e0   :  { %v6507_v28 = vadd.f32 %v6900_v1, %v6506_v59  ;;  %v7872_v33 = vpop.f32.mrb[206].mxu1 }
0x10e1   :  { %6536 = vst.msk [vmem:[%s11879_s20 + $0x70] sm:$0xff] %vm6521_vm11, %v6515_v9  ;;  %v6518_v62 = vadd.f32 %v7872_v33, %v6900_v1  ;;  %v6509_v38 = vpop.f32.mrb[207].mxu1 }
0x10e2   :  { %6534 = vst.msk [vmem:[%s11879_s20 + $0x60] sm:$0xff] %vm6521_vm11, %v6507_v28  ;;  %v6510_v12 = vadd.f32 %v6900_v1, %v6509_v38 }
0x10e3   :  { %6537 = vst.msk [vmem:[%s11879_s20 + $0x78] sm:$0xff] %vm6521_vm11, %v6518_v62 }
0x10e4   :  { %6535 = vst.msk [vmem:[%s11879_s20 + $0x68] sm:$0xff] %vm6521_vm11, %v6510_v12 }

</bundles_post_ra>
